<compile_context>
chip_gen: v5e
topology: v5e:2x2
jax: 0.10.0
libtpu: 0.0.40
codegen_flags: <defaults>
</compile_context>

<pallas_src>
import functools
import math

import numpy as np
import jax
import jax.numpy as jnp
from jax.experimental import pallas as pl
from jax.experimental.pallas import tpu as pltpu

# Globals used by IsoFusion/model.py (module scope there); deterministic values.
KERNEL_RT = 2
KERNEL_MZ = 2
KH = KERNEL_RT * 2 + 1          # 5 (H-axis kernel, stride 1 -> overlapping windows)
KW = KERNEL_MZ * 2 + 1          # 5 (W-axis kernel, stride KW -> non-overlapping)
KWP = 8                         # KW padded to a full sublane group

_INV_SQRT2 = 1.0 / math.sqrt(2.0)


def _round_up(a, b):
    return ((a + b - 1) // b) * b


def _step_vmem_bytes(g, h, ho, wo, c1, cout):
    """Rough per-grid-step VMEM footprint (double-buffered in/out + scratch)."""
    u = g * wo                      # lanes contributed by one output row
    mb = ho * u                     # output lanes per step
    b_in = 2 * 8 * h * u * 4        # (KW -> 8 sublanes, H*G*Wo lanes), 2 buffers
    b_out = 2 * _round_up(cout, 8) * mb * 4
    b_col = KH * KWP * mb * 4       # im2col scratch
    b_tmp = 3 * _round_up(c1, 8) * mb * 4   # h / gelu intermediates
    return b_in + b_out + b_col + b_tmp


def _pick_g(nd, h, ho, wo, c1, cout, vmem_budget):
    """Pick G with G*Wo % 128 == 0, sized from a VMEM byte budget."""
    g_align = 128 // math.gcd(wo, 128)      # smallest G giving 128-aligned lanes
    nd_cap = _round_up(nd, g_align)
    g = g_align
    while (g + g_align) <= nd_cap and \
            _step_vmem_bytes(g + g_align, h, ho, wo, c1, cout) <= vmem_budget:
        g += g_align
    # v7x megacore: if everything landed in a single step, split into two equal
    # steps when that costs no extra padding (both TensorCores get work).
    if -(-nd // g) == 1 and nd % (2 * g_align) == 0 and nd // 2 >= g_align:
        g = nd // 2
    return g


def _embed_kernel(xs_ref, w1_ref, b1_ref, w2_ref, b2_ref, o_ref, col_ref, *,
                  g_wo, mb):
    """One grid step.  Lane axis = output positions (ho, g, wo), mb lanes.

      col[i*8 + j, m] = x[..., ho+i, wo*KW + j]   (in-VMEM im2col, KH aligned copies)
      h   = W1f @ col + b1          (C1, mb)      one fused MXU matmul (K = KH*8)
      out = W2 @ gelu(h) + b2       (Cout, mb)    lane-dense, unmasked store
    """
    # In-VMEM im2col: KH aligned (KW, mb) block copies (offsets are multiples of
    # 128 lanes / 8 sublanes).  The 3 pad rows of every 8-row group are zeroed;
    # they line up with zero columns of w1f.  zpad hoisted out of the loop.
    zpad = jnp.zeros((KWP - KW, mb), dtype=jnp.float32)
    for i in range(KH):                                    # static, KH=5
        col_ref[i * KWP:i * KWP + KW, :] = xs_ref[:, i * g_wo:i * g_wo + mb]
        col_ref[i * KWP + KW:(i + 1) * KWP, :] = zpad

    h = jnp.dot(w1_ref[...], col_ref[...],
                preferred_element_type=jnp.float32) + b1_ref[...]
    # exact GELU (matches torch.nn.GELU() default, erf-based)
    # TODO(synk): tanh/EUP GELU + bf16 would be faster but breaks the 2e-5
    # parity check against the erf/f32 torch reference.
    g = 0.5 * h * (1.0 + jax.lax.erf(h * _INV_SQRT2))
    # 1x1 conv as matmul, lane-dense output (mb is a multiple of 128).
    o_ref[...] = (jnp.dot(w2_ref[...], g, preferred_element_type=jnp.float32)
                  + b2_ref[...]).astype(o_ref.dtype)


def embed_layer_pallas(x, w1, b1, w2, b2, *, vmem_budget_bytes=24 << 20):
    """
    x  : (N, 1, D, H, W)  float32   (NCDHW, as in PyTorch)
    w1 : (C1, 1, 1, KH, KW)   b1 : (C1,)
    w2 : (Cout, C1, 1, 1, 1)  b2 : (Cout,)
    returns (N, Cout, D, Ho, Wo) with Ho = H - KH + 1, Wo = W // KW
    """
    N, Cin, D, H, W = x.shape
    assert Cin == 1
    C1 = w1.shape[0]
    Cout = w2.shape[0]
    Ho = H - KH + 1
    Wo = (W - KW) // KW + 1
    ND = N * D

    # ---- tiling: fold G samples into the lane axis, G*Wo % 128 == 0 --------
    G = _pick_g(ND, H, Ho, Wo, C1, Cout, vmem_budget_bytes)
    P = -(-ND // G)                 # grid steps
    NDp = P * G                     # padded sample count (zero samples at tail)
    GWo = G * Wo                    # aligned shift unit (multiple of 128)
    HGW = H * GWo                   # input lanes per step
    Mb = Ho * GWo                   # output lanes per step (multiple of 128)

    # ---- layout glue: ONE same-size W-deinterleave transpose (not im2col) --
    # xd[p, j, (h*G + g)*Wo + wo] = x[n, 0, d, h, wo*KW + j],   n*D + d = p*G + g
    # TODO(synk): this pre-transpose and the epilogue un-permute are each one
    # extra HBM pass; doing the stride-KW deinterleave in-kernel would need
    # lane-sparse strided slices (W on lanes) and was not adopted for
    # lowering-safety — XLA fuses pad+reshape+transpose into a single copy.
    x2 = x[:, 0].reshape(ND, H, W)[:, :, :Wo * KW]          # (ND, H, Wo*KW)
    if NDp != ND:
        x2 = jnp.pad(x2, ((0, NDp - ND), (0, 0), (0, 0)))
    xd = jnp.transpose(x2.reshape(P, G, H, Wo, KW), (0, 4, 2, 1, 3))
    xd = xd.reshape(P, KW, HGW)

    # Single (C1, KH*8) weight tile; columns j=5..7 of each 8-group are zero and
    # line up with the zeroed pad rows of the im2col scratch.
    w1f = jnp.pad(w1.reshape(C1, KH, KW), ((0, 0), (0, 0), (0, KWP - KW)))
    w1f = w1f.reshape(C1, KH * KWP)
    w2m = w2.reshape(Cout, C1)
    b1c = b1.reshape(C1, 1)
    b2c = b2.reshape(Cout, 1)

    vmem_limit = int(min(max(_step_vmem_bytes(G, H, Ho, Wo, C1, Cout) * 5 // 4
                             + (2 << 20), 32 << 20), 56 << 20))

    kernel = functools.partial(_embed_kernel, g_wo=GWo, mb=Mb)

    out = pl.pallas_call(
        kernel,
        out_shape=jax.ShapeDtypeStruct((P, Cout, Mb), x.dtype),
        grid_spec=pltpu.PrefetchScalarGridSpec(
            num_scalar_prefetch=0,
            grid=(P,),
            in_specs=[
                pl.BlockSpec((None, KW, HGW), lambda b: (b, 0, 0)),
                pl.BlockSpec((C1, KH * KWP), lambda b: (0, 0)),
                pl.BlockSpec((C1, 1), lambda b: (0, 0)),
                pl.BlockSpec((Cout, C1), lambda b: (0, 0)),
                pl.BlockSpec((Cout, 1), lambda b: (0, 0)),
            ],
            out_specs=pl.BlockSpec((None, Cout, Mb), lambda b: (b, 0, 0)),
            scratch_shapes=[pltpu.VMEM((KH * KWP, Mb), jnp.float32)],
        ),
        compiler_params=pltpu.CompilerParams(
            dimension_semantics=("parallel",),
            vmem_limit_bytes=vmem_limit),
    )(xd, w1f, b1c, w2m, b2c)

    # ---- back to NCDHW (N, Cout, D, Ho, Wo), drop pad samples ---------------
    out = out.reshape(P, Cout, Ho, G, Wo)
    out = jnp.transpose(out, (0, 3, 1, 2, 4)).reshape(NDp, Cout, Ho, Wo)[:ND]
    out = out.reshape(N, D, Cout, Ho, Wo)
    return jnp.transpose(out, (0, 2, 1, 3, 4))


def _reference(x, w1, b1, w2, b2):
    """Independent pure-JAX reference using lax convolutions (same math as torch)."""
    C1, Cout = w1.shape[0], w2.shape[0]
    dn = jax.lax.conv_dimension_numbers(x.shape, w1.shape, ("NCDHW", "OIDHW", "NCDHW"))
    y = jax.lax.conv_general_dilated(
        x, w1, window_strides=(1, 1, KW), padding="VALID", dimension_numbers=dn
    ) + b1.reshape(1, C1, 1, 1, 1)
    y = 0.5 * y * (1.0 + jax.lax.erf(y * _INV_SQRT2))     # exact GELU
    dn2 = jax.lax.conv_dimension_numbers(y.shape, w2.shape, ("NCDHW", "OIDHW", "NCDHW"))
    z = jax.lax.conv_general_dilated(
        y, w2, window_strides=(1, 1, 1), padding="VALID", dimension_numbers=dn2
    ) + b2.reshape(1, Cout, 1, 1, 1)
    return z


if __name__ == "__main__":
    width, width_scale = 8, 4
    C1 = width * width_scale                          # 32
    N, D, H, W = 2, 4, 16, 20                         # W divisible by KW=5

    key = jax.random.PRNGKey(0)
    kx, k1, k2, k3, k4 = jax.random.split(key, 5)
    x = jax.random.normal(kx, (N, 1, D, H, W), dtype=jnp.float32)

    # Deterministic parameter init (shapes from the Conv3d definitions).
    w1 = (jax.random.normal(k1, (C1, 1, 1, KH, KW), dtype=jnp.float32)
          * (1.0 / math.sqrt(KH * KW)))
    b1 = jax.random.normal(k2, (C1,), dtype=jnp.float32) * 0.1
    w2 = (jax.random.normal(k3, (width, C1, 1, 1, 1), dtype=jnp.float32)
          * (1.0 / math.sqrt(C1)))
    b2 = jax.random.normal(k4, (width,), dtype=jnp.float32) * 0.1

    out = embed_layer_pallas(x, w1, b1, w2, b2)
    out = jax.block_until_ready(out)

    ref = jax.block_until_ready(_reference(x, w1, b1, w2, b2))
    assert out.shape == ref.shape == (N, width, D, H - KH + 1, W // KW)
    np.testing.assert_allclose(np.asarray(out), np.asarray(ref), rtol=2e-5, atol=2e-5)

    print("KERNEL_OK")
</pallas_src>

<mosaic_0001>
module attributes {stable_mosaic.version = 11 : i64} {
  func.func @_embed_kernel(%arg0: i32, %arg1: memref<1x5x2048xf32, #tpu.memory_space<vmem>>, %arg2: memref<32x40xf32, #tpu.memory_space<vmem>>, %arg3: memref<32x1xf32, #tpu.memory_space<vmem>>, %arg4: memref<8x32xf32, #tpu.memory_space<vmem>>, %arg5: memref<8x1xf32, #tpu.memory_space<vmem>>, %arg6: memref<1x8x1536xf32, #tpu.memory_space<vmem>>, %arg7: memref<40x1536xf32, #tpu.memory_space<vmem>>) attributes {dimension_semantics = [#tpu.dimension_semantics<parallel>], iteration_bounds = array<i64: 1>, scalar_prefetch = 0 : i64, scratch_operands = 1 : i64, tpu.core_type = #tpu.core_type<tc>, window_params = [{transform_indices = @transform_0, window_bounds = array<i64: 1, 5, 2048>}, {pipeline_mode = #tpu.pipeline_mode<synchronous>, transform_indices = @transform_1, window_bounds = array<i64: 32, 40>}, {pipeline_mode = #tpu.pipeline_mode<synchronous>, transform_indices = @transform_2, window_bounds = array<i64: 32, 1>}, {pipeline_mode = #tpu.pipeline_mode<synchronous>, transform_indices = @transform_3, window_bounds = array<i64: 8, 32>}, {pipeline_mode = #tpu.pipeline_mode<synchronous>, transform_indices = @transform_4, window_bounds = array<i64: 8, 1>}, {transform_indices = @transform_5, window_bounds = array<i64: 1, 8, 1536>}]} {
    %cst = arith.constant 0.000000e+00 : f32
    %0 = vector.broadcast %cst : f32 to vector<3x1536xf32>
    %c0 = arith.constant 0 : index
    %c0_0 = arith.constant 0 : index
    %c0_1 = arith.constant 0 : index
    %1 = vector.load %arg1[%c0, %c0_0, %c0_1] : memref<1x5x2048xf32, #tpu.memory_space<vmem>>, vector<1x5x1536xf32>
    %2 = vector.shape_cast %1 : vector<1x5x1536xf32> to vector<5x1536xf32>
    %c0_2 = arith.constant 0 : index
    %c0_3 = arith.constant 0 : index
    %3 = vector.load %arg7[%c0_2, %c0_3] : memref<40x1536xf32, #tpu.memory_space<vmem>>, vector<5x1536xf32>
    tpu.vector_store %arg7[%c0_2, %c0_3], %2 {strides = array<i32>} : memref<40x1536xf32, #tpu.memory_space<vmem>>, vector<5x1536xf32>,
    %c5 = arith.constant 5 : index
    %c0_4 = arith.constant 0 : index
    %4 = vector.load %arg7[%c5, %c0_4] : memref<40x1536xf32, #tpu.memory_space<vmem>>, vector<3x1536xf32>
    tpu.vector_store %arg7[%c5, %c0_4], %0 {strides = array<i32>} : memref<40x1536xf32, #tpu.memory_space<vmem>>, vector<3x1536xf32>,
    %c0_5 = arith.constant 0 : index
    %c0_6 = arith.constant 0 : index
    %c128 = arith.constant 128 : index
    %5 = vector.load %arg1[%c0_5, %c0_6, %c128] : memref<1x5x2048xf32, #tpu.memory_space<vmem>>, vector<1x5x1536xf32>
    %6 = vector.shape_cast %5 : vector<1x5x1536xf32> to vector<5x1536xf32>
    %c8 = arith.constant 8 : index
    %c0_7 = arith.constant 0 : index
    %7 = vector.load %arg7[%c8, %c0_7] : memref<40x1536xf32, #tpu.memory_space<vmem>>, vector<5x1536xf32>
    tpu.vector_store %arg7[%c8, %c0_7], %6 {strides = array<i32>} : memref<40x1536xf32, #tpu.memory_space<vmem>>, vector<5x1536xf32>,
    %c13 = arith.constant 13 : index
    %c0_8 = arith.constant 0 : index
    %8 = vector.load %arg7[%c13, %c0_8] : memref<40x1536xf32, #tpu.memory_space<vmem>>, vector<3x1536xf32>
    tpu.vector_store %arg7[%c13, %c0_8], %0 {strides = array<i32>} : memref<40x1536xf32, #tpu.memory_space<vmem>>, vector<3x1536xf32>,
    %c0_9 = arith.constant 0 : index
    %c0_10 = arith.constant 0 : index
    %c256 = arith.constant 256 : index
    %9 = vector.load %arg1[%c0_9, %c0_10, %c256] : memref<1x5x2048xf32, #tpu.memory_space<vmem>>, vector<1x5x1536xf32>
    %10 = vector.shape_cast %9 : vector<1x5x1536xf32> to vector<5x1536xf32>
    %c16 = arith.constant 16 : index
    %c0_11 = arith.constant 0 : index
    %11 = vector.load %arg7[%c16, %c0_11] : memref<40x1536xf32, #tpu.memory_space<vmem>>, vector<5x1536xf32>
    tpu.vector_store %arg7[%c16, %c0_11], %10 {strides = array<i32>} : memref<40x1536xf32, #tpu.memory_space<vmem>>, vector<5x1536xf32>,
    %c21 = arith.constant 21 : index
    %c0_12 = arith.constant 0 : index
    %12 = vector.load %arg7[%c21, %c0_12] : memref<40x1536xf32, #tpu.memory_space<vmem>>, vector<3x1536xf32>
    tpu.vector_store %arg7[%c21, %c0_12], %0 {strides = array<i32>} : memref<40x1536xf32, #tpu.memory_space<vmem>>, vector<3x1536xf32>,
    %c0_13 = arith.constant 0 : index
    %c0_14 = arith.constant 0 : index
    %c384 = arith.constant 384 : index
    %13 = vector.load %arg1[%c0_13, %c0_14, %c384] : memref<1x5x2048xf32, #tpu.memory_space<vmem>>, vector<1x5x1536xf32>
    %14 = vector.shape_cast %13 : vector<1x5x1536xf32> to vector<5x1536xf32>
    %c24 = arith.constant 24 : index
    %c0_15 = arith.constant 0 : index
    %15 = vector.load %arg7[%c24, %c0_15] : memref<40x1536xf32, #tpu.memory_space<vmem>>, vector<5x1536xf32>
    tpu.vector_store %arg7[%c24, %c0_15], %14 {strides = array<i32>} : memref<40x1536xf32, #tpu.memory_space<vmem>>, vector<5x1536xf32>,
    %c29 = arith.constant 29 : index
    %c0_16 = arith.constant 0 : index
    %16 = vector.load %arg7[%c29, %c0_16] : memref<40x1536xf32, #tpu.memory_space<vmem>>, vector<3x1536xf32>
    tpu.vector_store %arg7[%c29, %c0_16], %0 {strides = array<i32>} : memref<40x1536xf32, #tpu.memory_space<vmem>>, vector<3x1536xf32>,
    %c0_17 = arith.constant 0 : index
    %c0_18 = arith.constant 0 : index
    %c512 = arith.constant 512 : index
    %17 = vector.load %arg1[%c0_17, %c0_18, %c512] : memref<1x5x2048xf32, #tpu.memory_space<vmem>>, vector<1x5x1536xf32>
    %18 = vector.shape_cast %17 : vector<1x5x1536xf32> to vector<5x1536xf32>
    %c32 = arith.constant 32 : index
    %c0_19 = arith.constant 0 : index
    %19 = vector.load %arg7[%c32, %c0_19] : memref<40x1536xf32, #tpu.memory_space<vmem>>, vector<5x1536xf32>
    tpu.vector_store %arg7[%c32, %c0_19], %18 {strides = array<i32>} : memref<40x1536xf32, #tpu.memory_space<vmem>>, vector<5x1536xf32>,
    %c37 = arith.constant 37 : index
    %c0_20 = arith.constant 0 : index
    %20 = vector.load %arg7[%c37, %c0_20] : memref<40x1536xf32, #tpu.memory_space<vmem>>, vector<3x1536xf32>
    tpu.vector_store %arg7[%c37, %c0_20], %0 {strides = array<i32>} : memref<40x1536xf32, #tpu.memory_space<vmem>>, vector<3x1536xf32>,
    %c0_21 = arith.constant 0 : index
    %c0_22 = arith.constant 0 : index
    %21 = vector.load %arg2[%c0_21, %c0_22] : memref<32x40xf32, #tpu.memory_space<vmem>>, vector<32x40xf32>
    %c0_23 = arith.constant 0 : index
    %c0_24 = arith.constant 0 : index
    %22 = vector.load %arg7[%c0_23, %c0_24] : memref<40x1536xf32, #tpu.memory_space<vmem>>, vector<40x1536xf32>
    %cst_25 = arith.constant dense<0.000000e+00> : vector<32x1536xf32>
    %23 = tpu.matmul %21, %22, %cst_25 {dimension_numbers = #tpu.dot_dimension_numbers<[1], [0], [0], [1], [0, 0, 1, 1], [], []>} : vector<32x40xf32>, vector<40x1536xf32>, vector<32x1536xf32> -> vector<32x1536xf32>
    %c0_26 = arith.constant 0 : index
    %c0_27 = arith.constant 0 : index
    %24 = vector.load %arg3[%c0_26, %c0_27] : memref<32x1xf32, #tpu.memory_space<vmem>>, vector<32x1xf32>
    %25 = vector.broadcast %24 : vector<32x1xf32> to vector<32x1536xf32>
    %26 = arith.addf %23, %25 : vector<32x1536xf32>
    %cst_28 = arith.constant 5.000000e-01 : f32
    %27 = vector.broadcast %cst_28 : f32 to vector<32x1536xf32>
    %28 = arith.mulf %27, %26 : vector<32x1536xf32>
    %cst_29 = arith.constant 0.707106769 : f32
    %29 = vector.broadcast %cst_29 : f32 to vector<32x1536xf32>
    %30 = arith.mulf %26, %29 : vector<32x1536xf32>
    %31 = math.erf %30 : vector<32x1536xf32>
    %cst_30 = arith.constant 1.000000e+00 : f32
    %32 = vector.broadcast %cst_30 : f32 to vector<32x1536xf32>
    %33 = arith.addf %32, %31 : vector<32x1536xf32>
    %34 = arith.mulf %28, %33 : vector<32x1536xf32>
    %c0_31 = arith.constant 0 : index
    %c0_32 = arith.constant 0 : index
    %35 = vector.load %arg4[%c0_31, %c0_32] : memref<8x32xf32, #tpu.memory_space<vmem>>, vector<8x32xf32>
    %cst_33 = arith.constant dense<0.000000e+00> : vector<8x1536xf32>
    %36 = tpu.matmul %35, %34, %cst_33 {dimension_numbers = #tpu.dot_dimension_numbers<[1], [0], [0], [1], [0, 0, 1, 1], [], []>} : vector<8x32xf32>, vector<32x1536xf32>, vector<8x1536xf32> -> vector<8x1536xf32>
    %c0_34 = arith.constant 0 : index
    %c0_35 = arith.constant 0 : index
    %37 = vector.load %arg5[%c0_34, %c0_35] : memref<8x1xf32, #tpu.memory_space<vmem>>, vector<8x1xf32>
    %38 = vector.broadcast %37 : vector<8x1xf32> to vector<8x1536xf32>
    %39 = arith.addf %36, %38 : vector<8x1536xf32>
    %c0_36 = arith.constant 0 : index
    %c0_37 = arith.constant 0 : index
    %c0_38 = arith.constant 0 : index
    %40 = vector.load %arg6[%c0_36, %c0_37, %c0_38] : memref<1x8x1536xf32, #tpu.memory_space<vmem>>, vector<1x8x1536xf32>
    %41 = vector.shape_cast %40 : vector<1x8x1536xf32> to vector<8x1536xf32>
    %42 = vector.shape_cast %39 : vector<8x1536xf32> to vector<1x8x1536xf32>
    tpu.vector_store %arg6[%c0_36, %c0_37, %c0_38], %42 {strides = array<i32>} : memref<1x8x1536xf32, #tpu.memory_space<vmem>>, vector<1x8x1536xf32>,
    return
  }
  func.func @transform_0(%arg0: i32) -> (i32, i32, i32) {
    %c0_i32 = arith.constant 0 : i32
    %c0_i32_0 = arith.constant 0 : i32
    %c0_i32_1 = arith.constant 0 : i32
    return %arg0, %c0_i32, %c0_i32_0 : i32, i32, i32
  }
  func.func @transform_1(%arg0: i32) -> (i32, i32) {
    %c0_i32 = arith.constant 0 : i32
    %c0_i32_0 = arith.constant 0 : i32
    %c0_i32_1 = arith.constant 0 : i32
    return %c0_i32, %c0_i32_0 : i32, i32
  }
  func.func @transform_2(%arg0: i32) -> (i32, i32) {
    %c0_i32 = arith.constant 0 : i32
    %c0_i32_0 = arith.constant 0 : i32
    %c0_i32_1 = arith.constant 0 : i32
    return %c0_i32, %c0_i32_0 : i32, i32
  }
  func.func @transform_3(%arg0: i32) -> (i32, i32) {
    %c0_i32 = arith.constant 0 : i32
    %c0_i32_0 = arith.constant 0 : i32
    %c0_i32_1 = arith.constant 0 : i32
    return %c0_i32, %c0_i32_0 : i32, i32
  }
  func.func @transform_4(%arg0: i32) -> (i32, i32) {
    %c0_i32 = arith.constant 0 : i32
    %c0_i32_0 = arith.constant 0 : i32
    %c0_i32_1 = arith.constant 0 : i32
    return %c0_i32, %c0_i32_0 : i32, i32
  }
  func.func @transform_5(%arg0: i32) -> (i32, i32, i32) {
    %c0_i32 = arith.constant 0 : i32
    %c0_i32_0 = arith.constant 0 : i32
    %c0_i32_1 = arith.constant 0 : i32
    return %arg0, %c0_i32, %c0_i32_0 : i32, i32, i32
  }
}

</mosaic_0001>

<bundles_post_ra>
// kernel: tpu_custom_call.1
= control target key start
LH: loop header
LB: loop body
LE: loop exit
PB: predicated region body
PF: predicated region fallthrough
CT: control target
= control target key end

     0   :  { %s6409_s0 = inlined_call_operand.vmem [shape: f32[1,5,2048], index: 0, kind: input, shape index: {}]   ;;  %s6410_s1 = inlined_call_operand.vmem [shape: f32[32,40], index: 1, kind: input, shape index: {}]   ;;  %s6411_s2 = inlined_call_operand.vmem [shape: f32[32,1], index: 2, kind: input, shape index: {}]   ;;  %s6412_s3 = inlined_call_operand.vmem [shape: f32[8,32], index: 3, kind: input, shape index: {}]   ;;  %s6413_s4 = inlined_call_operand.vmem [shape: f32[8,1], index: 4, kind: input, shape index: {}]   ;;  %s6414_s5 = inlined_call_operand.hbm [shape: f32[1,8,1536], index: 5, kind: output, shape index: {}]  }
   0x1   :  { %v165_v0 = vld [vmem:[%s6409_s0 + $0x20] sm:$0x1f] }
   0x2   :  { %10 = vsyncpa [#allocation4], 0  ;;  %177 = vst [vmem:[#allocation2 + $0x68] sm:$0x1f] %v165_v0  ;;  %v3277_v1 = vmov 0.0   ;;  %v266_v3 = vld [vmem:[%s6411_s2 + $0x8] sm:$0xff] }
   0x3   :  { %189 = vst [vmem:[#allocation2 + $0x68] sm:$0xe0] %v3277_v1  ;;  %v166_v4 = vld [vmem:[%s6409_s0 + $0x28] sm:$0x1f]  ;;  %v3278_v5 = vmov 0   ;;  %v265_v13 = vld [vmem:[%s6411_s2] sm:$0xff] }
   0x4   :  { %45 = vst [vmem:[#allocation2 + $0xb0] sm:$0xe0] %v3277_v1  ;;  %3153 = vset.pattern.permute.xlu1 %v3278_v5  ;;  %3152 = vset.pattern.permute.xlu0 %v3278_v5  ;;  %v167_v6 = vld [vmem:[%s6409_s0 + $0x30] sm:$0x1f]  ;;  %v168_v7 = vld [vmem:[%s6409_s0 + $0x38] sm:$0x1f] }
   0x5   :  { %46 = vst [vmem:[#allocation2 + $0x1b0] sm:$0xe0] %v3277_v1  ;;  %276 = vperm.xlu1 %3153, %v266_v3   ;;  %3154 = vset.pattern.permute.xlu2 %v3278_v5  ;;  %v129_v8 = vld [vmem:[%s6409_s0 + $0x18] sm:$0x1f]  ;;  %v130_v9 = vld [vmem:[%s6409_s0 + $0x20] sm:$0x1f] }
   0x6   :  { %47 = vst [vmem:[#allocation2 + $0xd8] sm:$0xe0] %v3277_v1  ;;  %v131_v10 = vld [vmem:[%s6409_s0 + $0x28] sm:$0x1f]  ;;  %v132_v11 = vld [vmem:[%s6409_s0 + $0x30] sm:$0x1f] }
   0x7   :  { %48 = vst [vmem:[#allocation2 + $0x18] sm:$0xe0] %v3277_v1  ;;  %v93_v12 = vld [vmem:[%s6409_s0 + $0x10] sm:$0x1f]  ;;  %v94_v14 = vld [vmem:[%s6409_s0 + $0x18] sm:$0x1f] }
   0x8   :  { %49 = vst [vmem:[#allocation2 + $0x50] sm:$0xe0] %v3277_v1  ;;  %v95_v15 = vld [vmem:[%s6409_s0 + $0x20] sm:$0x1f]  ;;  %v96_v17 = vld [vmem:[%s6409_s0 + $0x28] sm:$0x1f] }
   0x9   :  { %50 = vst [vmem:[#allocation2 + $0x168] sm:$0xe0] %v3277_v1  ;;  %v57_v19 = vld [vmem:[%s6409_s0 + $0x8] sm:$0x1f]  ;;  %v58_v21 = vld [vmem:[%s6409_s0 + $0x10] sm:$0x1f] }
   0xa   :  { %v253_v2 = vld [vmem:[#allocation2 + $0x68] sm:$0xff]  ;;  %51 = vst [vmem:[#allocation2 + $0x130] sm:$0xe0] %v3277_v1  ;;  %v59_v23 = vld [vmem:[%s6409_s0 + $0x18] sm:$0x1f]  ;;  %v267_v43 = vld [vmem:[%s6411_s2 + $0x10] sm:$0xff] }
   0xb   :  { %313 = vmatpush.msra.mxu0 %v253_v2  ;;  %52 = vst [vmem:[#allocation2 + $0x48] sm:$0xe0] %v3277_v1  ;;  %v60_v25 = vld [vmem:[%s6409_s0 + $0x20] sm:$0x1f]  ;;  %v268_v26 = vld [vmem:[%s6411_s2 + $0x18] sm:$0xff]  ;;  %vm289_vm0 = vcmask 326656  }
   0xc   :  { %53 = vst [vmem:[#allocation2 + $0x180] sm:$0xe0] %v3277_v1  ;;  %v21_v28 = vld [vmem:[%s6409_s0] sm:$0x1f]  ;;  %286 = vperm.xlu0 %3152, %v268_v26   ;;  %v22_v30 = vld [vmem:[%s6409_s0 + $0x8] sm:$0x1f] }
   0xd   :  { %54 = vst [vmem:[#allocation2 + $0x110] sm:$0xe0] %v3277_v1  ;;  %271 = vperm.xlu1 %3153, %v265_v13   ;;  %v23_v32 = vld [vmem:[%s6409_s0 + $0x10] sm:$0x1f]  ;;  %v24_v34 = vld [vmem:[%s6409_s0 + $0x18] sm:$0x1f] }
   0xe   :  { %55 = vst [vmem:[#allocation2 + $0x118] sm:$0xe0] %v3277_v1  ;;  %v171_v36 = vld [vmem:[%s6409_s0 + $0x50] sm:$0x1f]  ;;  %v172_v38 = vld [vmem:[%s6409_s0 + $0x58] sm:$0x1f] }
   0xf   :  { %56 = vst [vmem:[#allocation2 + $0x98] sm:$0xe0] %v3277_v1  ;;  %v135_v40 = vld [vmem:[%s6409_s0 + $0x48] sm:$0x1f]  ;;  %v136_v42 = vld [vmem:[%s6409_s0 + $0x50] sm:$0x1f] }
  0x10   :  { %81 = vst [vmem:[#allocation2 + $0x120] sm:$0xe0] %v3277_v1  ;;  %v3457_v45 = vld [vmem:[%s6410_s1] sm:$0xff]  ;;  %v170_v48 = vld [vmem:[%s6409_s0 + $0x48] sm:$0x1f]  ;;  %s3032_s2 = sshll.u32 %s6414_s5, 4  ;;  %s3033_s2 = int_to_ptr.hbm [resolvable:$true] %s3032_s2 }
  0x11   :  { %82 = vst [vmem:[#allocation2 + $0x150] sm:$0xe0] %v3277_v1  ;;  %v169_v46 = vld [vmem:[%s6409_s0 + $0x40] sm:$0x1f]  ;;  %v100_v52 = vld [vmem:[%s6409_s0 + $0x48] sm:$0x1f] }
  0x12   :  { %83 = vst [vmem:[#allocation2 + $0x108] sm:$0xe0] %v3277_v1  ;;  %v99_v50 = vld [vmem:[%s6409_s0 + $0x40] sm:$0x1f]  ;;  %v133_v54 = vld [vmem:[%s6409_s0 + $0x38] sm:$0x1f] }
  0x13   :  { %84 = vst [vmem:[#allocation2 + $0x60] sm:$0xe0] %v3277_v1  ;;  %v134_v56 = vld [vmem:[%s6409_s0 + $0x40] sm:$0x1f]  ;;  %v63_v58 = vld [vmem:[%s6409_s0 + $0x38] sm:$0x1f] }
  0x14   :  { %85 = vst [vmem:[#allocation2 + $0xe0] sm:$0xe0] %v3277_v1  ;;  %281 = vperm.xlu0 %3152, %v267_v43   ;;  %v64_v60 = vld [vmem:[%s6409_s0 + $0x40] sm:$0x1f]  ;;  %v97_v62 = vld [vmem:[%s6409_s0 + $0x30] sm:$0x1f] }
  0x15   :  { %86 = vst [vmem:[#allocation2 + $0x188] sm:$0xe0] %v3277_v1  ;;  %v3497_v63 = vld [vmem:[%s6410_s1 + $0x8] sm:$0xff]  ;;  %v27_v3 = vld [vmem:[%s6409_s0 + $0x30] sm:$0x1f] }
  0x16   :  { %87 = vst [vmem:[#allocation2 + $0x138] sm:$0xe0] %v3277_v1  ;;  %v28_v5 = vld [vmem:[%s6409_s0 + $0x38] sm:$0x1f]  ;;  %v26_v13 = vld [vmem:[%s6409_s0 + $0x28] sm:$0x1f] }
  0x17   :  { %88 = vst [vmem:[#allocation2 + $0x140] sm:$0xe0] %v3277_v1  ;;  %v174_v26 = vld [vmem:[%s6409_s0 + $0x68] sm:$0x1f]  ;;  %v102_v43 = vld [vmem:[%s6409_s0 + $0x58] sm:$0x1f] }
  0x18   :  { %89 = vst [vmem:[#allocation2 + $0x80] sm:$0xe0] %v3277_v1 }
  0x19   :  { %90 = vst [vmem:[#allocation2 + $0x1a8] sm:$0xe0] %v3277_v1 }
  0x1a   :  { %91 = vst [vmem:[#allocation2 + $0x1b8] sm:$0xe0] %v3277_v1 }
  0x1b   :  { %92 = vst [vmem:[#allocation2 + $0x28] sm:$0xe0] %v3277_v1 }
  0x1c   :  { %117 = vst [vmem:[#allocation2 + $0xf0] sm:$0xe0] %v3277_v1 }
  0x1d   :  { %118 = vst [vmem:[#allocation2 + $0x158] sm:$0xe0] %v3277_v1 }
  0x1e   :  { %119 = vst [vmem:[#allocation2 + $0x128] sm:$0xe0] %v3277_v1 }
  0x1f   :  { %120 = vst [vmem:[#allocation2 + $0x1d8] sm:$0xe0] %v3277_v1 }
  0x20   :  { %121 = vst [vmem:[#allocation2 + $0x8] sm:$0xe0] %v3277_v1 }
  0x21   :  { %122 = vst [vmem:[#allocation2 + $0x170] sm:$0xe0] %v3277_v1 }
  0x22   :  { %123 = vst [vmem:[#allocation2 + $0xc0] sm:$0xe0] %v3277_v1 }
  0x23   :  { %124 = vst [vmem:[#allocation2 + $0xa0] sm:$0xe0] %v3277_v1 }
  0x24   :  { %125 = vst [vmem:[#allocation2 + $0x148] sm:$0xe0] %v3277_v1 }
  0x25   :  { %126 = vst [vmem:[#allocation2 + $0x1d0] sm:$0xe0] %v3277_v1 }
  0x26   :  { %127 = vst [vmem:[#allocation2 + $0x100] sm:$0xe0] %v3277_v1 }
  0x27   :  { %128 = vst [vmem:[#allocation2 + $0xf8] sm:$0xe0] %v3277_v1 }
  0x28   :  { %153 = vst [vmem:[#allocation2 + $0x40] sm:$0xe0] %v3277_v1 }
  0x29   :  { %154 = vst [vmem:[#allocation2 + $0xa8] sm:$0xe0] %v3277_v1 }
  0x2a   :  { %155 = vst [vmem:[#allocation2 + $0x190] sm:$0xe0] %v3277_v1 }
  0x2b   :  { %156 = vst [vmem:[#allocation2 + $0x1a0] sm:$0xe0] %v3277_v1 }
  0x2c   :  { %157 = vst [vmem:[#allocation2 + $0xb8] sm:$0xe0] %v3277_v1 }
  0x2d   :  { %158 = vst [vmem:[#allocation2] sm:$0xe0] %v3277_v1 }
  0x2e   :  { %159 = vst [vmem:[#allocation2 + $0x38] sm:$0xe0] %v3277_v1 }
  0x2f   :  { %160 = vst [vmem:[#allocation2 + $0x20] sm:$0xe0] %v3277_v1 }
  0x30   :  { %161 = vst [vmem:[#allocation2 + $0x10] sm:$0xe0] %v3277_v1 }
  0x31   :  { %162 = vst [vmem:[#allocation2 + $0x58] sm:$0xe0] %v3277_v1 }
  0x32   :  { %163 = vst [vmem:[#allocation2 + $0x88] sm:$0xe0] %v3277_v1 }
  0x33   :  { %164 = vst [vmem:[#allocation2 + $0xd0] sm:$0xe0] %v3277_v1 }
  0x34   :  { %190 = vst [vmem:[#allocation2 + $0xc8] sm:$0xe0] %v3277_v1 }
  0x35   :  { %191 = vst [vmem:[#allocation2 + $0x198] sm:$0xe0] %v3277_v1 }
  0x36   :  { %192 = vst [vmem:[#allocation2 + $0xe8] sm:$0xe0] %v3277_v1 }
  0x37   :  { %193 = vst [vmem:[#allocation2 + $0x178] sm:$0xe0] %v3277_v1 }
  0x38   :  { %194 = vst [vmem:[#allocation2 + $0x70] sm:$0xe0] %v3277_v1 }
  0x39   :  { %195 = vst [vmem:[#allocation2 + $0x1c8] sm:$0xe0] %v3277_v1 }
  0x3a   :  { %196 = vst [vmem:[#allocation2 + $0x90] sm:$0xe0] %v3277_v1 }
  0x3b   :  { %197 = vst [vmem:[#allocation2 + $0x160] sm:$0xe0] %v3277_v1 }
  0x3c   :  { %198 = vst [vmem:[#allocation2 + $0x30] sm:$0xe0] %v3277_v1 }
  0x3d   :  { %199 = vst [vmem:[#allocation2 + $0x78] sm:$0xe0] %v3277_v1 }
  0x3e   :  { %200 = vst [vmem:[#allocation2 + $0x1c0] sm:$0xe0] %v3277_v1  ;;  %v98_v1 = vld [vmem:[%s6409_s0 + $0x38] sm:$0x1f] }
  0x3f   :  { %178 = vst [vmem:[#allocation2 + $0xc8] sm:$0x1f] %v166_v4 }
  0x40   :  { %179 = vst [vmem:[#allocation2 + $0x198] sm:$0x1f] %v167_v6 }
  0x41   :  { %180 = vst [vmem:[#allocation2 + $0xe8] sm:$0x1f] %v168_v7  ;;  %v61_v7 = vld [vmem:[%s6409_s0 + $0x28] sm:$0x1f] }
  0x42   :  { %141 = vst [vmem:[#allocation2 + $0x40] sm:$0x1f] %v129_v8 }
  0x43   :  { %142 = vst [vmem:[#allocation2 + $0xa8] sm:$0x1f] %v130_v9  ;;  %v62_v9 = vld [vmem:[%s6409_s0 + $0x30] sm:$0x1f] }
  0x44   :  { %143 = vst [vmem:[#allocation2 + $0x190] sm:$0x1f] %v131_v10 }
  0x45   :  { %144 = vst [vmem:[#allocation2 + $0x1a0] sm:$0x1f] %v132_v11  ;;  %v25_v11 = vld [vmem:[%s6409_s0 + $0x20] sm:$0x1f] }
  0x46   :  { %v254_v16 = vld [vmem:[#allocation2 + $0xc8] sm:$0xff]  ;;  %105 = vst [vmem:[#allocation2 + $0xf0] sm:$0x1f] %v93_v12 }
  0x47   :  { %342 = vmatpush.msra.mxu1 %v254_v16  ;;  %v255_v18 = vld [vmem:[#allocation2 + $0x198] sm:$0xff]  ;;  %106 = vst [vmem:[#allocation2 + $0x158] sm:$0x1f] %v94_v14  ;;  %v3534_v16 = vld [vmem:[%s6410_s1 + $0x10] sm:$0xff] }
  0x48   :  { %371 = vmatpush.msra.mxu2 %v255_v18  ;;  %v256_v20 = vld [vmem:[#allocation2 + $0xe8] sm:$0xff]  ;;  %107 = vst [vmem:[#allocation2 + $0x128] sm:$0x1f] %v95_v15  ;;  %v175_v15 = vld [vmem:[%s6409_s0 + $0x70] sm:$0x1f] }
  0x49   :  { %400 = vmatpush.msra.mxu3 %v256_v20  ;;  %v241_v22 = vld [vmem:[#allocation2 + $0x40] sm:$0xff]  ;;  %108 = vst [vmem:[#allocation2 + $0x1d8] sm:$0x1f] %v96_v17  ;;  %v176_v18 = vld [vmem:[%s6409_s0 + $0x78] sm:$0x1f] }
  0x4a   :  { %314 = vmatpush.msra.mxu0 %v241_v22  ;;  %v242_v24 = vld [vmem:[#allocation2 + $0xa8] sm:$0xff]  ;;  %69 = vst [vmem:[#allocation2 + $0x120] sm:$0x1f] %v57_v19  ;;  %v140_v22 = vld [vmem:[%s6409_s0 + $0x70] sm:$0x1f] }
  0x4b   :  { %343 = vmatpush.msra.mxu1 %v242_v24  ;;  %v243_v27 = vld [vmem:[#allocation2 + $0x190] sm:$0xff]  ;;  %70 = vst [vmem:[#allocation2 + $0x150] sm:$0x1f] %v58_v21  ;;  %v139_v20 = vld [vmem:[%s6409_s0 + $0x68] sm:$0x1f] }
  0x4c   :  { %372 = vmatpush.msra.mxu2 %v243_v27  ;;  %v244_v29 = vld [vmem:[#allocation2 + $0x1a0] sm:$0xff]  ;;  %71 = vst [vmem:[#allocation2 + $0x108] sm:$0x1f] %v59_v23 }
  0x4d   :  { %401 = vmatpush.msra.mxu3 %v244_v29  ;;  %v229_v31 = vld [vmem:[#allocation2 + $0xf0] sm:$0xff]  ;;  %72 = vst [vmem:[#allocation2 + $0x60] sm:$0x1f] %v60_v25  ;;  %v173_v24 = vld [vmem:[%s6409_s0 + $0x60] sm:$0x1f] }
  0x4e   :  { %315 = vmatpush.msra.mxu0 %v229_v31  ;;  %v230_v33 = vld [vmem:[#allocation2 + $0x158] sm:$0xff]  ;;  %33 = vst [vmem:[#allocation2 + $0xb0] sm:$0x1f] %v21_v28  ;;  %v103_v28 = vld [vmem:[%s6409_s0 + $0x60] sm:$0x1f] }
  0x4f   :  { %344 = vmatpush.msra.mxu1 %v230_v33  ;;  %v231_v35 = vld [vmem:[#allocation2 + $0x128] sm:$0xff]  ;;  %34 = vst [vmem:[#allocation2 + $0x1b0] sm:$0x1f] %v22_v30  ;;  %v3571_v33 = vld [vmem:[%s6410_s1 + $0x18] sm:$0xff] }
  0x50   :  { %373 = vmatpush.msra.mxu2 %v231_v35  ;;  %v232_v37 = vld [vmem:[#allocation2 + $0x1d8] sm:$0xff]  ;;  %35 = vst [vmem:[#allocation2 + $0xd8] sm:$0x1f] %v23_v32  ;;  %v104_v30 = vld [vmem:[%s6409_s0 + $0x68] sm:$0x1f] }
  0x51   :  { %402 = vmatpush.msra.mxu3 %v232_v37  ;;  %v217_v39 = vld [vmem:[#allocation2 + $0x120] sm:$0xff]  ;;  %36 = vst [vmem:[#allocation2 + $0x18] sm:$0x1f] %v24_v34  ;;  %v137_v32 = vld [vmem:[%s6409_s0 + $0x58] sm:$0x1f] }
  0x52   :  { %316 = vmatpush.msra.mxu0 %v217_v39  ;;  %v218_v41 = vld [vmem:[#allocation2 + $0x150] sm:$0xff]  ;;  %183 = vst [vmem:[#allocation2 + $0x1c8] sm:$0x1f] %v171_v36  ;;  %v138_v35 = vld [vmem:[%s6409_s0 + $0x60] sm:$0x1f] }
  0x53   :  { %345 = vmatpush.msra.mxu1 %v218_v41  ;;  %v219_v44 = vld [vmem:[#allocation2 + $0x108] sm:$0xff]  ;;  %184 = vst [vmem:[#allocation2 + $0x90] sm:$0x1f] %v172_v38  ;;  %v67_v37 = vld [vmem:[%s6409_s0 + $0x58] sm:$0x1f] }
  0x54   :  { %374 = vmatpush.msra.mxu2 %v219_v44  ;;  %v220_v47 = vld [vmem:[#allocation2 + $0x60] sm:$0xff]  ;;  %147 = vst [vmem:[#allocation2 + $0x38] sm:$0x1f] %v135_v40  ;;  %v101_v41 = vld [vmem:[%s6409_s0 + $0x50] sm:$0x1f] }
  0x55   :  { %403 = vmatpush.msra.mxu3 %v220_v47  ;;  %v205_v49 = vld [vmem:[#allocation2 + $0xb0] sm:$0xff]  ;;  %148 = vst [vmem:[#allocation2 + $0x20] sm:$0x1f] %v136_v42  ;;  %v68_v39 = vld [vmem:[%s6409_s0 + $0x60] sm:$0x1f] }
  0x56   :  { %317 = vmatpush.msra.mxu0 %v205_v49  ;;  %v206_v51 = vld [vmem:[#allocation2 + $0x1b0] sm:$0xff]  ;;  %181 = vst [vmem:[#allocation2 + $0x178] sm:$0x1f] %v169_v46 }
  0x57   :  { %346 = vmatpush.msra.mxu1 %v206_v51  ;;  %v207_v53 = vld [vmem:[#allocation2 + $0xd8] sm:$0xff]  ;;  %3041 = vmatmul.msk.f32.vlgmr.msra.gmra.mxu0 %vm289_vm0, %v3457_v45  ;;  %182 = vst [vmem:[#allocation2 + $0x70] sm:$0x1f] %v170_v48  ;;  %v31_v46 = vld [vmem:[%s6409_s0 + $0x50] sm:$0x1f] }
  0x58   :  { %375 = vmatpush.msra.mxu2 %v207_v53  ;;  %v208_v55 = vld [vmem:[#allocation2 + $0x18] sm:$0xff]  ;;  %3045 = vmatmul.msk.f32.vlgmr.msra.gmra.mxu1 %vm289_vm0, %v3457_v45  ;;  %111 = vst [vmem:[#allocation2 + $0xc0] sm:$0x1f] %v99_v50  ;;  %v65_v50 = vld [vmem:[%s6409_s0 + $0x48] sm:$0x1f] }
  0x59   :  { %404 = vmatpush.msra.mxu3 %v208_v55  ;;  %3049 = vmatmul.msk.f32.vlgmr.msra.gmra.mxu2 %vm289_vm0, %v3457_v45  ;;  %v259_v57 = vld [vmem:[#allocation2 + $0x1c8] sm:$0xff]  ;;  %112 = vst [vmem:[#allocation2 + $0xa0] sm:$0x1f] %v100_v52  ;;  %v32_v48 = vld [vmem:[%s6409_s0 + $0x58] sm:$0x1f] }
  0x5a   :  { %3053 = vmatmul.msk.f32.vlgmr.msra.gmra.mxu3 %vm289_vm0, %v3457_v45  ;;  %487 = vmatpush.msrb.mxu2 %v259_v57  ;;  %v260_v59 = vld [vmem:[#allocation2 + $0x90] sm:$0xff]  ;;  %145 = vst [vmem:[#allocation2 + $0xb8] sm:$0x1f] %v133_v54  ;;  %v29_v54 = vld [vmem:[%s6409_s0 + $0x40] sm:$0x1f] }
  0x5b   :  { %516 = vmatpush.msrb.mxu3 %v260_v59  ;;  %v247_v61 = vld [vmem:[#allocation2 + $0x38] sm:$0xff]  ;;  %146 = vst [vmem:[#allocation2] sm:$0x1f] %v134_v56  ;;  %v66_v52 = vld [vmem:[%s6409_s0 + $0x50] sm:$0x1f] }
  0x5c   :  { %488 = vmatpush.msrb.mxu2 %v247_v61  ;;  %v248_v0 = vld [vmem:[#allocation2 + $0x20] sm:$0xff]  ;;  %75 = vst [vmem:[#allocation2 + $0x138] sm:$0x1f] %v63_v58  ;;  %v30_v56 = vld [vmem:[%s6409_s0 + $0x48] sm:$0x1f] }
  0x5d   :  { %517 = vmatpush.msrb.mxu3 %v248_v0  ;;  %v257_v2 = vld [vmem:[#allocation2 + $0x178] sm:$0xff]  ;;  %76 = vst [vmem:[#allocation2 + $0x140] sm:$0x1f] %v64_v60 }
  0x5e   :  { %429 = vmatpush.msrb.mxu0 %v257_v2  ;;  %v258_v4 = vld [vmem:[#allocation2 + $0x70] sm:$0xff]  ;;  %109 = vst [vmem:[#allocation2 + $0x8] sm:$0x1f] %v97_v62 }
  0x5f   :  { %3042 = vmatmul.msk.f32.gmra.mxu0 %vm289_vm0, %v3497_v63  ;;  %458 = vmatpush.msrb.mxu1 %v258_v4  ;;  %v235_v6 = vld [vmem:[#allocation2 + $0xc0] sm:$0xff]  ;;  %110 = vst [vmem:[#allocation2 + $0x170] sm:$0x1f] %v98_v1 }
  0x60   :  { %3046 = vmatmul.msk.f32.gmra.mxu1 %vm289_vm0, %v3497_v63  ;;  %489 = vmatpush.msrb.mxu2 %v235_v6  ;;  %v236_v8 = vld [vmem:[#allocation2 + $0xa0] sm:$0xff]  ;;  %39 = vst [vmem:[#allocation2 + $0x130] sm:$0x1f] %v27_v3 }
  0x61   :  { %3050 = vmatmul.msk.f32.gmra.mxu2 %vm289_vm0, %v3497_v63  ;;  %518 = vmatpush.msrb.mxu3 %v236_v8  ;;  %v245_v10 = vld [vmem:[#allocation2 + $0xb8] sm:$0xff]  ;;  %40 = vst [vmem:[#allocation2 + $0x48] sm:$0x1f] %v28_v5 }
  0x62   :  { %3054 = vmatmul.msk.f32.gmra.mxu3 %vm289_vm0, %v3497_v63  ;;  %430 = vmatpush.msrb.mxu0 %v245_v10  ;;  %v246_v12 = vld [vmem:[#allocation2] sm:$0xff]  ;;  %73 = vst [vmem:[#allocation2 + $0xe0] sm:$0x1f] %v61_v7 }
  0x63   :  { %459 = vmatpush.msrb.mxu1 %v246_v12  ;;  %v223_v14 = vld [vmem:[#allocation2 + $0x138] sm:$0xff]  ;;  %74 = vst [vmem:[#allocation2 + $0x188] sm:$0x1f] %v62_v9 }
  0x64   :  { %490 = vmatpush.msrb.mxu2 %v223_v14  ;;  %v224_v17 = vld [vmem:[#allocation2 + $0x140] sm:$0xff]  ;;  %37 = vst [vmem:[#allocation2 + $0x50] sm:$0x1f] %v25_v11 }
  0x65   :  { %519 = vmatpush.msrb.mxu3 %v224_v17  ;;  %v233_v19 = vld [vmem:[#allocation2 + $0x8] sm:$0xff]  ;;  %38 = vst [vmem:[#allocation2 + $0x168] sm:$0x1f] %v26_v13 }
  0x66   :  { %431 = vmatpush.msrb.mxu0 %v233_v19  ;;  %v234_v21 = vld [vmem:[#allocation2 + $0x170] sm:$0xff]  ;;  %187 = vst [vmem:[#allocation2 + $0x78] sm:$0x1f] %v175_v15 }
  0x67   :  { %3043 = vmatmul.msk.f32.gmra.mxu0 %vm289_vm0, %v3534_v16  ;;  %460 = vmatpush.msrb.mxu1 %v234_v21  ;;  %v211_v23 = vld [vmem:[#allocation2 + $0x130] sm:$0xff]  ;;  %188 = vst [vmem:[#allocation2 + $0x1c0] sm:$0x1f] %v176_v18 }
  0x68   :  { %3047 = vmatmul.msk.f32.gmra.mxu1 %vm289_vm0, %v3534_v16  ;;  %491 = vmatpush.msrb.mxu2 %v211_v23  ;;  %v212_v25 = vld [vmem:[#allocation2 + $0x48] sm:$0xff]  ;;  %151 = vst [vmem:[#allocation2 + $0x88] sm:$0x1f] %v139_v20 }
  0x69   :  { %3051 = vmatmul.msk.f32.gmra.mxu2 %vm289_vm0, %v3534_v16  ;;  %520 = vmatpush.msrb.mxu3 %v212_v25  ;;  %v221_v27 = vld [vmem:[#allocation2 + $0xe0] sm:$0xff]  ;;  %152 = vst [vmem:[#allocation2 + $0xd0] sm:$0x1f] %v140_v22 }
  0x6a   :  { %3055 = vmatmul.msk.f32.gmra.mxu3 %vm289_vm0, %v3534_v16  ;;  %432 = vmatpush.msrb.mxu0 %v221_v27  ;;  %v222_v29 = vld [vmem:[#allocation2 + $0x188] sm:$0xff]  ;;  %185 = vst [vmem:[#allocation2 + $0x160] sm:$0x1f] %v173_v24 }
  0x6b   :  { %461 = vmatpush.msrb.mxu1 %v222_v29  ;;  %v209_v31 = vld [vmem:[#allocation2 + $0x50] sm:$0xff]  ;;  %186 = vst [vmem:[#allocation2 + $0x30] sm:$0x1f] %v174_v26 }
  0x6c   :  { %433 = vmatpush.msrb.mxu0 %v209_v31  ;;  %v210_v34 = vld [vmem:[#allocation2 + $0x168] sm:$0xff]  ;;  %115 = vst [vmem:[#allocation2 + $0x100] sm:$0x1f] %v103_v28 }
  0x6d   :  { %462 = vmatpush.msrb.mxu1 %v210_v34  ;;  %v263_v36 = vld [vmem:[#allocation2 + $0x78] sm:$0xff]  ;;  %116 = vst [vmem:[#allocation2 + $0xf8] sm:$0x1f] %v104_v30 }
  0x6e   :  { %603 = vmatpush.msra.mxu2 %v263_v36  ;;  %v264_v38 = vld [vmem:[#allocation2 + $0x1c0] sm:$0xff]  ;;  %149 = vst [vmem:[#allocation2 + $0x10] sm:$0x1f] %v137_v32 }
  0x6f   :  { %3044 = vmatmul.msk.f32.gmra.mxu0 %vm289_vm0, %v3571_v33  ;;  %632 = vmatpush.msra.mxu3 %v264_v38  ;;  %v251_v40 = vld [vmem:[#allocation2 + $0x88] sm:$0xff]  ;;  %150 = vst [vmem:[#allocation2 + $0x58] sm:$0x1f] %v138_v35 }
  0x70   :  { %3048 = vmatmul.msk.f32.gmra.mxu1 %vm289_vm0, %v3571_v33  ;;  %604 = vmatpush.msra.mxu2 %v251_v40  ;;  %v252_v42 = vld [vmem:[#allocation2 + $0xd0] sm:$0xff]  ;;  %79 = vst [vmem:[#allocation2 + $0x1b8] sm:$0x1f] %v67_v37 }
  0x71   :  { %3052 = vmatmul.msk.f32.gmra.mxu2 %vm289_vm0, %v3571_v33  ;;  %633 = vmatpush.msra.mxu3 %v252_v42  ;;  %v261_v44 = vld [vmem:[#allocation2 + $0x160] sm:$0xff]  ;;  %80 = vst [vmem:[#allocation2 + $0x28] sm:$0x1f] %v68_v39 }
  0x72   :  { %3056 = vmatmul.msk.f32.gmra.mxu3 %vm289_vm0, %v3571_v33  ;;  %545 = vmatpush.msra.mxu0 %v261_v44  ;;  %v262_v47 = vld [vmem:[#allocation2 + $0x30] sm:$0xff]  ;;  %113 = vst [vmem:[#allocation2 + $0x148] sm:$0x1f] %v101_v41 }
  0x73   :  { %574 = vmatpush.msra.mxu1 %v262_v47  ;;  %v239_v49 = vld [vmem:[#allocation2 + $0x100] sm:$0xff]  ;;  %114 = vst [vmem:[#allocation2 + $0x1d0] sm:$0x1f] %v102_v43 }
  0x74   :  { %605 = vmatpush.msra.mxu2 %v239_v49  ;;  %v240_v51 = vld [vmem:[#allocation2 + $0xf8] sm:$0xff]  ;;  %43 = vst [vmem:[#allocation2 + $0x118] sm:$0x1f] %v31_v46 }
  0x75   :  { %634 = vmatpush.msra.mxu3 %v240_v51  ;;  %v249_v53 = vld [vmem:[#allocation2 + $0x10] sm:$0xff]  ;;  %44 = vst [vmem:[#allocation2 + $0x98] sm:$0x1f] %v32_v48 }
  0x76   :  { %546 = vmatpush.msra.mxu0 %v249_v53  ;;  %v250_v55 = vld [vmem:[#allocation2 + $0x58] sm:$0xff]  ;;  %77 = vst [vmem:[#allocation2 + $0x80] sm:$0x1f] %v65_v50 }
  0x77   :  { %3057 = vmatmul.msk.f32.vlgmr.msrb.gmra.mxu0 %vm289_vm0, %v3457_v45  ;;  %575 = vmatpush.msra.mxu1 %v250_v55  ;;  %v227_v57 = vld [vmem:[#allocation2 + $0x1b8] sm:$0xff]  ;;  %78 = vst [vmem:[#allocation2 + $0x1a8] sm:$0x1f] %v66_v52 }
  0x78   :  { %3061 = vmatmul.msk.f32.vlgmr.msrb.gmra.mxu1 %vm289_vm0, %v3457_v45  ;;  %606 = vmatpush.msra.mxu2 %v227_v57  ;;  %v228_v58 = vld [vmem:[#allocation2 + $0x28] sm:$0xff]  ;;  %41 = vst [vmem:[#allocation2 + $0x180] sm:$0x1f] %v29_v54 }
  0x79   :  { %3065 = vmatmul.msk.f32.vlgmr.msrb.gmra.mxu2 %vm289_vm0, %v3457_v45  ;;  %635 = vmatpush.msra.mxu3 %v228_v58  ;;  %v237_v59 = vld [vmem:[#allocation2 + $0x148] sm:$0xff]  ;;  %42 = vst [vmem:[#allocation2 + $0x110] sm:$0x1f] %v30_v56 }
  0x7a   :  { %3069 = vmatmul.msk.f32.vlgmr.msrb.gmra.mxu3 %vm289_vm0, %v3457_v45  ;;  %547 = vmatpush.msra.mxu0 %v237_v59  ;;  %v238_v60 = vld [vmem:[#allocation2 + $0x1d0] sm:$0xff] }
  0x7b   :  { %576 = vmatpush.msra.mxu1 %v238_v60  ;;  %v215_v61 = vld [vmem:[#allocation2 + $0x118] sm:$0xff] }
  0x7c   :  { %607 = vmatpush.msra.mxu2 %v215_v61  ;;  %v216_v62 = vld [vmem:[#allocation2 + $0x98] sm:$0xff] }
  0x7d   :  { %636 = vmatpush.msra.mxu3 %v216_v62  ;;  %v225_v0 = vld [vmem:[#allocation2 + $0x80] sm:$0xff] }
  0x7e   :  { %548 = vmatpush.msra.mxu0 %v225_v0  ;;  %v226_v1 = vld [vmem:[#allocation2 + $0x1a8] sm:$0xff] }
  0x7f   :  { %3058 = vmatmul.msk.f32.gmra.mxu0 %vm289_vm0, %v3497_v63  ;;  %577 = vmatpush.msra.mxu1 %v226_v1  ;;  %v213_v2 = vld [vmem:[#allocation2 + $0x180] sm:$0xff] }
  0x80   :  { %3062 = vmatmul.msk.f32.gmra.mxu1 %vm289_vm0, %v3497_v63  ;;  %549 = vmatpush.msra.mxu0 %v213_v2  ;;  %v214_v3 = vld [vmem:[#allocation2 + $0x110] sm:$0xff] }
  0x81   :  { %3066 = vmatmul.msk.f32.gmra.mxu2 %vm289_vm0, %v3497_v63  ;;  %578 = vmatpush.msra.mxu1 %v214_v3 }
  0x82   :  { %3070 = vmatmul.msk.f32.gmra.mxu3 %vm289_vm0, %v3497_v63 }
  0x87   :  { %3059 = vmatmul.msk.f32.gmra.mxu0 %vm289_vm0, %v3534_v16 }
  0x88   :  { %3063 = vmatmul.msk.f32.gmra.mxu1 %vm289_vm0, %v3534_v16 }
  0x89   :  { %3067 = vmatmul.msk.f32.gmra.mxu2 %vm289_vm0, %v3534_v16 }
  0x8a   :  { %3071 = vmatmul.msk.f32.gmra.mxu3 %vm289_vm0, %v3534_v16 }
  0x8f   :  { %3060 = vmatmul.msk.f32.gmra.mxu0 %vm289_vm0, %v3571_v33 }
  0x90   :  { %3064 = vmatmul.msk.f32.gmra.mxu1 %vm289_vm0, %v3571_v33 }
  0x91   :  { %3068 = vmatmul.msk.f32.gmra.mxu2 %vm289_vm0, %v3571_v33 }
  0x92   :  { %3072 = vmatmul.msk.f32.gmra.mxu3 %vm289_vm0, %v3571_v33 }
  0x97   :  { %3073 = vmatmul.msk.f32.vlgmr.msra.gmra.mxu0 %vm289_vm0, %v3457_v45 }
  0x98   :  { %3077 = vmatmul.msk.f32.vlgmr.msra.gmra.mxu1 %vm289_vm0, %v3457_v45 }
  0x99   :  { %3081 = vmatmul.msk.f32.vlgmr.msra.gmra.mxu2 %vm289_vm0, %v3457_v45 }
  0x9a   :  { %3085 = vmatmul.msk.f32.vlgmr.msra.gmra.mxu3 %vm289_vm0, %v3457_v45  ;;  %v3678_v45 = vpop.permute.xlu1 %276 }
  0x9f   :  { %3074 = vmatmul.msk.f32.gmra.mxu0 %vm289_vm0, %v3497_v63 }
  0xa0   :  { %3078 = vmatmul.msk.f32.gmra.mxu1 %vm289_vm0, %v3497_v63 }
  0xa1   :  { %3082 = vmatmul.msk.f32.gmra.mxu2 %vm289_vm0, %v3497_v63 }
  0xa2   :  { %3086 = vmatmul.msk.f32.gmra.mxu3 %vm289_vm0, %v3497_v63  ;;  %v3680_v63 = vpop.permute.xlu1 %271 }
  0xa7   :  { %3075 = vmatmul.msk.f32.gmra.mxu0 %vm289_vm0, %v3534_v16 }
  0xa8   :  { %3079 = vmatmul.msk.f32.gmra.mxu1 %vm289_vm0, %v3534_v16 }
  0xa9   :  { %3083 = vmatmul.msk.f32.gmra.mxu2 %vm289_vm0, %v3534_v16 }
  0xaa   :  { %3087 = vmatmul.msk.f32.gmra.mxu3 %vm289_vm0, %v3534_v16 }
  0xaf   :  { %3076 = vmatmul.msk.f32.gmra.mxu0 %vm289_vm0, %v3571_v33 }
  0xb0   :  { %3080 = vmatmul.msk.f32.gmra.mxu1 %vm289_vm0, %v3571_v33 }
  0xb1   :  { %3084 = vmatmul.msk.f32.gmra.mxu2 %vm289_vm0, %v3571_v33 }
  0xb2   :  { %3088 = vmatmul.msk.f32.gmra.mxu3 %vm289_vm0, %v3571_v33 }
  0xd4   :  { %v319_v4 = vpop.f32.mrf.mxu0 }
  0xd5   :  { %v3683_v5 = vadd.f32 %v319_v4, %v3680_v63  ;;  %v348_v6 = vpop.f32.mrf.mxu1 }
  0xd6   :  { %v3686_v7 = vadd.f32 %v348_v6, %v3680_v63 }
  0xd7   :  { %v3689_v8 = vmul.f32 0.70710677, %v3683_v5 }
  0xd8   :  { %v3692_v9 = vmul.f32 0.70710677, %v3686_v7 }
  0xd9   :  { %v746_v10 = vmul.f32 %v3689_v8, %v3689_v8 }
  0xda   :  { %v786_v11 = vmul.f32 %v3692_v9, %v3692_v9 }
  0xdb   :  { %v3698_v12 = vmin.f32 %v746_v10, 16.0 }
  0xdc   :  { %v377_v13 = vpop.f32.mrf.mxu2  ;;  %v3700_v14 = vmin.f32 %v786_v11, 16.0  ;;  %v322_v25 = vpop.f32.mrf.mxu0 }
  0xdd   :  { %v3703_v15 = vadd.f32 %v377_v13, %v3680_v63  ;;  %v406_v16 = vpop.f32.mrf.mxu3  ;;  %v759_v17 = vmul.f32 3.8918573e-05, %v3698_v12  ;;  %v748_v26 = vmul.f32 2.1237322e-06, %v3698_v12  ;;  %v3726_v31 = vadd.f32 %v322_v25, %v3678_v45  ;;  %v351_v52 = vpop.f32.mrf.mxu1 }
  0xde   :  { %v3710_v19 = vadd.f32 %v406_v16, %v3680_v63  ;;  %v799_v20 = vmul.f32 3.8918573e-05, %v3700_v14  ;;  %v788_v28 = vmul.f32 2.1237322e-06, %v3700_v14  ;;  %v3749_v59 = vadd.f32 %v351_v52, %v3678_v45 }
  0xdf   :  { %v3707_v18 = vmul.f32 0.70710677, %v3703_v15  ;;  %v760_v21 = vadd.f32 0.001143296, %v759_v17  ;;  %v749_v33 = vadd.f32 0.00028619796, %v748_v26 }
  0xe0   :  { %v3716_v23 = vmul.f32 0.70710677, %v3710_v19  ;;  %v800_v24 = vadd.f32 0.001143296, %v799_v20  ;;  %v789_v35 = vadd.f32 0.00028619796, %v788_v28 }
  0xe1   :  { %v826_v22 = vmul.f32 %v3707_v18, %v3707_v18  ;;  %v761_v27 = vmul.f32 %v760_v21, %v3698_v12  ;;  %v3733_v38 = vmul.f32 0.70710677, %v3726_v31  ;;  %v750_v40 = vmul.f32 %v749_v33, %v3698_v12 }
  0xe2   :  { %v866_v30 = vmul.f32 %v3716_v23, %v3716_v23  ;;  %v801_v32 = vmul.f32 %v800_v24, %v3700_v14  ;;  %v790_v42 = vmul.f32 %v789_v35, %v3700_v14  ;;  %v3757_v10 = vmul.f32 0.70710677, %v3749_v59 }
  0xe3   :  { %v3721_v29 = vmin.f32 %v826_v22, 16.0  ;;  %v762_v34 = vadd.f32 0.014752088, %v761_v27  ;;  %v1226_v46 = vmul.f32 %v3733_v38, %v3733_v38  ;;  %v751_v48 = vadd.f32 0.0036580483, %v750_v40 }
  0xe4   :  { %v3730_v37 = vmin.f32 %v866_v30, 16.0  ;;  %v802_v39 = vadd.f32 0.014752088, %v801_v32  ;;  %v791_v50 = vadd.f32 0.0036580483, %v790_v42  ;;  %v1266_v27 = vmul.f32 %v3757_v10, %v3757_v10 }
  0xe5   :  { %v839_v36 = vmul.f32 3.8918573e-05, %v3721_v29  ;;  %v763_v41 = vmul.f32 %v762_v34, %v3698_v12  ;;  %v828_v53 = vmul.f32 2.1237322e-06, %v3721_v29  ;;  %v3744_v55 = vmin.f32 %v1226_v46, 16.0  ;;  %v380_v34 = vpop.f32.mrf.mxu2  ;;  %v409_v35 = vpop.f32.mrf.mxu3 }
  0xe6   :  { %v879_v44 = vmul.f32 3.8918573e-05, %v3730_v37  ;;  %v803_v47 = vmul.f32 %v802_v39, %v3700_v14  ;;  %v752_v57 = vmul.f32 %v751_v48, %v3698_v12  ;;  %v792_v60 = vmul.f32 %v791_v50, %v3700_v14 }
  0xe7   :  { %v840_v43 = vadd.f32 0.001143296, %v839_v36  ;;  %v764_v49 = vadd.f32 0.112945676, %v763_v41  ;;  %v1239_v62 = vmul.f32 3.8918573e-05, %v3744_v55  ;;  %v3779_v48 = vadd.f32 %v409_v35, %v3678_v45 }
  0xe8   :  { %v880_v54 = vadd.f32 0.001143296, %v879_v44  ;;  %v804_v56 = vadd.f32 0.112945676, %v803_v47  ;;  %v829_v0 = vadd.f32 0.00028619796, %v828_v53  ;;  %v3776_v47 = vadd.f32 %v380_v34, %v3678_v45 }
  0xe9   :  { %v841_v51 = vmul.f32 %v840_v43, %v3721_v29  ;;  %v765_v58 = vmul.f32 %v764_v49, %v3698_v12  ;;  %v868_v3 = vmul.f32 2.1237322e-06, %v3730_v37  ;;  %v753_v4 = vadd.f32 0.05243302, %v752_v57 }
  0xea   :  { %v881_v1 = vmul.f32 %v880_v54, %v3730_v37  ;;  %v805_v2 = vmul.f32 %v804_v56, %v3700_v14  ;;  %v793_v11 = vadd.f32 0.05243302, %v792_v60  ;;  %v1240_v16 = vadd.f32 0.001143296, %v1239_v62 }
  0xeb   :  { %v842_v61 = vadd.f32 0.014752088, %v841_v51  ;;  %v766_v6 = vadd.f32 0.4994258, %v765_v58  ;;  %v830_v17 = vmul.f32 %v829_v0, %v3721_v29  ;;  %v869_v22 = vadd.f32 0.00028619796, %v868_v3 }
  0xec   :  { %v882_v20 = vadd.f32 0.014752088, %v881_v1  ;;  %v806_v21 = vadd.f32 0.4994258, %v805_v2  ;;  %v1241_v24 = vmul.f32 %v1240_v16, %v3744_v55  ;;  %v754_v25 = vmul.f32 %v753_v4, %v3698_v12 }
  0xed   :  { %v843_v13 = vmul.f32 %v842_v61, %v3721_v29  ;;  %v767_v26 = vmul.f32 %v766_v6, %v3698_v12  ;;  %v794_v28 = vmul.f32 %v793_v11, %v3700_v14  ;;  %v831_v32 = vadd.f32 0.0036580483, %v830_v17 }
  0xee   :  { %v883_v33 = vmul.f32 %v882_v20, %v3730_v37  ;;  %v807_v36 = vmul.f32 %v806_v21, %v3700_v14  ;;  %v870_v39 = vmul.f32 %v869_v22, %v3730_v37  ;;  %v1242_v40 = vadd.f32 0.014752088, %v1241_v24 }
  0xef   :  { %v844_v30 = vadd.f32 0.112945676, %v843_v13  ;;  %v755_v41 = vadd.f32 0.18741608, %v754_v25  ;;  %v3770_v42 = vadd.f32 1.0, %v767_v26  ;;  %v3772_v43 = vmin.f32 %v1266_v27, 16.0 }
  0xf0   :  { %v795_v44 = vadd.f32 0.18741608, %v794_v28  ;;  %v832_v49 = vmul.f32 %v831_v32, %v3721_v29  ;;  %v884_v50 = vadd.f32 0.112945676, %v883_v33  ;;  %v3782_v51 = vadd.f32 1.0, %v807_v36 }
  0xf1   :  { %v845_v46 = vmul.f32 %v844_v30, %v3721_v29  ;;  %v871_v52 = vadd.f32 0.0036580483, %v870_v39  ;;  %v1243_v53 = vmul.f32 %v1242_v40, %v3744_v55  ;;  %v3786_v54 = vmul.f32 0.5, %v3683_v5  ;;  %v3799_v5 = vpop.permute.xlu0 %286 }
  0xf2   :  { %v756_v56 = vmul.f32 %v755_v41, %v3698_v12  ;;  %3155 = vrcp.f32 %v3770_v42  ;;  %v1279_v57 = vmul.f32 3.8918573e-05, %v3772_v43  ;;  %v796_v58 = vmul.f32 %v795_v44, %v3700_v14 }
  0xf3   :  { %6427 = vst [vmem:[#allocation6_spill] sm:$0xff] %v3786_v54  ;;  %v846_v60 = vadd.f32 0.4994258, %v845_v46  ;;  %v3793_v61 = vmul.f32 0.70710677, %v3776_v47  ;;  %v885_v1 = vmul.f32 %v884_v50, %v3730_v37  ;;  %3157 = vrcp.f32 %v3782_v51 }
  0xf4   :  { %v3796_v62 = vmul.f32 0.70710677, %v3779_v48  ;;  %v833_v0 = vadd.f32 0.05243302, %v832_v49  ;;  %v1228_v12 = vmul.f32 2.1237322e-06, %v3744_v55  ;;  %v872_v3 = vmul.f32 %v871_v52, %v3730_v37 }
  0xf5   :  { %v1280_v2 = vadd.f32 0.001143296, %v1279_v57  ;;  %v1244_v14 = vadd.f32 0.112945676, %v1243_v53  ;;  %v1306_v4 = vmul.f32 %v3793_v61, %v3793_v61  ;;  %v757_v6 = vadd.f32 1.1283791, %v756_v56 }
  0xf6   :  { %v3807_v11 = vmul.f32 0.5, %v3686_v7  ;;  %v3810_v13 = vmul.f32 0.5, %v3703_v15  ;;  %v3813_v16 = vmul.f32 0.5, %v3726_v31  ;;  %v797_v17 = vadd.f32 1.1283791, %v796_v58 }
  0xf7   :  { %v847_v20 = vmul.f32 %v846_v60, %v3721_v29  ;;  %v3817_v21 = vmul.f32 0.5, %v3710_v19  ;;  %v1346_v22 = vmul.f32 %v3796_v62, %v3796_v62  ;;  %v834_v7 = vmul.f32 %v833_v0, %v3721_v29  ;;  %v325_v0 = vpop.f32.mrf.mxu0 }
  0xf8   :  { %6428 = vst [vmem:[#allocation7_spill] sm:$0xff] %v3807_v11  ;;  %v3821_v24 = vpop.eup %3155  ;;  %v886_v25 = vadd.f32 0.4994258, %v885_v1  ;;  %v1229_v26 = vadd.f32 0.00028619796, %v1228_v12  ;;  %v1281_v15 = vmul.f32 %v1280_v2, %v3772_v43  ;;  %v1245_v31 = vmul.f32 %v1244_v14, %v3744_v55 }
  0xf9   :  { %6429 = vst [vmem:[#allocation8_spill] sm:$0xff] %v3810_v13  ;;  %v873_v27 = vadd.f32 0.05243302, %v872_v3  ;;  %v3827_v28 = vmul.f32 0.5, %v3749_v59  ;;  %v3829_v30 = vmin.f32 %v1306_v4, 16.0  ;;  %v3832_v19 = vmul.f32 %v757_v6, %v3689_v8  ;;  %v3837_v35 = vpop.eup %3157  ;;  %v3860_v60 = vpop.permute.xlu0 %281 }
  0xfa   :  { %6430 = vst [vmem:[#allocation9_spill] sm:$0xff] %v3817_v21  ;;  %v778_v32 = vand.u32 2147483647, %v3770_v42  ;;  %v780_v33 = vand.u32 2147483648, %v3770_v42  ;;  %v820_v34 = vand.u32 2147483648, %v3782_v51  ;;  %v770_v36 = vmul.f32 %v3821_v24, %v3770_v42 }
  0xfb   :  { %6431 = vst [vmem:[#allocation10_spill] sm:$0xff] %v3827_v28  ;;  %v3842_v39 = vmul.f32 %v797_v17, %v3692_v9  ;;  %v3844_v59 = vadd.f32 1.0, %v847_v20  ;;  %v3846_v40 = vmin.f32 %v1346_v22, 16.0  ;;  %v835_v8 = vadd.f32 0.18741608, %v834_v7 }
  0xfc   :  { %v887_v41 = vmul.f32 %v886_v25, %v3730_v37  ;;  %v1230_v44 = vmul.f32 %v1229_v26, %v3744_v55  ;;  %v1282_v46 = vadd.f32 0.014752088, %v1281_v15  ;;  %v818_v49 = vand.u32 2147483647, %v3782_v51 }
  0xfd   :  { %v874_v50 = vmul.f32 %v873_v27, %v3730_v37  ;;  %v1246_v52 = vadd.f32 0.4994258, %v1245_v31  ;;  %v1319_v53 = vmul.f32 3.8918573e-05, %v3829_v30  ;;  %v3853_v56 = vor.u32 1.1754944e-38, %v780_v33 }
  0xfe   :  { %v810_v9 = vmul.f32 %v3837_v35, %v3782_v51  ;;  %v3857_v57 = vor.u32 1.1754944e-38, %v820_v34  ;;  %v1268_v58 = vmul.f32 2.1237322e-06, %v3772_v43  ;;  %v771_v1 = vsub.f32 1.0, %v770_v36 }
  0xff   :  { %3159 = vrcp.f32 %v3844_v59  ;;  %v1320_v12 = vadd.f32 0.001143296, %v1319_v53  ;;  %v1359_v2 = vmul.f32 3.8918573e-05, %v3846_v40  ;;  %v836_v3 = vmul.f32 %v835_v8, %v3721_v29 }
 0x100   :  { %v3865_v14 = vadd.f32 1.0, %v887_v41  ;;  %v1231_v4 = vadd.f32 0.0036580483, %v1230_v44  ;;  %v1283_v6 = vmul.f32 %v1282_v46, %v3772_v43  ;;  %vm774_vm1 = vweird.f32 %v3770_v42 }
 0x101   :  { %v875_v17 = vadd.f32 0.18741608, %v874_v50  ;;  %v1247_v20 = vmul.f32 %v1246_v52, %v3744_v55  ;;  %v1321_v22 = vmul.f32 %v1320_v12, %v3829_v30  ;;  %v3872_v7 = vadd.f32 %v325_v0, %v3860_v60 }
 0x102   :  { %v811_v25 = vsub.f32 1.0, %v810_v9  ;;  %v1269_v26 = vadd.f32 0.00028619796, %v1268_v58  ;;  %v3875_v15 = vmul.f32 0.5, %v3776_v47  ;;  %v1360_v29 = vadd.f32 0.001143296, %v1359_v2 }
 0x103   :  { %v772_v27 = vmul.f32 %v3821_v24, %v771_v1  ;;  %vm775_vm2 = vweird.f32 %v3821_v24  ;;  %v1308_v31 = vmul.f32 2.1237322e-06, %v3829_v30  ;;  %v1322_v33 = vadd.f32 0.014752088, %v1321_v22 }
 0x104   :  { %6432 = vst [vmem:[#allocation11_spill] sm:$0xff] %v3875_v15  ;;  %3161 = vrcp.f32 %v3865_v14  ;;  %v1232_v34 = vmul.f32 %v1231_v4, %v3744_v55  ;;  %v1284_v36 = vadd.f32 0.112945676, %v1283_v6  ;;  %v1361_v8 = vmul.f32 %v1360_v29, %v3846_v40  ;;  %vm3922_vm7 = vmor %vm774_vm1, %vm775_vm2 }
 0x105   :  { %v3883_v41 = vpop.eup %3159  ;;  %vm3885_vm3 = vcmp.eq.f32.partialorder %v778_v32, 8.507059e+37  ;;  %vm814_vm4 = vweird.f32 %v3782_v51  ;;  %v837_v44 = vadd.f32 1.1283791, %v836_v3  ;;  %v3890_v46 = vadd.f32 1.0, %v1247_v20 }
 0x106   :  { %v1323_v50 = vmul.f32 %v1322_v33, %v3829_v30  ;;  %v3894_v52 = vmul.f32 0.70710677, %v3872_v7  ;;  %v812_v53 = vmul.f32 %v3837_v35, %v811_v25  ;;  %v876_v9 = vmul.f32 %v875_v17, %v3730_v37  ;;  %v354_v25 = vpop.f32.mrf.mxu1 }
 0x107   :  { %v1270_v58 = vmul.f32 %v1269_v26, %v3772_v43  ;;  %v1362_v32 = vadd.f32 0.014752088, %v1361_v8  ;;  %v773_v0 = vadd.f32 %v3821_v24, %v772_v27  ;;  %v1309_v1 = vadd.f32 0.00028619796, %v1308_v31 }
 0x108   :  { %v1324_v12 = vadd.f32 0.112945676, %v1323_v50  ;;  %v1348_v2 = vmul.f32 2.1237322e-06, %v3846_v40  ;;  %vm815_vm5 = vweird.f32 %v3837_v35  ;;  %v850_v3 = vmul.f32 %v3883_v41, %v3844_v59 }
 0x109   :  { %v1233_v4 = vadd.f32 0.05243302, %v1232_v34  ;;  %v1285_v6 = vmul.f32 %v1284_v36, %v3772_v43  ;;  %vm3905_vm6 = vcmp.eq.f32.partialorder %v818_v49, 8.507059e+37  ;;  %v3910_v37 = vmul.f32 %v837_v44, %v3707_v18  ;;  %vm3948_vm8 = vmor %vm814_vm4, %vm815_vm5 }
 0x10a   :  { %3163 = vrcp.f32 %v3890_v46  ;;  %v1325_v17 = vmul.f32 %v1324_v12, %v3829_v30  ;;  %v1706_v22 = vmul.f32 %v3894_v52, %v3894_v52  ;;  %v3916_v26 = vpop.eup %3161  ;;  %v813_v18 = vadd.f32 %v3837_v35, %v812_v53 }
 0x10b   :  { %v877_v29 = vadd.f32 1.1283791, %v876_v9  ;;  %v1271_v27 = vadd.f32 0.0036580483, %v1270_v58  ;;  %v1363_v31 = vmul.f32 %v1362_v32, %v3846_v40  ;;  %v777_v33 = vsel %vm3922_vm7, %v3821_v24, %v773_v0 }
 0x10c   :  { %v860_v34 = vand.u32 2147483648, %v3844_v59  ;;  %v1310_v36 = vmul.f32 %v1309_v1, %v3829_v30  ;;  %v1349_v8 = vadd.f32 0.00028619796, %v1348_v2  ;;  %v851_v42 = vsub.f32 1.0, %v850_v3 }
 0x10d   :  { %v1234_v44 = vmul.f32 %v1233_v4, %v3744_v55  ;;  %v1286_v50 = vadd.f32 0.4994258, %v1285_v6  ;;  %v3935_v12 = vadd.f32 %v354_v25, %v3860_v60  ;;  %v890_v53 = vmul.f32 %v3916_v26, %v3865_v14 }
 0x10e   :  { %v1326_v9 = vadd.f32 0.4994258, %v1325_v17  ;;  %v1364_v58 = vadd.f32 0.112945676, %v1363_v31  ;;  %v3939_v32 = vmin.f32 %v1706_v22, 16.0  ;;  %v782_v24 = vsel %vm3885_vm3, %v3853_v56, %v777_v33 }
 0x10f   :  { %vm854_vm9 = vweird.f32 %v3844_v59  ;;  %v858_v1 = vand.u32 2147483647, %v3844_v59  ;;  %v3955_v2 = vmul.f32 %v877_v29, %v3716_v23  ;;  %v1272_v3 = vmul.f32 %v1271_v27, %v3772_v43 }
 0x110   :  { %v3958_v4 = vpop.eup %3163  ;;  %v817_v56 = vsel %vm3948_vm8, %v3837_v35, %v813_v18  ;;  %v861_v51 = vor.u32 1.1754944e-38, %v860_v34  ;;  %v1311_v47 = vadd.f32 0.0036580483, %v1310_v36  ;;  %v1350_v6 = vmul.f32 %v1349_v8, %v3846_v40 }
 0x111   :  { %v852_v17 = vmul.f32 %v3883_v41, %v851_v42  ;;  %v1235_v22 = vadd.f32 0.18741608, %v1234_v44  ;;  %v1287_v25 = vmul.f32 %v1286_v50, %v3772_v43  ;;  %v3967_v23 = vmul.f32 0.70710677, %v3935_v12 }
 0x112   :  { %v891_v49 = vsub.f32 1.0, %v890_v53  ;;  %v1327_v29 = vmul.f32 %v1326_v9, %v3829_v30  ;;  %v1365_v27 = vmul.f32 %v1364_v58, %v3846_v40  ;;  %v1708_v31 = vmul.f32 2.1237322e-06, %v3939_v32 }
 0x113   :  { %v3973_v35 = vmul.f32 %v782_v24, %v3832_v19  ;;  %v822_v18 = vsel %vm3905_vm6, %v3857_v57, %v817_v56  ;;  %vm3978_vm10 = vcmp.eq.f32.partialorder %v858_v1, 8.507059e+37  ;;  %v1250_v34 = vmul.f32 %v3958_v4, %v3890_v46 }
 0x114   :  { %v1273_v36 = vadd.f32 0.05243302, %v1272_v3  ;;  %vm855_vm11 = vweird.f32 %v3883_v41  ;;  %v1312_v8 = vmul.f32 %v1311_v47, %v3829_v30  ;;  %v1351_v42 = vadd.f32 0.0036580483, %v1350_v6 }
 0x115   :  { %6441 = vst [vmem:[#allocation12_spill] sm:$0xff] %v3973_v35  ;;  %v1719_v19 = vmul.f32 3.8918573e-05, %v3939_v32  ;;  %v853_v44 = vadd.f32 %v3883_v41, %v852_v17  ;;  %v1236_v20 = vmul.f32 %v1235_v22, %v3744_v55  ;;  %v3989_v57 = vadd.f32 1.0, %v1287_v25  ;;  %vm4003_vm12 = vmor %vm854_vm9, %vm855_vm11  ;;  %v383_v55 = vpop.f32.mrf.mxu2 }
 0x116   :  { %v1746_v50 = vmul.f32 %v3967_v23, %v3967_v23  ;;  %v892_v53 = vmul.f32 %v3916_v26, %v891_v49  ;;  %v3994_v9 = vadd.f32 1.0, %v1327_v29  ;;  %v1366_v58 = vadd.f32 0.4994258, %v1365_v27 }
 0x117   :  { %v1709_v24 = vadd.f32 0.00028619796, %v1708_v31  ;;  %v898_v0 = vand.u32 2147483647, %v3865_v14  ;;  %v900_v1 = vand.u32 2147483648, %v3865_v14  ;;  %v1251_v3 = vsub.f32 1.0, %v1250_v34 }
 0x118   :  { %v1274_v56 = vmul.f32 %v1273_v36, %v3772_v43  ;;  %vm895_vm13 = vweird.f32 %v3916_v26  ;;  %v1313_v47 = vadd.f32 0.05243302, %v1312_v8  ;;  %v1352_v6 = vmul.f32 %v1351_v42, %v3846_v40 }
 0x119   :  { %v1720_v17 = vadd.f32 0.001143296, %v1719_v19  ;;  %v857_v22 = vsel %vm4003_vm12, %v3883_v41, %v853_v44  ;;  %v1237_v25 = vadd.f32 1.1283791, %v1236_v20  ;;  %3165 = vrcp.f32 %v3989_v57 }
 0x11a   :  { %v4013_v49 = vmin.f32 %v1746_v50, 16.0  ;;  %v893_v59 = vadd.f32 %v3916_v26, %v892_v53  ;;  %3167 = vrcp.f32 %v3994_v9  ;;  %v1367_v29 = vmul.f32 %v1366_v58, %v3846_v40 }
 0x11b   :  { %v1710_v27 = vmul.f32 %v1709_v24, %v3939_v32  ;;  %v4020_v31 = vmul.f32 %v822_v18, %v3842_v39  ;;  %vm894_vm14 = vweird.f32 %v3865_v14  ;;  %v1252_v41 = vmul.f32 %v3958_v4, %v1251_v3 }
 0x11c   :  { %v1275_v34 = vadd.f32 0.18741608, %v1274_v56  ;;  %v862_v36 = vsel %vm3978_vm10, %v861_v51, %v857_v22  ;;  %v1314_v8 = vmul.f32 %v1313_v47, %v3829_v30  ;;  %v1353_v42 = vadd.f32 0.05243302, %v1352_v6  ;;  %vm4030_vm15 = vmor %vm894_vm14, %vm895_vm13 }
 0x11d   :  { %6446 = vst [vmem:[#allocation13_spill] sm:$0xff] %v4020_v31  ;;  %v1721_v19 = vmul.f32 %v1720_v17, %v3939_v32  ;;  %vm4034_vm0 = vcmp.eq.f32.partialorder %v898_v0, 8.507059e+37  ;;  %v901_v14 = vor.u32 1.1754944e-38, %v900_v1  ;;  %v4039_v18 = vmul.f32 0.5, %v3779_v48 }
 0x11e   :  { %v1748_v51 = vmul.f32 2.1237322e-06, %v4013_v49  ;;  %v897_v33 = vsel %vm4030_vm15, %v3916_v26, %v893_v59  ;;  %v1238_v20 = vmul.f32 %v1237_v25, %v3733_v38  ;;  %v4046_v50 = vadd.f32 1.0, %v1367_v29 }
 0x11f   :  { %6451 = vst [vmem:[#allocation14_spill] sm:$0xff] %v4039_v18  ;;  %v1711_v53 = vadd.f32 0.0036580483, %v1710_v27  ;;  %v4048_v58 = vpop.eup %3165  ;;  %v4051_v24 = vmul.f32 %v862_v36, %v3910_v37  ;;  %v1253_v0 = vadd.f32 %v3958_v4, %v1252_v41  ;;  %vm1255_vm1 = vweird.f32 %v3958_v4 }
 0x120   :  { %v1276_v48 = vmul.f32 %v1275_v34, %v3772_v43  ;;  %v4056_v1 = vpop.eup %3167  ;;  %v1260_v26 = vand.u32 2147483648, %v3890_v46  ;;  %v1315_v3 = vadd.f32 0.18741608, %v1314_v8  ;;  %v1354_v38 = vmul.f32 %v1353_v42, %v3846_v40 }
 0x121   :  { %6452 = vst [vmem:[#allocation15_spill] sm:$0xff] %v4051_v24  ;;  %v1722_v56 = vadd.f32 0.014752088, %v1721_v19  ;;  %v902_v47 = vsel %vm4034_vm0, %v901_v14, %v897_v33  ;;  %vm1254_vm2 = vweird.f32 %v3890_v46  ;;  %v1258_v37 = vand.u32 2147483647, %v3890_v46  ;;  %v412_v33 = vpop.f32.mrf.mxu3 }
 0x122   :  { %v1749_v6 = vadd.f32 0.00028619796, %v1748_v51  ;;  %vm4064_vm3 = vmor %vm1254_vm2, %vm1255_vm1  ;;  %v1290_v43 = vmul.f32 %v4048_v58, %v3989_v57  ;;  %3169 = vrcp.f32 %v4046_v50  ;;  %v1712_v22 = vmul.f32 %v1711_v53, %v3939_v32 }
 0x123   :  { %v1759_v25 = vmul.f32 3.8918573e-05, %v4013_v49  ;;  %v1257_v59 = vsel %vm4064_vm3, %v3958_v4, %v1253_v0  ;;  %v1277_v29 = vadd.f32 1.1283791, %v1276_v48  ;;  %v1330_v46 = vmul.f32 %v4056_v1, %v3994_v9 }
 0x124   :  { %v4079_v27 = vadd.f32 %v383_v55, %v3860_v60  ;;  %v1261_v41 = vor.u32 1.1754944e-38, %v1260_v26  ;;  %v1316_v34 = vmul.f32 %v1315_v3, %v3829_v30  ;;  %v1355_v36 = vadd.f32 0.18741608, %v1354_v38 }
 0x125   :  { %v1723_v8 = vmul.f32 %v1722_v56, %v3939_v32  ;;  %v4084_v42 = vmul.f32 %v902_v47, %v3955_v2  ;;  %vm1259_vm4 = vcmp.eq.f32.partialorder %v1258_v37, 8.507059e+37  ;;  %v1300_v19 = vand.u32 2147483648, %v3989_v57 }
 0x126   :  { %v1750_v4 = vmul.f32 %v1749_v6, %v4013_v49  ;;  %v1262_v44 = vsel %vm1259_vm4, %v1261_v41, %v1257_v59  ;;  %v1291_v39 = vsub.f32 1.0, %v1290_v43  ;;  %v1713_v14 = vadd.f32 0.05243302, %v1712_v22  ;;  %v328_v22 = vpop.f32.mrf.mxu0 }
 0x127   :  { %6455 = vst [vmem:[#allocation16_spill] sm:$0xff] %v4084_v42  ;;  %v1760_v51 = vadd.f32 0.001143296, %v1759_v25  ;;  %v4089_v53 = vmul.f32 %v1277_v29, %v3757_v10  ;;  %v1331_v30 = vsub.f32 1.0, %v1330_v46  ;;  %v4092_v0 = vmul.f32 0.5, %v3872_v7 }
 0x128   :  { %v4095_v2 = vmul.f32 0.70710677, %v4079_v27  ;;  %v4097_v48 = vpop.eup %3169  ;;  %vm1294_vm5 = vweird.f32 %v3989_v57  ;;  %v1298_v26 = vand.u32 2147483647, %v3989_v57  ;;  %v1317_v3 = vadd.f32 1.1283791, %v1316_v34 }
 0x129   :  { %v1356_v38 = vmul.f32 %v1355_v36, %v3846_v40  ;;  %v1724_v56 = vadd.f32 0.112945676, %v1723_v8  ;;  %v4102_v55 = vmul.f32 %v1262_v44, %v1238_v20  ;;  %v1301_v10 = vor.u32 1.1754944e-38, %v1300_v19 }
 0x12a   :  { %v1751_v47 = vadd.f32 0.0036580483, %v1750_v4  ;;  %v4105_v7 = vadd.f32 %v412_v33, %v3860_v60  ;;  %v1292_v37 = vmul.f32 %v4048_v58, %v1291_v39  ;;  %v1714_v6 = vmul.f32 %v1713_v14, %v3939_v32  ;;  %v357_v4 = vpop.f32.mrf.mxu1 }
 0x12b   :  { %v4110_v17 = vmul.f32 0.5, %v3935_v12  ;;  %v1761_v43 = vmul.f32 %v1760_v51, %v4013_v49  ;;  %vm1295_vm6 = vweird.f32 %v4048_v58  ;;  %v1332_v40 = vmul.f32 %v4056_v1, %v1331_v30 }
 0x12c   :  { %v1370_v20 = vmul.f32 %v4097_v48, %v4046_v50  ;;  %v1786_v25 = vmul.f32 %v4095_v2, %v4095_v2  ;;  %vm4119_vm7 = vcmp.eq.f32.partialorder %v1298_v26, 8.507059e+37  ;;  %v4124_v12 = vmul.f32 %v1317_v3, %v3793_v61  ;;  %vm4156_vm11 = vmor %vm1294_vm5, %vm1295_vm6 }
 0x12d   :  { %v1338_v29 = vand.u32 2147483647, %v3994_v9  ;;  %v1357_v46 = vadd.f32 1.1283791, %v1356_v38  ;;  %v1725_v41 = vmul.f32 %v1724_v56, %v3939_v32  ;;  %v1340_v34 = vand.u32 2147483648, %v3994_v9 }
 0x12e   :  { %v1752_v36 = vmul.f32 %v1751_v47, %v4013_v49  ;;  %v4131_v8 = vmul.f32 0.70710677, %v4105_v7  ;;  %v4134_v19 = vadd.f32 %v328_v22, %v3799_v5  ;;  %v1293_v44 = vadd.f32 %v4048_v58, %v1292_v37 }
 0x12f   :  { %vm1334_vm8 = vweird.f32 %v3994_v9  ;;  %v1715_v61 = vadd.f32 0.18741608, %v1714_v6  ;;  %v1762_v39 = vadd.f32 0.014752088, %v1761_v43  ;;  %v1333_v14 = vadd.f32 %v4056_v1, %v1332_v40 }
 0x130   :  { %vm1335_vm9 = vweird.f32 %v4056_v1  ;;  %v1371_v51 = vsub.f32 1.0, %v1370_v20  ;;  %v4140_v33 = vmin.f32 %v1786_v25, 16.0  ;;  %vm4142_vm10 = vcmp.eq.f32.partialorder %v1338_v29, 8.507059e+37 }
 0x131   :  { %v4147_v26 = vmul.f32 %v1357_v46, %v3796_v62  ;;  %v1726_v3 = vadd.f32 0.4994258, %v1725_v41  ;;  %v4150_v38 = vadd.f32 %v357_v4, %v3799_v5  ;;  %v1341_v47 = vor.u32 1.1754944e-38, %v1340_v34  ;;  %vm4170_vm12 = vmor %vm1334_vm8, %vm1335_vm9 }
 0x132   :  { %v1753_v37 = vadd.f32 0.05243302, %v1752_v36  ;;  %v1826_v6 = vmul.f32 %v4131_v8, %v4131_v8  ;;  %v4163_v62 = vmul.f32 0.70710677, %v4134_v19  ;;  %v1297_v43 = vsel %vm4156_vm11, %v4048_v58, %v1293_v44 }
 0x133   :  { %v1378_v22 = vand.u32 2147483647, %v4046_v50  ;;  %v1716_v40 = vmul.f32 %v1715_v61, %v3939_v32  ;;  %v1763_v20 = vmul.f32 %v1762_v39, %v4013_v49  ;;  %v1337_v25 = vsel %vm4170_vm12, %v4056_v1, %v1333_v14 }
 0x134   :  { %v1372_v29 = vmul.f32 %v4097_v48, %v1371_v51  ;;  %v1788_v58 = vmul.f32 2.1237322e-06, %v4140_v33  ;;  %v2186_v9 = vmul.f32 %v4163_v62, %v4163_v62  ;;  %v1380_v46 = vand.u32 2147483648, %v4046_v50 }
 0x135   :  { %v1727_v41 = vmul.f32 %v1726_v3, %v3939_v32  ;;  %v4187_v34 = vmul.f32 0.5, %v4079_v27  ;;  %v4190_v36 = vmul.f32 0.70710677, %v4150_v38  ;;  %v1302_v1 = vsel %vm4119_vm7, %v1301_v10, %v1297_v43 }
 0x136   :  { %v1754_v4 = vmul.f32 %v1753_v37, %v4013_v49  ;;  %v4195_v44 = vmin.f32 %v1826_v6, 16.0  ;;  %v4197_v61 = vmin.f32 %v2186_v9, 16.0  ;;  %v1342_v39 = vsel %vm4142_vm10, %v1341_v47, %v1337_v25 }
 0x137   :  { %6464 = vst [vmem:[#allocation17_spill] sm:$0xff] %v4187_v34  ;;  %vm1375_vm13 = vweird.f32 %v4097_v48  ;;  %vm4202_vm14 = vcmp.eq.f32.partialorder %v1378_v22, 8.507059e+37  ;;  %v1764_v27 = vadd.f32 0.112945676, %v1763_v20  ;;  %v1373_v14 = vadd.f32 %v4097_v48, %v1372_v29  ;;  %v464_v34 = vpop.f32.mrf.mxu1 }
 0x138   :  { %v1717_v59 = vadd.f32 1.1283791, %v1716_v40  ;;  %v1789_v10 = vadd.f32 0.00028619796, %v1788_v58  ;;  %v2188_v51 = vmul.f32 2.1237322e-06, %v4197_v61  ;;  %v2226_v47 = vmul.f32 %v4190_v36, %v4190_v36 }
 0x139   :  { %v4208_v3 = vadd.f32 1.0, %v1727_v41  ;;  %v1799_v56 = vmul.f32 3.8918573e-05, %v4140_v33  ;;  %v2199_v30 = vmul.f32 3.8918573e-05, %v4197_v61  ;;  %vm1374_vm15 = vweird.f32 %v4046_v50  ;;  %v386_v41 = vpop.f32.mrf.mxu2 }
 0x13a   :  { %v1755_v37 = vadd.f32 0.18741608, %v1754_v4  ;;  %v1839_v6 = vmul.f32 3.8918573e-05, %v4195_v44  ;;  %v2189_v43 = vadd.f32 0.00028619796, %v2188_v51  ;;  %v4217_v57 = vmul.f32 %v1302_v1, %v4089_v53  ;;  %vm4228_vm0 = vmor %vm1374_vm15, %vm1375_vm13  ;;  %v415_v51 = vpop.f32.mrf.mxu3 }
 0x13b   :  { %v1381_v22 = vor.u32 1.1754944e-38, %v1380_v46  ;;  %v1765_v40 = vmul.f32 %v1764_v27, %v4013_v49  ;;  %v4221_v20 = vmul.f32 0.5, %v4105_v7  ;;  %v4224_v25 = vmul.f32 %v1342_v39, %v4124_v12 }
 0x13c   :  { %v4233_v29 = vmul.f32 %v1717_v59, %v3894_v52  ;;  %v1790_v53 = vmul.f32 %v1789_v10, %v4140_v33  ;;  %v2190_v58 = vmul.f32 %v2189_v43, %v4197_v61  ;;  %v1377_v7 = vsel %vm4228_vm0, %v4097_v48, %v1373_v14 }
 0x13d   :  { %6467 = vst [vmem:[#allocation18_spill] sm:$0xff] %v4221_v20  ;;  %v1800_v9 = vadd.f32 0.001143296, %v1799_v56  ;;  %v2200_v12 = vadd.f32 0.001143296, %v2199_v30  ;;  %v4240_v46 = vmin.f32 %v2226_v47, 16.0  ;;  %3171 = vrcp.f32 %v4208_v3 }
 0x13e   :  { %6468 = vst [vmem:[#allocation19_spill] sm:$0xff] %v4224_v25  ;;  %v1756_v52 = vmul.f32 %v1755_v37, %v4013_v49  ;;  %v1840_v4 = vadd.f32 0.001143296, %v1839_v6  ;;  %v1766_v39 = vadd.f32 0.4994258, %v1765_v40  ;;  %v1382_v48 = vsel %vm4202_vm14, %v1381_v22, %v1377_v7 }
 0x13f   :  { %v2191_v27 = vadd.f32 0.0036580483, %v2190_v58  ;;  %v2201_v59 = vmul.f32 %v2200_v12, %v4197_v61  ;;  %v2228_v10 = vmul.f32 2.1237322e-06, %v4240_v46  ;;  %v1740_v14 = vand.u32 2147483648, %v4208_v3 }
 0x140   :  { %v1791_v56 = vadd.f32 0.0036580483, %v1790_v53  ;;  %v4251_v30 = vadd.f32 %v386_v41, %v3799_v5  ;;  %v1801_v47 = vmul.f32 %v1800_v9, %v4140_v33  ;;  %v1757_v40 = vadd.f32 1.1283791, %v1756_v52 }
 0x141   :  { %v2192_v37 = vmul.f32 %v2191_v27, %v4197_v61  ;;  %v2202_v6 = vadd.f32 0.014752088, %v2201_v59  ;;  %v2229_v43 = vadd.f32 0.00028619796, %v2228_v10  ;;  %v1841_v50 = vmul.f32 %v1840_v4, %v4195_v44 }
 0x142   :  { %v2239_v58 = vmul.f32 3.8918573e-05, %v4240_v46  ;;  %v4258_v32 = vadd.f32 %v415_v51, %v3799_v5  ;;  %v1767_v22 = vmul.f32 %v1766_v39, %v4013_v49  ;;  %v1828_v53 = vmul.f32 2.1237322e-06, %v4195_v44 }
 0x143   :  { %v2203_v7 = vmul.f32 %v2202_v6, %v4197_v61  ;;  %v2230_v9 = vmul.f32 %v2229_v43, %v4240_v46  ;;  %v4264_v12 = vpop.eup %3171  ;;  %v4267_v41 = vmul.f32 %v1382_v48, %v4147_v26  ;;  %v2193_v52 = vadd.f32 0.05243302, %v2192_v37 }
 0x144   :  { %v2240_v4 = vadd.f32 0.001143296, %v2239_v58  ;;  %v4270_v27 = vmul.f32 0.70710677, %v4251_v30  ;;  %v1792_v59 = vmul.f32 %v1791_v56, %v4140_v33  ;;  %v1802_v10 = vadd.f32 0.014752088, %v1801_v47 }
 0x145   :  { %6471 = vst [vmem:[#allocation20_spill] sm:$0xff] %v4267_v41  ;;  %v2204_v49 = vadd.f32 0.112945676, %v2203_v7  ;;  %v2231_v39 = vadd.f32 0.0036580483, %v2230_v9  ;;  %v4279_v26 = vor.u32 1.1754944e-38, %v1740_v14  ;;  %v4282_v48 = vmul.f32 %v1757_v40, %v3967_v23 }
 0x146   :  { %v1842_v51 = vadd.f32 0.014752088, %v1841_v50  ;;  %v2241_v6 = vmul.f32 %v2240_v4, %v4240_v46  ;;  %v2266_v43 = vmul.f32 %v4270_v27, %v4270_v27  ;;  %v4277_v1 = vmul.f32 0.70710677, %v4258_v32 }
 0x147   :  { %v4284_v37 = vadd.f32 1.0, %v1767_v22  ;;  %v2205_v56 = vmul.f32 %v2204_v49, %v4197_v61  ;;  %v2194_v47 = vmul.f32 %v2193_v52, %v4197_v61  ;;  %v2232_v50 = vmul.f32 %v2231_v39, %v4240_v46 }
 0x148   :  { %v2242_v58 = vadd.f32 0.014752088, %v2241_v6  ;;  %v4289_v7 = vmin.f32 %v2266_v43, 16.0  ;;  %v1793_v9 = vadd.f32 0.05243302, %v1792_v59  ;;  %v1803_v4 = vmul.f32 %v1802_v10, %v4140_v33 }
 0x149   :  { %v1829_v21 = vadd.f32 0.00028619796, %v1828_v53  ;;  %v2206_v14 = vadd.f32 0.4994258, %v2205_v56  ;;  %v1843_v42 = vmul.f32 %v1842_v51, %v4195_v44  ;;  %v2306_v22 = vmul.f32 %v4277_v1, %v4277_v1 }
 0x14a   :  { %v2243_v23 = vmul.f32 %v2242_v58, %v4240_v46  ;;  %v2268_v40 = vmul.f32 2.1237322e-06, %v4289_v7  ;;  %v1730_v52 = vmul.f32 %v4264_v12, %v4208_v3  ;;  %v1780_v49 = vand.u32 2147483648, %v4284_v37 }
 0x14b   :  { %v2207_v59 = vmul.f32 %v2206_v14, %v4197_v61  ;;  %v2233_v39 = vadd.f32 0.05243302, %v2232_v50  ;;  %3173 = vrcp.f32 %v4284_v37  ;;  %v2195_v53 = vadd.f32 0.18741608, %v2194_v47 }
 0x14c   :  { %v2244_v10 = vadd.f32 0.112945676, %v2243_v23  ;;  %v2269_v51 = vadd.f32 0.00028619796, %v2268_v40  ;;  %v1794_v6 = vmul.f32 %v1793_v9, %v4140_v33  ;;  %v1804_v43 = vadd.f32 0.112945676, %v1803_v4 }
 0x14d   :  { %v4303_v56 = vadd.f32 1.0, %v2207_v59  ;;  %v2279_v58 = vmul.f32 3.8918573e-05, %v4289_v7  ;;  %v1844_v13 = vadd.f32 0.112945676, %v1843_v42  ;;  %v4308_v41 = vmin.f32 %v2306_v22, 16.0 }
 0x14e   :  { %v2245_v18 = vmul.f32 %v2244_v10, %v4240_v46  ;;  %v2270_v24 = vmul.f32 %v2269_v51, %v4289_v7  ;;  %v1830_v47 = vmul.f32 %v1829_v21, %v4195_v44  ;;  %v2234_v9 = vmul.f32 %v2233_v39, %v4240_v46 }
 0x14f   :  { %3175 = vrcp.f32 %v4303_v56  ;;  %v1731_v4 = vsub.f32 1.0, %v1730_v52  ;;  %v4315_v14 = vmul.f32 0.5, %v4134_v19  ;;  %v2196_v42 = vmul.f32 %v2195_v53, %v4197_v61  ;;  %v435_v53 = vpop.f32.mrf.mxu0 }
 0x150   :  { %v2246_v23 = vadd.f32 0.4994258, %v2245_v18  ;;  %v4318_v40 = vor.u32 1.1754944e-38, %v1780_v49  ;;  %v1805_v22 = vmul.f32 %v1804_v43, %v4140_v33  ;;  %v2271_v59 = vadd.f32 0.0036580483, %v2270_v24 }
 0x151   :  { %v2280_v10 = vadd.f32 0.001143296, %v2279_v58  ;;  %v4321_v51 = vpop.eup %3173  ;;  %v4323_v21 = vadd.f32 0.18741608, %v1794_v6  ;;  %v1845_v50 = vmul.f32 %v1844_v13, %v4195_v44  ;;  %v2308_v19 = vmul.f32 2.1237322e-06, %v4308_v41 }
 0x152   :  { %v2247_v52 = vmul.f32 %v2246_v23, %v4240_v46  ;;  %v4328_v39 = vadd.f32 0.0036580483, %v1830_v47  ;;  %v2235_v61 = vadd.f32 0.18741608, %v2234_v9  ;;  %v2319_v49 = vmul.f32 3.8918573e-05, %v4308_v41 }
 0x153   :  { %v2281_v18 = vmul.f32 %v2280_v10, %v4289_v7  ;;  %v4333_v24 = vmul.f32 %v4264_v12, %v1731_v4  ;;  %v2197_v43 = vadd.f32 1.1283791, %v2196_v42  ;;  %v2309_v58 = vadd.f32 0.00028619796, %v2308_v19 }
 0x154   :  { %v4335_v6 = vadd.f32 1.0, %v2247_v52  ;;  %v4337_v15 = vadd.f32 0.4994258, %v1805_v22  ;;  %v2272_v23 = vmul.f32 %v2271_v59, %v4289_v7  ;;  %v2320_v20 = vadd.f32 0.001143296, %v2319_v49 }
 0x155   :  { %v3176_v13 = vpop.eup %3175  ;;  %v2282_v47 = vadd.f32 0.014752088, %v2281_v18  ;;  %v4340_v9 = vadd.f32 0.4994258, %v1845_v50  ;;  %v4345_v4 = vadd.f32 %v435_v53, %v3680_v63  ;;  %v2218_v42 = vand.u32 2147483647, %v4303_v56 }
 0x156   :  { %v2210_v10 = vmul.f32 %v3176_v13, %v4303_v56  ;;  %3177 = vrcp.f32 %v4335_v6  ;;  %v2220_v52 = vand.u32 2147483648, %v4303_v56  ;;  %v2236_v22 = vmul.f32 %v2235_v61, %v4240_v46 }
 0x157   :  { %v2283_v19 = vmul.f32 %v2282_v47, %v4289_v7  ;;  %v2198_v59 = vmul.f32 %v2197_v43, %v4163_v62  ;;  %v2310_v50 = vmul.f32 %v2309_v58, %v4308_v41  ;;  %v2321_v49 = vmul.f32 %v2320_v20, %v4308_v41 }
 0x158   :  { %v2211_v18 = vsub.f32 1.0, %v2210_v10  ;;  %vm2214_vm1 = vweird.f32 %v4303_v56  ;;  %vm2215_vm2 = vweird.f32 %v3176_v13  ;;  %v2273_v53 = vadd.f32 0.05243302, %v2272_v23 }
 0x159   :  { %v2284_v25 = vadd.f32 0.112945676, %v2283_v19  ;;  %v2311_v54 = vadd.f32 0.0036580483, %v2310_v50  ;;  %v2322_v31 = vadd.f32 0.014752088, %v2321_v49  ;;  %v4367_v19 = vadd.f32 %v464_v34, %v3680_v63  ;;  %vm2216_vm4 = vmor %vm2214_vm1, %vm2215_vm2 }
 0x15a   :  { %v2212_v11 = vmul.f32 %v3176_v13, %v2211_v18  ;;  %v4356_v46 = vmul.f32 0.70710677, %v4345_v4  ;;  %vm4358_vm3 = vcmp.eq.f32.partialorder %v2218_v42, 8.507059e+37  ;;  %v2221_v62 = vor.u32 1.1754944e-38, %v2220_v52 }
 0x15b   :  { %v2237_v43 = vadd.f32 1.1283791, %v2236_v22  ;;  %v2285_v20 = vmul.f32 %v2284_v25, %v4289_v7  ;;  %v2323_v23 = vmul.f32 %v2322_v31, %v4308_v41  ;;  %v2258_v52 = vand.u32 2147483647, %v4335_v6 }
 0x15c   :  { %v3178_v58 = vpop.eup %3177  ;;  %v2213_v47 = vadd.f32 %v3176_v13, %v2212_v11  ;;  %v906_v10 = vmul.f32 %v4356_v46, %v4356_v46  ;;  %v2312_v25 = vmul.f32 %v2311_v54, %v4308_v41  ;;  %v2274_v31 = vmul.f32 %v2273_v53, %v4289_v7 }
 0x15d   :  { %v2250_v42 = vmul.f32 %v3178_v58, %v4335_v6  ;;  %v2286_v22 = vadd.f32 0.4994258, %v2285_v20  ;;  %v2324_v18 = vadd.f32 0.112945676, %v2323_v23  ;;  %v2260_v56 = vand.u32 2147483648, %v4335_v6 }
 0x15e   :  { %v2217_v11 = vsel %vm2216_vm4, %v3176_v13, %v2213_v47  ;;  %v4376_v50 = vmin.f32 %v906_v10, 16.0  ;;  %vm2255_vm5 = vweird.f32 %v3178_v58  ;;  %v4384_v54 = vmul.f32 0.70710677, %v4367_v19  ;;  %v493_v13 = vpop.f32.mrf.mxu2 }
 0x15f   :  { %v2222_v34 = vsel %vm4358_vm3, %v2221_v62, %v2217_v11  ;;  %v2251_v49 = vsub.f32 1.0, %v2250_v42  ;;  %v2287_v28 = vmul.f32 %v2286_v22, %v4289_v7  ;;  %v2325_v20 = vmul.f32 %v2324_v18, %v4308_v41 }
 0x160   :  { %v2223_v35 = vmul.f32 %v2222_v34, %v2198_v59  ;;  %v2313_v23 = vadd.f32 0.05243302, %v2312_v25  ;;  %v919_v61 = vmul.f32 3.8918573e-05, %v4376_v50  ;;  %v2238_v10 = vmul.f32 %v2237_v43, %v4190_v36 }
 0x161   :  { %v2252_v53 = vmul.f32 %v3178_v58, %v2251_v49  ;;  %v4386_v47 = vadd.f32 1.0, %v2287_v28  ;;  %v2275_v42 = vadd.f32 0.18741608, %v2274_v31  ;;  %v2326_v11 = vadd.f32 0.4994258, %v2325_v20 }
 0x162   :  { %v3125_v62 = vclamps-f32 %v2223_v35, 1.0  ;;  %vm2254_vm6 = vweird.f32 %v4335_v6  ;;  %v4393_v59 = vadd.f32 %v493_v13, %v3680_v63  ;;  %v2261_v28 = vor.u32 1.1754944e-38, %v2260_v56 }
 0x163   :  { %v2253_v22 = vadd.f32 %v3178_v58, %v2252_v53  ;;  %3179 = vrcp.f32 %v4386_v47  ;;  %vm2256_vm7 = vmor %vm2254_vm6, %vm2255_vm5  ;;  %v2327_v25 = vmul.f32 %v2326_v11, %v4308_v41  ;;  %v946_v35 = vmul.f32 %v4384_v54, %v4384_v54 }
 0x164   :  { %v2702_v18 = vadd.f32 1.0, %v3125_v62  ;;  %vm2259_vm8 = vcmp.eq.f32.partialorder %v2258_v52, 8.507059e+37  ;;  %v2314_v43 = vmul.f32 %v2313_v23, %v4308_v41  ;;  %v920_v31 = vadd.f32 0.001143296, %v919_v61 }
 0x165   :  { %v2257_v36 = vsel %vm2256_vm7, %v3178_v58, %v2253_v22  ;;  %v1807_v6 = vmul.f32 %v4337_v15, %v4140_v33  ;;  %v2276_v20 = vmul.f32 %v2275_v42, %v4289_v7  ;;  %v4406_v56 = vmul.f32 %v4323_v21, %v4140_v33 }
 0x166   :  { %v2750_v34 = vmul.f32 %v2702_v18, %v4315_v14  ;;  %v2262_v49 = vsel %vm2259_vm8, %v2261_v28, %v2257_v36  ;;  %v1847_v13 = vmul.f32 %v4340_v9, %v4195_v44  ;;  %v4410_v52 = vadd.f32 1.0, %v2327_v25 }
 0x167   :  { %v2263_v58 = vmul.f32 %v2262_v49, %v2238_v10  ;;  %v4414_v53 = vadd.f32 %v4264_v12, %v4333_v24  ;;  %v687_v15 = vmul.f32 0.5, %v4150_v38  ;;  %v921_v14 = vmul.f32 %v920_v31, %v4376_v50 }
 0x168   :  { %v4418_v23 = vmin.f32 %v946_v35, 16.0  ;;  %2785 = vmatpush.msrb.mxu0 %v2750_v34  ;;  %v2315_v21 = vadd.f32 0.18741608, %v2314_v43  ;;  %3181 = vrcp.f32 %v4410_v52  ;;  %v4422_v9 = vmul.f32 0.70710677, %v4393_v59 }
 0x169   :  { %v3180_v7 = vpop.eup %3179  ;;  %v3126_v33 = vclamps-f32 %v2263_v58, 1.0  ;;  %v4424_v61 = vadd.f32 1.0, %v1807_v6  ;;  %v1832_v24 = vmul.f32 %v4328_v39, %v4195_v44  ;;  %v2277_v62 = vadd.f32 1.1283791, %v2276_v20 }
 0x16a   :  { %v2290_v38 = vmul.f32 %v3180_v7, %v4386_v47  ;;  %v4429_v10 = vadd.f32 1.0, %v1847_v13  ;;  %v2298_v11 = vand.u32 2147483647, %v4386_v47  ;;  %v908_v22 = vmul.f32 2.1237322e-06, %v4376_v50 }
 0x16b   :  { %v2703_v42 = vadd.f32 1.0, %v3126_v33  ;;  %v4435_v18 = vmul.f32 %v4321_v51, %v4284_v37  ;;  %v922_v25 = vadd.f32 0.014752088, %v921_v14  ;;  %v959_v35 = vmul.f32 3.8918573e-05, %v4418_v23  ;;  %v522_v33 = vpop.f32.mrf.mxu3 }
 0x16c   :  { %v2291_v28 = vsub.f32 1.0, %v2290_v38  ;;  %v2300_v39 = vand.u32 2147483648, %v4386_v47  ;;  %v2316_v43 = vmul.f32 %v2315_v21, %v4308_v41  ;;  %v986_v31 = vmul.f32 %v4422_v9, %v4422_v9 }
 0x16d   :  { %v2751_v36 = vmul.f32 %v2703_v42, %v687_v15  ;;  %vm1735_vm9 = vweird.f32 %v4264_v12  ;;  %3183 = vrcp.f32 %v4424_v61  ;;  %vm2295_vm10 = vweird.f32 %v3180_v7 }
 0x16e   :  { %v2292_v6 = vmul.f32 %v3180_v7, %v2291_v28  ;;  %v960_v34 = vadd.f32 0.001143296, %v959_v35  ;;  %v3182_v49 = vpop.eup %3181  ;;  %v1833_v20 = vadd.f32 0.05243302, %v1832_v24  ;;  %3185 = vrcp.f32 %v4429_v10 }
 0x16f   :  { %v2278_v13 = vmul.f32 %v2277_v62, %v4270_v27  ;;  %v4446_v58 = vmin.f32 %v986_v31, 16.0  ;;  %2805 = vmatpush.msrb.mxu1 %v2751_v36  ;;  %vm1734_vm11 = vweird.f32 %v4208_v3  ;;  %vm2294_vm12 = vweird.f32 %v4386_v47 }
 0x170   :  { %v2293_v41 = vadd.f32 %v3180_v7, %v2292_v6  ;;  %v2330_v15 = vmul.f32 %v3182_v49, %v4410_v52  ;;  %v923_v14 = vmul.f32 %v922_v25, %v4376_v50  ;;  %vm2296_vm13 = vmor %vm2294_vm12, %vm2295_vm10  ;;  %vm2299_vm14 = vcmp.eq.f32.partialorder %v2298_v11, 8.507059e+37 }
 0x171   :  { %v2301_v21 = vor.u32 1.1754944e-38, %v2300_v39  ;;  %v2317_v24 = vadd.f32 1.1283791, %v2316_v43  ;;  %v909_v38 = vadd.f32 0.00028619796, %v908_v22  ;;  %v961_v62 = vmul.f32 %v960_v34, %v4418_v23  ;;  %vm4484_vm5 = vmor %vm1734_vm11, %vm1735_vm9 }
 0x172   :  { %v2297_v42 = vsel %vm2296_vm13, %v3180_v7, %v2293_v41  ;;  %v2331_v27 = vsub.f32 1.0, %v2330_v15  ;;  %v999_v28 = vmul.f32 3.8918573e-05, %v4446_v58  ;;  %v2338_v36 = vand.u32 2147483647, %v4410_v52 }
 0x173   :  { %v2302_v35 = vsel %vm2299_vm14, %v2301_v21, %v2297_v42  ;;  %v2340_v47 = vand.u32 2147483648, %v4410_v52  ;;  %v4457_v31 = vadd.f32 %v522_v33, %v3680_v63  ;;  %v4459_v25 = vpop.eup %3183  ;;  %v6474_v11 = vand.u32 2147483647, %v4208_v3 }
 0x174   :  { %v2303_v7 = vmul.f32 %v2302_v35, %v2278_v13  ;;  %v2332_v39 = vmul.f32 %v3182_v49, %v2331_v27  ;;  %vm2335_vm0 = vweird.f32 %v3182_v49  ;;  %v924_v43 = vadd.f32 0.112945676, %v923_v14  ;;  %v4467_v6 = vpop.eup %3185 }
 0x175   :  { %vm4463_vm15 = vcmp.eq.f32.partialorder %v6474_v11, 8.507059e+37  ;;  %v1771_v34 = vsub.f32 1.0, %v4435_v18  ;;  %v688_v41 = vmul.f32 0.5, %v4251_v30  ;;  %v948_v15 = vmul.f32 2.1237322e-06, %v4418_v23 }
 0x176   :  { %v1000_v33 = vadd.f32 0.001143296, %v999_v28  ;;  %v3127_v21 = vclamps-f32 %v2303_v7, 1.0  ;;  %v2333_v42 = vadd.f32 %v3182_v49, %v2332_v39  ;;  %vm2334_vm1 = vweird.f32 %v4410_v52 }
 0x177   :  { %v962_v11 = vadd.f32 0.014752088, %v961_v62  ;;  %vm1775_vm2 = vweird.f32 %v4321_v51  ;;  %v2318_v13 = vmul.f32 %v2317_v24, %v4277_v1  ;;  %vm2336_vm3 = vmor %vm2334_vm1, %vm2335_vm0  ;;  %vm2339_vm4 = vcmp.eq.f32.partialorder %v2338_v36, 8.507059e+37 }
 0x178   :  { %v2341_v14 = vor.u32 1.1754944e-38, %v2340_v47  ;;  %v910_v27 = vmul.f32 %v909_v38, %v4376_v50  ;;  %v2704_v18 = vadd.f32 1.0, %v3127_v21  ;;  %v2337_v35 = vsel %vm2336_vm3, %v3182_v49, %v2333_v42 }
 0x179   :  { %v925_v30 = vmul.f32 %v924_v43, %v4376_v50  ;;  %v4478_v28 = vmul.f32 0.70710677, %v4457_v31  ;;  %vm1774_vm6 = vweird.f32 %v4284_v37  ;;  %v1797_v1 = vadd.f32 1.1283791, %v4406_v56 }
 0x17a   :  { %v2342_v24 = vsel %vm2339_vm4, %v2341_v14, %v2337_v35  ;;  %v949_v38 = vadd.f32 0.00028619796, %v948_v15  ;;  %v1001_v49 = vmul.f32 %v1000_v33, %v4446_v58  ;;  %v1737_v62 = vsel %vm4484_vm5, %v4264_v12, %v4414_v53  ;;  %v438_v15 = vpop.f32.mrf.mxu0  ;;  %vm4536_vm8 = vmor %vm1774_vm6, %vm1775_vm2 }
 0x17b   :  { %v2752_v36 = vmul.f32 %v2704_v18, %v688_v41  ;;  %v2343_v47 = vmul.f32 %v2342_v24, %v2318_v13  ;;  %v963_v3 = vmul.f32 %v962_v11, %v4418_v23  ;;  %v1772_v7 = vmul.f32 %v4321_v51, %v1771_v34 }
 0x17c   :  { %v1810_v39 = vmul.f32 %v4459_v25, %v4424_v61  ;;  %v1834_v56 = vmul.f32 %v1833_v20, %v4195_v44  ;;  %v1850_v43 = vmul.f32 %v4467_v6, %v4429_v10  ;;  %v911_v21 = vadd.f32 0.0036580483, %v910_v27 }
 0x17d   :  { %v3128_v33 = vclamps-f32 %v2343_v47, 1.0  ;;  %v926_v42 = vadd.f32 0.4994258, %v925_v30  ;;  %v1026_v12 = vmul.f32 %v4478_v28, %v4478_v28  ;;  %2825 = vmatpush.msrb.mxu2 %v2752_v36  ;;  %v1742_v53 = vsel %vm4463_vm15, %v4279_v26, %v1737_v62 }
 0x17e   :  { %v689_v34 = vmul.f32 0.5, %v4258_v32  ;;  %v950_v41 = vmul.f32 %v949_v38, %v4418_v23  ;;  %v1002_v20 = vadd.f32 0.014752088, %v1001_v49  ;;  %v964_v13 = vadd.f32 0.112945676, %v963_v3 }
 0x17f   :  { %v2705_v11 = vadd.f32 1.0, %v3128_v33  ;;  %v4509_v14 = vmin.f32 %v1026_v12, 16.0  ;;  %v4512_v27 = vadd.f32 %v438_v15, %v3678_v45  ;;  %v1773_v18 = vadd.f32 %v4321_v51, %v1772_v7 }
 0x180   :  { %v1811_v35 = vsub.f32 1.0, %v1810_v39  ;;  %v1835_v30 = vadd.f32 0.18741608, %v1834_v56  ;;  %v1851_v52 = vsub.f32 1.0, %v1850_v43  ;;  %v912_v26 = vmul.f32 %v911_v21, %v4376_v50  ;;  %v467_v56 = vpop.f32.mrf.mxu1 }
 0x181   :  { %v2753_v24 = vmul.f32 %v2705_v11, %v689_v34  ;;  %v927_v32 = vmul.f32 %v926_v42, %v4376_v50  ;;  %v988_v22 = vmul.f32 2.1237322e-06, %v4446_v58  ;;  %v4519_v38 = vmul.f32 %v1742_v53, %v4233_v29 }
 0x182   :  { %v6479_v49 = vand.u32 2147483647, %v4284_v37  ;;  %v4528_v36 = vmul.f32 %v1797_v1, %v4095_v2  ;;  %v1818_v47 = vand.u32 2147483647, %v4424_v61  ;;  %v1003_v3 = vmul.f32 %v1002_v20, %v4446_v58 }
 0x183   :  { %vm1814_vm9 = vweird.f32 %v4424_v61  ;;  %v951_v7 = vadd.f32 0.0036580483, %v950_v41  ;;  %v965_v39 = vmul.f32 %v964_v13, %v4418_v23  ;;  %v1039_v2 = vmul.f32 3.8918573e-05, %v4509_v14  ;;  %2845 = vmatpush.msrb.mxu3 %v2753_v24 }
 0x184   :  { %vm4523_vm7 = vcmp.eq.f32.partialorder %v6479_v49, 8.507059e+37  ;;  %v4544_v1 = vmul.f32 0.70710677, %v4512_v27  ;;  %v1777_v37 = vsel %vm4536_vm8, %v4321_v51, %v1773_v18  ;;  %v1812_v43 = vmul.f32 %v4459_v25, %v1811_v35 }
 0x185   :  { %v1820_v15 = vand.u32 2147483648, %v4424_v61  ;;  %v1836_v33 = vmul.f32 %v1835_v30, %v4195_v44  ;;  %v1852_v21 = vmul.f32 %v4467_v6, %v1851_v52  ;;  %v913_v42 = vadd.f32 0.05243302, %v912_v26 }
 0x186   :  { %v4553_v12 = vadd.f32 1.0, %v927_v32  ;;  %v989_v53 = vadd.f32 0.00028619796, %v988_v22  ;;  %v1004_v34 = vadd.f32 0.112945676, %v1003_v3  ;;  %v1386_v20 = vmul.f32 %v4544_v1, %v4544_v1 }
 0x187   :  { %v1040_v41 = vadd.f32 0.001143296, %v1039_v2  ;;  %v4558_v11 = vadd.f32 %v467_v56, %v3678_v45  ;;  %vm1815_vm10 = vweird.f32 %v4459_v25  ;;  %vm4561_vm11 = vcmp.eq.f32.partialorder %v1818_v47, 8.507059e+37 }
 0x188   :  { %v952_v44 = vmul.f32 %v951_v7, %v4418_v23  ;;  %v966_v13 = vadd.f32 0.4994258, %v965_v39  ;;  %v1813_v18 = vadd.f32 %v4459_v25, %v1812_v43  ;;  %vm1855_vm12 = vweird.f32 %v4467_v6  ;;  %vm4589_vm13 = vmor %vm1814_vm9, %vm1815_vm10 }
 0x189   :  { %v1041_v35 = vmul.f32 %v1040_v41, %v4509_v14  ;;  %v4569_v30 = vmin.f32 %v1386_v20, 16.0  ;;  %v1853_v52 = vadd.f32 %v4467_v6, %v1852_v21  ;;  %v914_v24 = vmul.f32 %v913_v42, %v4376_v50 }
 0x18a   :  { %3187 = vrcp.f32 %v4553_v12  ;;  %v990_v26 = vmul.f32 %v989_v53, %v4446_v58  ;;  %v1005_v32 = vmul.f32 %v1004_v34, %v4446_v58  ;;  %v4578_v47 = vmul.f32 0.70710677, %v4558_v11 }
 0x18b   :  { %v1042_v22 = vadd.f32 0.014752088, %v1041_v35  ;;  %v1399_v49 = vmul.f32 3.8918573e-05, %v4569_v30  ;;  %v1782_v3 = vsel %vm4523_vm7, %v4318_v40, %v1777_v37  ;;  %v1860_v29 = vand.u32 2147483648, %v4429_v10 }
 0x18c   :  { %v953_v7 = vadd.f32 0.05243302, %v952_v44  ;;  %v967_v39 = vmul.f32 %v966_v13, %v4418_v23  ;;  %v1821_v56 = vor.u32 1.1754944e-38, %v1820_v15  ;;  %v1837_v43 = vadd.f32 1.1283791, %v1836_v33 }
 0x18d   :  { %vm1854_vm14 = vweird.f32 %v4429_v10  ;;  %v1858_v62 = vand.u32 2147483647, %v4429_v10  ;;  %v1817_v40 = vsel %vm4589_vm13, %v4459_v25, %v1813_v18  ;;  %v915_v61 = vadd.f32 0.18741608, %v914_v24  ;;  %v496_v25 = vpop.f32.mrf.mxu2 }
 0x18e   :  { %vm4600_vm15 = vmor %vm1854_vm14, %vm1855_vm12  ;;  %v1043_v21 = vmul.f32 %v1042_v22, %v4509_v14  ;;  %v1400_v42 = vadd.f32 0.001143296, %v1399_v49  ;;  %v991_v33 = vadd.f32 0.0036580483, %v990_v26  ;;  %v1006_v10 = vadd.f32 0.4994258, %v1005_v32 }
 0x18f   :  { %v1857_v15 = vsel %vm4600_vm15, %v4467_v6, %v1853_v52  ;;  %v1426_v53 = vmul.f32 %v4578_v47, %v4578_v47  ;;  %v1861_v41 = vor.u32 1.1754944e-38, %v1860_v29  ;;  %v954_v20 = vmul.f32 %v953_v7, %v4418_v23 }
 0x190   :  { %v4610_v34 = vpop.eup %3187  ;;  %v4613_v44 = vadd.f32 1.0, %v967_v39  ;;  %v1401_v13 = vmul.f32 %v1400_v42, %v4569_v30  ;;  %v1822_v18 = vsel %vm4561_vm11, %v1821_v56, %v1817_v40  ;;  %v1838_v6 = vmul.f32 %v1837_v43, %v4131_v8 }
 0x191   :  { %vm1859_vm0 = vcmp.eq.f32.partialorder %v1858_v62, 8.507059e+37  ;;  %v1028_v35 = vmul.f32 2.1237322e-06, %v4509_v14  ;;  %v916_v24 = vmul.f32 %v915_v61, %v4376_v50  ;;  %v1044_v26 = vadd.f32 0.112945676, %v1043_v21 }
 0x192   :  { %v1862_v52 = vsel %vm1859_vm0, %v1861_v41, %v1857_v15  ;;  %v4622_v32 = vadd.f32 %v496_v25, %v3678_v45  ;;  %v992_v22 = vmul.f32 %v991_v33, %v4446_v58  ;;  %v1007_v49 = vmul.f32 %v1006_v10, %v4446_v58 }
 0x193   :  { %v1402_v29 = vadd.f32 0.014752088, %v1401_v13  ;;  %v4626_v7 = vmin.f32 %v1426_v53, 16.0  ;;  %v4629_v51 = vmul.f32 %v1782_v3, %v4282_v48  ;;  %v930_v8 = vmul.f32 %v4610_v34, %v4553_v12 }
 0x194   :  { %v955_v39 = vadd.f32 0.18741608, %v954_v20  ;;  %3189 = vrcp.f32 %v4613_v44  ;;  %v4635_v50 = vmul.f32 %v1822_v18, %v4528_v36  ;;  %v4637_v2 = vmul.f32 %v1862_v52, %v1838_v6 }
 0x195   :  { %v1029_v56 = vadd.f32 0.00028619796, %v1028_v35  ;;  %v1388_v43 = vmul.f32 2.1237322e-06, %v4569_v30  ;;  %v4641_v62 = vmul.f32 0.5, %v4345_v4  ;;  %v1045_v48 = vmul.f32 %v1044_v26, %v4509_v14 }
 0x196   :  { %v917_v40 = vadd.f32 1.1283791, %v916_v24  ;;  %v4645_v3 = vmul.f32 0.70710677, %v4622_v32  ;;  %v993_v37 = vadd.f32 0.05243302, %v992_v22  ;;  %v1403_v36 = vmul.f32 %v1402_v29, %v4569_v30 }
 0x197   :  { %6490 = vst [vmem:[#allocation21_spill] sm:$0xff] %v4641_v62  ;;  %v4647_v61 = vadd.f32 1.0, %v1007_v49  ;;  %v1439_v21 = vmul.f32 3.8918573e-05, %v4626_v7  ;;  %v931_v42 = vsub.f32 1.0, %v930_v8  ;;  %v4652_v15 = vmul.f32 0.5, %v4367_v19 }
 0x198   :  { %v956_v4 = vmul.f32 %v955_v39, %v4418_v23  ;;  %v4656_v33 = vmul.f32 0.5, %v4393_v59  ;;  %v940_v10 = vand.u32 2147483648, %v4553_v12  ;;  %v1030_v53 = vmul.f32 %v1029_v56, %v4509_v14 }
 0x199   :  { %6491 = vst [vmem:[#allocation22_spill] sm:$0xff] %v4652_v15  ;;  %v1389_v25 = vadd.f32 0.00028619796, %v1388_v43  ;;  %v1440_v41 = vadd.f32 0.001143296, %v1439_v21  ;;  %v4664_v18 = vmul.f32 0.5, %v4457_v31  ;;  %v1466_v23 = vmul.f32 %v4645_v3, %v4645_v3  ;;  %v441_v21 = vpop.f32.mrf.mxu0 }
 0x19a   :  { %6492 = vst [vmem:[#allocation23_spill] sm:$0xff] %v4656_v33  ;;  %v4660_v20 = vpop.eup %3189  ;;  %v938_v13 = vand.u32 2147483647, %v4553_v12  ;;  %v1046_v19 = vadd.f32 0.4994258, %v1045_v48  ;;  %v4669_v59 = vmul.f32 %v917_v40, %v4356_v46  ;;  %v994_v6 = vmul.f32 %v993_v37, %v4446_v58  ;;  %v525_v40 = vpop.f32.mrf.mxu3 }
 0x19b   :  { %6493 = vst [vmem:[#allocation24_spill] sm:$0xff] %v4664_v18  ;;  %3191 = vrcp.f32 %v4647_v61  ;;  %v1404_v35 = vadd.f32 0.112945676, %v1403_v36  ;;  %v932_v52 = vmul.f32 %v4610_v34, %v931_v42  ;;  %vm934_vm1 = vweird.f32 %v4553_v12 }
 0x19c   :  { %v957_v24 = vadd.f32 1.1283791, %v956_v4  ;;  %v1441_v31 = vmul.f32 %v1440_v41, %v4626_v7  ;;  %v941_v26 = vor.u32 1.1754944e-38, %v940_v10  ;;  %v970_v22 = vmul.f32 %v4660_v20, %v4613_v44 }
 0x19d   :  { %v1031_v49 = vadd.f32 0.0036580483, %v1030_v53  ;;  %v1390_v46 = vmul.f32 %v1389_v25, %v4569_v30  ;;  %vm4679_vm2 = vcmp.eq.f32.partialorder %v938_v13, 8.507059e+37  ;;  %v1047_v8 = vmul.f32 %v1046_v19, %v4509_v14 }
 0x19e   :  { %v1428_v39 = vmul.f32 2.1237322e-06, %v4626_v7  ;;  %v1442_v56 = vadd.f32 0.014752088, %v1441_v31  ;;  %v4685_v43 = vmin.f32 %v1466_v23, 16.0  ;;  %vm935_vm3 = vweird.f32 %v4610_v34 }
 0x19f   :  { %v995_v48 = vadd.f32 0.18741608, %v994_v6  ;;  %v4689_v37 = vmul.f32 0.5, %v4512_v27  ;;  %v1405_v36 = vmul.f32 %v1404_v35, %v4569_v30  ;;  %v933_v42 = vadd.f32 %v4610_v34, %v932_v52  ;;  %vm4716_vm4 = vmor %vm934_vm1, %vm935_vm3 }
 0x1a0   :  { %v4694_v4 = vmul.f32 %v957_v24, %v4384_v54  ;;  %v1443_v10 = vmul.f32 %v1442_v56, %v4626_v7  ;;  %v1479_v53 = vmul.f32 3.8918573e-05, %v4685_v43  ;;  %v971_v41 = vsub.f32 1.0, %v970_v22 }
 0x1a1   :  { %6496 = vst [vmem:[#allocation25_spill] sm:$0xff] %v4689_v37  ;;  %v4698_v25 = vpop.eup %3191  ;;  %v1032_v13 = vmul.f32 %v1031_v49, %v4509_v14  ;;  %v1391_v19 = vadd.f32 0.0036580483, %v1390_v46  ;;  %v4702_v27 = vadd.f32 %v525_v40, %v3678_v45  ;;  %v4704_v23 = vadd.f32 1.0, %v1047_v8 }
 0x1a2   :  { %v4707_v6 = vmul.f32 0.5, %v4558_v11  ;;  %v1429_v54 = vadd.f32 0.00028619796, %v1428_v39  ;;  %v4710_v35 = vadd.f32 %v441_v21, %v3860_v60  ;;  %v978_v24 = vand.u32 2147483647, %v4613_v44 }
 0x1a3   :  { %v980_v31 = vand.u32 2147483648, %v4613_v44  ;;  %v996_v22 = vmul.f32 %v995_v48, %v4446_v58  ;;  %v1406_v11 = vadd.f32 0.4994258, %v1405_v36  ;;  %v937_v49 = vsel %vm4716_vm4, %v4610_v34, %v933_v42 }
 0x1a4   :  { %6497 = vst [vmem:[#allocation26_spill] sm:$0xff] %v4707_v6  ;;  %vm974_vm5 = vweird.f32 %v4613_v44  ;;  %v1010_v12 = vmul.f32 %v4698_v25, %v4647_v61  ;;  %v1444_v46 = vadd.f32 0.112945676, %v1443_v10  ;;  %v1480_v8 = vadd.f32 0.001143296, %v1479_v53 }
 0x1a5   :  { %v972_v39 = vmul.f32 %v4660_v20, %v971_v41  ;;  %v1033_v56 = vadd.f32 0.05243302, %v1032_v13  ;;  %v1392_v40 = vmul.f32 %v1391_v19, %v4569_v30  ;;  %v4732_v21 = vmul.f32 0.70710677, %v4702_v27 }
 0x1a6   :  { %3193 = vrcp.f32 %v4704_v23  ;;  %v1430_v58 = vmul.f32 %v1429_v54, %v4626_v7  ;;  %v1481_v34 = vmul.f32 %v1480_v8, %v4685_v43  ;;  %v4738_v48 = vmul.f32 0.70710677, %v4710_v35 }
 0x1a7   :  { %v942_v36 = vsel %vm4679_vm2, %v941_v26, %v937_v49  ;;  %v997_v42 = vadd.f32 1.1283791, %v996_v22  ;;  %v1407_v10 = vmul.f32 %v1406_v11, %v4569_v30  ;;  %v1506_v53 = vmul.f32 %v4732_v21, %v4732_v21 }
 0x1a8   :  { %vm975_vm6 = vweird.f32 %v4660_v20  ;;  %v1011_v41 = vsub.f32 1.0, %v1010_v12  ;;  %v1018_v13 = vand.u32 2147483647, %v4647_v61  ;;  %v1445_v19 = vmul.f32 %v1444_v46, %v4626_v7 }
 0x1a9   :  { %vm4748_vm7 = vcmp.eq.f32.partialorder %v978_v24, 8.507059e+37  ;;  %v1020_v29 = vand.u32 2147483648, %v4647_v61  ;;  %v1034_v26 = vmul.f32 %v1033_v56, %v4509_v14  ;;  %v1482_v52 = vadd.f32 0.014752088, %v1481_v34  ;;  %vm4776_vm8 = vmor %vm974_vm5, %vm975_vm6 }
 0x1aa   :  { %v4754_v22 = vmin.f32 %v1506_v53, 16.0  ;;  %v973_v11 = vadd.f32 %v4660_v20, %v972_v39  ;;  %v1393_v49 = vadd.f32 0.05243302, %v1392_v40  ;;  %v1431_v8 = vadd.f32 0.0036580483, %v1430_v58 }
 0x1ab   :  { %v1866_v12 = vmul.f32 %v4738_v48, %v4738_v48  ;;  %v981_v18 = vor.u32 1.1754944e-38, %v980_v31  ;;  %v4760_v24 = vmul.f32 %v997_v42, %v4422_v9  ;;  %v4762_v46 = vadd.f32 1.0, %v1407_v10 }
 0x1ac   :  { %v1468_v33 = vmul.f32 2.1237322e-06, %v4685_v43  ;;  %v4765_v15 = vpop.eup %3193  ;;  %v4768_v56 = vmul.f32 %v942_v36, %v4669_v59  ;;  %v1012_v39 = vmul.f32 %v4698_v25, %v1011_v41  ;;  %v1446_v40 = vadd.f32 0.4994258, %v1445_v19  ;;  %v470_v36 = vpop.f32.mrf.mxu1 }
 0x1ad   :  { %v1519_v58 = vmul.f32 3.8918573e-05, %v4754_v22  ;;  %vm1014_vm9 = vweird.f32 %v4647_v61  ;;  %v1035_v31 = vadd.f32 0.18741608, %v1034_v26  ;;  %v1483_v34 = vmul.f32 %v1482_v52, %v4685_v43 }
 0x1ae   :  { %v4782_v59 = vmin.f32 %v1866_v12, 16.0  ;;  %v977_v42 = vsel %vm4776_vm8, %v4660_v20, %v973_v11  ;;  %vm4787_vm10 = vcmp.eq.f32.partialorder %v1018_v13, 8.507059e+37  ;;  %v1021_v44 = vor.u32 1.1754944e-38, %v1020_v29 }
 0x1af   :  { %v1394_v53 = vmul.f32 %v1393_v49, %v4569_v30  ;;  %v1432_v41 = vmul.f32 %v1431_v8, %v4626_v7  ;;  %v1050_v19 = vmul.f32 %v4765_v15, %v4704_v23  ;;  %3195 = vrcp.f32 %v4762_v46 }
 0x1b0   :  { %v1469_v26 = vadd.f32 0.00028619796, %v1468_v33  ;;  %v1520_v52 = vadd.f32 0.001143296, %v1519_v58  ;;  %v1013_v12 = vadd.f32 %v4698_v25, %v1012_v39  ;;  %vm1015_vm11 = vweird.f32 %v4698_v25 }
 0x1b1   :  { %v1447_v20 = vmul.f32 %v1446_v40, %v4626_v7  ;;  %v4800_v13 = vadd.f32 %v470_v36, %v3860_v60  ;;  %v1036_v29 = vmul.f32 %v1035_v31, %v4509_v14  ;;  %v1484_v11 = vadd.f32 0.112945676, %v1483_v34  ;;  %vm4812_vm12 = vmor %vm1014_vm9, %vm1015_vm11 }
 0x1b2   :  { %v1521_v49 = vmul.f32 %v1520_v52, %v4754_v22  ;;  %v1879_v8 = vmul.f32 3.8918573e-05, %v4782_v59  ;;  %v982_v33 = vsel %vm4748_vm7, %v981_v18, %v977_v42  ;;  %v1395_v58 = vadd.f32 0.18741608, %v1394_v53 }
 0x1b3   :  { %v1433_v9 = vadd.f32 0.05243302, %v1432_v41  ;;  %v4808_v39 = vmul.f32 0.5, %v4622_v32  ;;  %v1051_v14 = vsub.f32 1.0, %v1050_v19  ;;  %v1470_v31 = vmul.f32 %v1469_v26, %v4685_v43 }
 0x1b4   :  { %v1522_v34 = vadd.f32 0.014752088, %v1521_v49  ;;  %v1880_v36 = vadd.f32 0.001143296, %v1879_v8  ;;  %v1017_v18 = vsel %vm4812_vm12, %v4698_v25, %v1013_v12  ;;  %v4820_v54 = vadd.f32 1.0, %v1447_v20 }
 0x1b5   :  { %6506 = vst [vmem:[#allocation27_spill] sm:$0xff] %v4808_v39  ;;  %v1508_v32 = vmul.f32 2.1237322e-06, %v4754_v22  ;;  %v4824_v42 = vmul.f32 0.70710677, %v4800_v13  ;;  %v4826_v61 = vpop.eup %3195  ;;  %v4829_v53 = vmul.f32 %v982_v33, %v4694_v4  ;;  %v1060_v19 = vand.u32 2147483648, %v4704_v23 }
 0x1b6   :  { %v1037_v41 = vadd.f32 1.1283791, %v1036_v29  ;;  %v1485_v26 = vmul.f32 %v1484_v11, %v4685_v43  ;;  %v1058_v52 = vand.u32 2147483647, %v4704_v23  ;;  %v1396_v25 = vmul.f32 %v1395_v58, %v4569_v30 }
 0x1b7   :  { %6509 = vst [vmem:[#allocation28_spill] sm:$0xff] %v4829_v53  ;;  %v1434_v12 = vmul.f32 %v1433_v9, %v4626_v7  ;;  %v1523_v20 = vmul.f32 %v1522_v34, %v4754_v22  ;;  %v1022_v49 = vsel %vm4787_vm10, %v1021_v44, %v1017_v18  ;;  %v1052_v8 = vmul.f32 %v4765_v15, %v1051_v14  ;;  %v499_v34 = vpop.f32.mrf.mxu2 }
 0x1b8   :  { %v1471_v4 = vadd.f32 0.0036580483, %v1470_v31  ;;  %v1881_v29 = vmul.f32 %v1880_v36, %v4782_v59  ;;  %v1410_v33 = vmul.f32 %v4826_v61, %v4762_v46  ;;  %3197 = vrcp.f32 %v4820_v54 }
 0x1b9   :  { %v1509_v11 = vadd.f32 0.00028619796, %v1508_v32  ;;  %v1906_v30 = vmul.f32 %v4824_v42, %v4824_v42  ;;  %v4847_v58 = vmul.f32 %v1037_v41, %v4478_v28  ;;  %v1061_v9 = vor.u32 1.1754944e-38, %v1060_v19 }
 0x1ba   :  { %v1486_v10 = vadd.f32 0.4994258, %v1485_v26  ;;  %v1868_v44 = vmul.f32 2.1237322e-06, %v4782_v59  ;;  %vm1054_vm13 = vweird.f32 %v4704_v23  ;;  %v1397_v40 = vadd.f32 1.1283791, %v1396_v25 }
 0x1bb   :  { %v1435_v14 = vadd.f32 0.18741608, %v1434_v12  ;;  %v1524_v31 = vadd.f32 0.112945676, %v1523_v20  ;;  %v4852_v36 = vmul.f32 %v1022_v49, %v4760_v24  ;;  %vm1055_vm14 = vweird.f32 %v4765_v15 }
 0x1bc   :  { %vm4855_vm15 = vcmp.eq.f32.partialorder %v1058_v52, 8.507059e+37  ;;  %v1472_v28 = vmul.f32 %v1471_v4, %v4685_v43  ;;  %v1882_v32 = vadd.f32 0.014752088, %v1881_v29  ;;  %v1053_v41 = vadd.f32 %v4765_v15, %v1052_v8  ;;  %vm4883_vm0 = vmor %vm1054_vm13, %vm1055_vm14 }
 0x1bd   :  { %6510 = vst [vmem:[#allocation29_spill] sm:$0xff] %v4852_v36  ;;  %v1411_v19 = vsub.f32 1.0, %v1410_v33  ;;  %v1510_v26 = vmul.f32 %v1509_v11, %v4754_v22  ;;  %v4862_v25 = vmin.f32 %v1906_v30, 16.0  ;;  %v1487_v12 = vmul.f32 %v1486_v10, %v4685_v43 }
 0x1be   :  { %v4866_v24 = vmul.f32 0.5, %v4702_v27  ;;  %v1869_v20 = vadd.f32 0.00028619796, %v1868_v44  ;;  %v4869_v52 = vadd.f32 %v499_v34, %v3860_v60  ;;  %v4871_v49 = vpop.eup %3197  ;;  %v4874_v4 = vmul.f32 %v1397_v40, %v4544_v1 }
 0x1bf   :  { %v1420_v8 = vand.u32 2147483648, %v4762_v46  ;;  %v1436_v29 = vmul.f32 %v1435_v14, %v4626_v7  ;;  %v1525_v33 = vmul.f32 %v1524_v31, %v4754_v22  ;;  %vm1414_vm1 = vweird.f32 %v4762_v46 }
 0x1c0   :  { %6513 = vst [vmem:[#allocation30_spill] sm:$0xff] %v4866_v24  ;;  %v1418_v11 = vand.u32 2147483647, %v4762_v46  ;;  %v1473_v1 = vadd.f32 0.05243302, %v1472_v28  ;;  %v4890_v30 = vmul.f32 0.5, %v4710_v35  ;;  %v1883_v7 = vmul.f32 %v1882_v32, %v4782_v59 }
 0x1c1   :  { %v1057_v10 = vsel %vm4883_vm0, %v4765_v15, %v1053_v41  ;;  %v1412_v23 = vmul.f32 %v4826_v61, %v1411_v19  ;;  %v1511_v44 = vadd.f32 0.0036580483, %v1510_v26  ;;  %v1919_v40 = vmul.f32 3.8918573e-05, %v4862_v25 }
 0x1c2   :  { %6516 = vst [vmem:[#allocation31_spill] sm:$0xff] %v4890_v30  ;;  %v1450_v14 = vmul.f32 %v4871_v49, %v4820_v54  ;;  %v4900_v31 = vadd.f32 1.0, %v1487_v12  ;;  %v1870_v34 = vmul.f32 %v1869_v20, %v4782_v59  ;;  %v4904_v35 = vmul.f32 0.70710677, %v4869_v52 }
 0x1c3   :  { %v1421_v28 = vor.u32 1.1754944e-38, %v1420_v8  ;;  %v1437_v32 = vadd.f32 1.1283791, %v1436_v29  ;;  %v1526_v24 = vadd.f32 0.4994258, %v1525_v33  ;;  %v4907_v15 = vmul.f32 0.5, %v4800_v13  ;;  %v528_v33 = vpop.f32.mrf.mxu3 }
 0x1c4   :  { %vm1415_vm2 = vweird.f32 %v4826_v61  ;;  %vm4910_vm3 = vcmp.eq.f32.partialorder %v1418_v11, 8.507059e+37  ;;  %v1474_v19 = vmul.f32 %v1473_v1, %v4685_v43  ;;  %v1884_v26 = vadd.f32 0.112945676, %v1883_v7 }
 0x1c5   :  { %6517 = vst [vmem:[#allocation32_spill] sm:$0xff] %v4907_v15  ;;  %v1908_v12 = vmul.f32 2.1237322e-06, %v4862_v25  ;;  %v1062_v20 = vsel %vm4855_vm15, %v1061_v9, %v1057_v10  ;;  %v1512_v8 = vmul.f32 %v1511_v44, %v4754_v22  ;;  %v1920_v29 = vadd.f32 0.001143296, %v1919_v40  ;;  %vm4941_vm4 = vmor %vm1414_vm1, %vm1415_vm2 }
 0x1c6   :  { %v1946_v13 = vmul.f32 %v4904_v35, %v4904_v35  ;;  %v1413_v27 = vadd.f32 %v4826_v61, %v1412_v23  ;;  %v1451_v11 = vsub.f32 1.0, %v1450_v14  ;;  %3199 = vrcp.f32 %v4900_v31  ;;  %v444_v23 = vpop.f32.mrf.mxu0 }
 0x1c7   :  { %v1871_v39 = vadd.f32 0.0036580483, %v1870_v34  ;;  %v4924_v1 = vmul.f32 %v1437_v32, %v4578_v47  ;;  %v1527_v7 = vmul.f32 %v1526_v24, %v4754_v22  ;;  %v1921_v9 = vmul.f32 %v1920_v29, %v4862_v25 }
 0x1c8   :  { %v4928_v18 = vmin.f32 %v1946_v13, 16.0  ;;  %v1475_v10 = vadd.f32 0.18741608, %v1474_v19  ;;  %v1885_v44 = vmul.f32 %v1884_v26, %v4782_v59  ;;  %v1909_v40 = vadd.f32 0.00028619796, %v1908_v12 }
 0x1c9   :  { %v4932_v36 = vadd.f32 %v528_v33, %v3860_v60  ;;  %v4935_v14 = vmul.f32 %v1062_v20, %v4847_v58  ;;  %vm1454_vm5 = vweird.f32 %v4820_v54  ;;  %v1513_v24 = vadd.f32 0.05243302, %v1512_v8 }
 0x1ca   :  { %v1922_v34 = vadd.f32 0.014752088, %v1921_v9  ;;  %v1417_v32 = vsel %vm4941_vm4, %v4826_v61, %v1413_v27  ;;  %v1452_v19 = vmul.f32 %v4871_v49, %v1451_v11  ;;  %v1458_v58 = vand.u32 2147483647, %v4820_v54 }
 0x1cb   :  { %6520 = vst [vmem:[#allocation33_spill] sm:$0xff] %v4935_v14  ;;  %v1872_v26 = vmul.f32 %v1871_v39, %v4782_v59  ;;  %v4952_v12 = vadd.f32 1.0, %v1527_v7  ;;  %v1959_v20 = vmul.f32 3.8918573e-05, %v4928_v18  ;;  %v4957_v29 = vadd.f32 %v444_v23, %v3799_v5 }
 0x1cc   :  { %v1923_v46 = vmul.f32 %v1922_v34, %v4862_v25  ;;  %v4959_v8 = vpop.eup %3199  ;;  %v1476_v13 = vmul.f32 %v1475_v10, %v4685_v43  ;;  %v1886_v61 = vadd.f32 0.4994258, %v1885_v44  ;;  %v1910_v33 = vmul.f32 %v1909_v40, %v4862_v25 }
 0x1cd   :  { %v4964_v27 = vmul.f32 0.70710677, %v4932_v36  ;;  %v1422_v39 = vsel %vm4910_vm3, %v1421_v28, %v1417_v32  ;;  %v1460_v11 = vand.u32 2147483648, %v4820_v54  ;;  %v1514_v7 = vmul.f32 %v1513_v24, %v4754_v22 }
 0x1ce   :  { %v1960_v9 = vadd.f32 0.001143296, %v1959_v20  ;;  %v1453_v23 = vadd.f32 %v4871_v49, %v1452_v19  ;;  %vm1455_vm6 = vweird.f32 %v4871_v49  ;;  %v1924_v47 = vadd.f32 0.112945676, %v1923_v46 }
 0x1cf   :  { %v1986_v43 = vmul.f32 %v4964_v27, %v4964_v27  ;;  %v1490_v10 = vmul.f32 %v4959_v8, %v4900_v31  ;;  %3201 = vrcp.f32 %v4952_v12  ;;  %v1873_v41 = vadd.f32 0.05243302, %v1872_v26  ;;  %vm4984_vm7 = vmor %vm1454_vm5, %vm1455_vm6 }
 0x1d0   :  { %v4978_v28 = vmul.f32 0.70710677, %v4957_v29  ;;  %v1477_v44 = vadd.f32 1.1283791, %v1476_v13  ;;  %v1887_v40 = vmul.f32 %v1886_v61, %v4782_v59  ;;  %v1911_v24 = vadd.f32 0.0036580483, %v1910_v33 }
 0x1d1   :  { %v1961_v34 = vmul.f32 %v1960_v9, %v4928_v18  ;;  %vm4988_vm8 = vcmp.eq.f32.partialorder %v1458_v58, 8.507059e+37  ;;  %v1461_v26 = vor.u32 1.1754944e-38, %v1460_v11  ;;  %v1515_v46 = vadd.f32 0.18741608, %v1514_v7 }
 0x1d2   :  { %v4992_v20 = vmin.f32 %v1986_v43, 16.0  ;;  %v1457_v13 = vsel %vm4984_vm7, %v4871_v49, %v1453_v23  ;;  %v1925_v61 = vmul.f32 %v1924_v47, %v4862_v25  ;;  %v1948_v54 = vmul.f32 2.1237322e-06, %v4928_v18  ;;  %v473_v47 = vpop.f32.mrf.mxu1 }
 0x1d3   :  { %v1962_v33 = vadd.f32 0.014752088, %v1961_v34  ;;  %v5000_v9 = vmul.f32 %v1422_v39, %v4874_v4  ;;  %v1491_v58 = vsub.f32 1.0, %v1490_v10  ;;  %v1874_v14 = vmul.f32 %v1873_v41, %v4782_v59 }
 0x1d4   :  { %v2346_v11 = vmul.f32 %v4978_v28, %v4978_v28  ;;  %v5006_v7 = vmul.f32 %v1477_v44, %v4645_v3  ;;  %v5008_v43 = vadd.f32 1.0, %v1887_v40  ;;  %v1912_v49 = vmul.f32 %v1911_v24, %v4862_v25 }
 0x1d5   :  { %6527 = vst [vmem:[#allocation34_spill] sm:$0xff] %v5000_v9  ;;  %v1963_v23 = vmul.f32 %v1962_v33, %v4928_v18  ;;  %v5012_v34 = vpop.eup %3201  ;;  %v1462_v4 = vsel %vm4988_vm8, %v1461_v26, %v1457_v13  ;;  %v1498_v39 = vand.u32 2147483647, %v4900_v31  ;;  %v1500_v10 = vand.u32 2147483648, %v4900_v31 }
 0x1d6   :  { %v1999_v41 = vmul.f32 3.8918573e-05, %v4992_v20  ;;  %vm1494_vm9 = vweird.f32 %v4900_v31  ;;  %v1516_v3 = vmul.f32 %v1515_v46, %v4754_v22  ;;  %v1926_v44 = vadd.f32 0.4994258, %v1925_v61 }
 0x1d7   :  { %v1949_v40 = vadd.f32 0.00028619796, %v1948_v54  ;;  %v1964_v24 = vadd.f32 0.112945676, %v1963_v23  ;;  %v1492_v32 = vmul.f32 %v4959_v8, %v1491_v58  ;;  %v1875_v33 = vadd.f32 0.18741608, %v1874_v14 }
 0x1d8   :  { %v5022_v6 = vmin.f32 %v2346_v11, 16.0  ;;  %v5025_v19 = vadd.f32 %v473_v47, %v3799_v5  ;;  %v1530_v26 = vmul.f32 %v5012_v34, %v4952_v12  ;;  %3203 = vrcp.f32 %v5008_v43 }
 0x1d9   :  { %v1913_v13 = vadd.f32 0.05243302, %v1912_v49  ;;  %v1988_v53 = vmul.f32 2.1237322e-06, %v4992_v20  ;;  %v5032_v22 = vmul.f32 %v1462_v4, %v4924_v1  ;;  %vm1495_vm10 = vweird.f32 %v4959_v8 }
 0x1da   :  { %v1501_v46 = vor.u32 1.1754944e-38, %v1500_v10  ;;  %v2000_v14 = vadd.f32 0.001143296, %v1999_v41  ;;  %vm5035_vm11 = vcmp.eq.f32.partialorder %v1498_v39, 8.507059e+37  ;;  %v1517_v54 = vadd.f32 1.1283791, %v1516_v3  ;;  %vm5066_vm12 = vmor %vm1494_vm9, %vm1495_vm10 }
 0x1db   :  { %6528 = vst [vmem:[#allocation35_spill] sm:$0xff] %v5032_v22  ;;  %v1927_v58 = vmul.f32 %v1926_v44, %v4862_v25  ;;  %v1950_v11 = vmul.f32 %v1949_v40, %v4928_v18  ;;  %v1965_v49 = vmul.f32 %v1964_v24, %v4928_v18  ;;  %v1876_v23 = vmul.f32 %v1875_v33, %v4782_v59 }
 0x1dc   :  { %v2001_v1 = vmul.f32 %v2000_v14, %v4992_v20  ;;  %v2359_v47 = vmul.f32 3.8918573e-05, %v5022_v6  ;;  %v5046_v4 = vmul.f32 0.70710677, %v5025_v19  ;;  %v1493_v39 = vadd.f32 %v4959_v8, %v1492_v32 }
 0x1dd   :  { %v1531_v10 = vsub.f32 1.0, %v1530_v26  ;;  %v1914_v41 = vmul.f32 %v1913_v13, %v4862_v25  ;;  %v1989_v3 = vadd.f32 0.00028619796, %v1988_v53  ;;  %v5051_v44 = vmul.f32 0.5, %v4869_v52 }
 0x1de   :  { %v2002_v40 = vadd.f32 0.014752088, %v2001_v1  ;;  %v2360_v24 = vadd.f32 0.001143296, %v2359_v47  ;;  %v2386_v59 = vmul.f32 %v5046_v4, %v5046_v4  ;;  %v5055_v33 = vpop.eup %3203  ;;  %v5058_v14 = vmul.f32 %v1517_v54, %v4732_v21 }
 0x1df   :  { %6531 = vst [vmem:[#allocation36_spill] sm:$0xff] %v5051_v44  ;;  %v5060_v15 = vadd.f32 1.0, %v1927_v58  ;;  %v1951_v32 = vadd.f32 0.0036580483, %v1950_v11  ;;  %v1966_v26 = vadd.f32 0.4994258, %v1965_v49  ;;  %v1497_v54 = vsel %vm5066_vm12, %v4959_v8, %v1493_v39 }
 0x1e0   :  { %v1538_v52 = vand.u32 2147483647, %v4952_v12  ;;  %v1540_v13 = vand.u32 2147483648, %v4952_v12  ;;  %v1877_v1 = vadd.f32 1.1283791, %v1876_v23  ;;  %v2361_v21 = vmul.f32 %v2360_v24, %v5022_v6 }
 0x1e1   :  { %v1532_v58 = vmul.f32 %v5012_v34, %v1531_v10  ;;  %v1915_v11 = vadd.f32 0.18741608, %v1914_v41  ;;  %v1990_v31 = vmul.f32 %v1989_v3, %v4992_v20  ;;  %v1890_v49 = vmul.f32 %v5055_v33, %v5008_v43 }
 0x1e2   :  { %v2003_v47 = vmul.f32 %v2002_v40, %v4992_v20  ;;  %v2348_v44 = vmul.f32 2.1237322e-06, %v5022_v6  ;;  %v5082_v37 = vmin.f32 %v2386_v59, 16.0  ;;  %3205 = vrcp.f32 %v5060_v15 }
 0x1e3   :  { %v1952_v23 = vmul.f32 %v1951_v32, %v4928_v18  ;;  %v1967_v8 = vmul.f32 %v1966_v26, %v4928_v18  ;;  %v2362_v39 = vadd.f32 0.014752088, %v2361_v21  ;;  %v1502_v10 = vsel %vm5035_vm11, %v1501_v46, %v1497_v54  ;;  %v502_v26 = vpop.f32.mrf.mxu2 }
 0x1e4   :  { %vm1534_vm13 = vweird.f32 %v4952_v12  ;;  %v1541_v41 = vor.u32 1.1754944e-38, %v1540_v13  ;;  %v5091_v3 = vmul.f32 %v1877_v1, %v4738_v48  ;;  %vm1535_vm14 = vweird.f32 %v5012_v34 }
 0x1e5   :  { %vm5094_vm15 = vcmp.eq.f32.partialorder %v1538_v52, 8.507059e+37  ;;  %v1991_v24 = vadd.f32 0.0036580483, %v1990_v31  ;;  %v2363_v59 = vmul.f32 %v2362_v39, %v5022_v6  ;;  %v2399_v32 = vmul.f32 3.8918573e-05, %v5082_v37  ;;  %vm5123_vm1 = vmor %vm1534_vm13, %vm1535_vm14 }
 0x1e6   :  { %v1533_v46 = vadd.f32 %v5012_v34, %v1532_v58  ;;  %v1916_v61 = vmul.f32 %v1915_v11, %v4862_v25  ;;  %v2004_v53 = vadd.f32 0.112945676, %v2003_v47  ;;  %v2349_v13 = vadd.f32 0.00028619796, %v2348_v44 }
 0x1e7   :  { %v1891_v48 = vsub.f32 1.0, %v1890_v49  ;;  %v1953_v1 = vadd.f32 0.05243302, %v1952_v23  ;;  %v5102_v21 = vadd.f32 1.0, %v1967_v8  ;;  %v2400_v52 = vadd.f32 0.001143296, %v2399_v32 }
 0x1e8   :  { %v5105_v54 = vmul.f32 %v1502_v10, %v5006_v7  ;;  %v5108_v31 = vmul.f32 0.5, %v4932_v36  ;;  %v2364_v39 = vadd.f32 0.112945676, %v2363_v59  ;;  %v5111_v30 = vadd.f32 %v502_v26, %v3799_v5  ;;  %v5113_v58 = vpop.eup %3205 }
 0x1e9   :  { %vm1894_vm0 = vweird.f32 %v5008_v43  ;;  %v1898_v25 = vand.u32 2147483647, %v5008_v43  ;;  %v1900_v44 = vand.u32 2147483648, %v5008_v43  ;;  %v1992_v11 = vmul.f32 %v1991_v24, %v4992_v20 }
 0x1ea   :  { %6536 = vst [vmem:[#allocation37_spill] sm:$0xff] %v5105_v54  ;;  %v1917_v7 = vadd.f32 1.1283791, %v1916_v61  ;;  %v2005_v49 = vmul.f32 %v2004_v53, %v4992_v20  ;;  %v2350_v47 = vmul.f32 %v2349_v13, %v5022_v6  ;;  %v2401_v23 = vmul.f32 %v2400_v52, %v5082_v37  ;;  %v531_v61 = vpop.f32.mrf.mxu3 }
 0x1eb   :  { %6537 = vst [vmem:[#allocation38_spill] sm:$0xff] %v5108_v31  ;;  %v1537_v8 = vsel %vm5123_vm1, %v5012_v34, %v1533_v46  ;;  %v1892_v10 = vmul.f32 %v5055_v33, %v1891_v48  ;;  %v1954_v24 = vmul.f32 %v1953_v1, %v4928_v18  ;;  %3207 = vrcp.f32 %v5102_v21 }
 0x1ec   :  { %v1930_v12 = vmul.f32 %v5113_v58, %v5060_v15  ;;  %v2365_v59 = vmul.f32 %v2364_v39, %v5022_v6  ;;  %v2402_v32 = vadd.f32 0.014752088, %v2401_v23  ;;  %v5140_v26 = vmul.f32 0.70710677, %v5111_v30 }
 0x1ed   :  { %vm5142_vm2 = vcmp.eq.f32.partialorder %v1898_v25, 8.507059e+37  ;;  %v1901_v34 = vor.u32 1.1754944e-38, %v1900_v44  ;;  %v1993_v46 = vadd.f32 0.05243302, %v1992_v11  ;;  %v5147_v13 = vmul.f32 0.5, %v4957_v29 }
 0x1ee   :  { %v2388_v48 = vmul.f32 2.1237322e-06, %v5082_v37  ;;  %v1542_v1 = vsel %vm5094_vm15, %v1541_v41, %v1537_v8  ;;  %vm1895_vm3 = vweird.f32 %v5055_v33  ;;  %v2006_v52 = vadd.f32 0.4994258, %v2005_v49 }
 0x1ef   :  { %v2351_v39 = vadd.f32 0.0036580483, %v2350_v47  ;;  %v1893_v36 = vadd.f32 %v5055_v33, %v1892_v10  ;;  %v2403_v25 = vmul.f32 %v2402_v32, %v5082_v37  ;;  %v2426_v44 = vmul.f32 %v5140_v26, %v5140_v26  ;;  %vm5175_vm4 = vmor %vm1894_vm0, %vm1895_vm3 }
 0x1f0   :  { %v5158_v11 = vadd.f32 %v531_v61, %v3799_v5  ;;  %v5161_v29 = vmul.f32 %v1917_v7, %v4824_v42  ;;  %v1931_v23 = vsub.f32 1.0, %v1930_v12  ;;  %v1955_v40 = vadd.f32 0.18741608, %v1954_v24 }
 0x1f1   :  { %v2366_v41 = vadd.f32 0.4994258, %v2365_v59  ;;  %v5163_v8 = vpop.eup %3207  ;;  %v1994_v49 = vmul.f32 %v1993_v46, %v4992_v20  ;;  %v2389_v47 = vadd.f32 0.00028619796, %v2388_v48  ;;  %v2404_v10 = vadd.f32 0.112945676, %v2403_v25 }
 0x1f2   :  { %v5166_v54 = vmin.f32 %v2426_v44, 16.0  ;;  %v5169_v32 = vmul.f32 %v1542_v1, %v5058_v14  ;;  %v2007_v7 = vmul.f32 %v2006_v52, %v4992_v20  ;;  %v2352_v24 = vmul.f32 %v2351_v39, %v5022_v6 }
 0x1f3   :  { %v5182_v12 = vmul.f32 0.5, %v5025_v19  ;;  %v1897_v14 = vsel %vm5175_vm4, %v5055_v33, %v1893_v36  ;;  %vm1934_vm5 = vweird.f32 %v5060_v15  ;;  %v2405_v59 = vmul.f32 %v2404_v10, %v5082_v37 }
 0x1f4   :  { %6542 = vst [vmem:[#allocation39_spill] sm:$0xff] %v5169_v32  ;;  %v5190_v43 = vmul.f32 0.70710677, %v5158_v11  ;;  %v1932_v61 = vmul.f32 %v5113_v58, %v1931_v23  ;;  %v1970_v46 = vmul.f32 %v5163_v8, %v5102_v21  ;;  %v2367_v48 = vmul.f32 %v2366_v41, %v5022_v6 }
 0x1f5   :  { %v2439_v19 = vmul.f32 3.8918573e-05, %v5166_v54  ;;  %v1956_v1 = vmul.f32 %v1955_v40, %v4928_v18  ;;  %v1995_v52 = vadd.f32 0.18741608, %v1994_v49  ;;  %v2390_v33 = vmul.f32 %v2389_v47, %v5082_v37 }
 0x1f6   :  { %v2406_v39 = vadd.f32 0.4994258, %v2405_v59  ;;  %v1902_v36 = vsel %vm5142_vm2, %v1901_v34, %v1897_v14  ;;  %v5201_v25 = vadd.f32 1.0, %v2007_v7  ;;  %v2353_v44 = vadd.f32 0.05243302, %v2352_v24  ;;  %v551_v14 = vpop.f32.mrf.mxu0 }
 0x1f7   :  { %v2440_v23 = vadd.f32 0.001143296, %v2439_v19  ;;  %vm1935_vm6 = vweird.f32 %v5113_v58  ;;  %v1938_v10 = vand.u32 2147483647, %v5060_v15  ;;  %v1940_v41 = vand.u32 2147483648, %v5060_v15 }
 0x1f8   :  { %v2466_v18 = vmul.f32 %v5190_v43, %v5190_v43  ;;  %v1933_v40 = vadd.f32 %v5113_v58, %v1932_v61  ;;  %v1971_v49 = vsub.f32 1.0, %v1970_v46  ;;  %v5209_v47 = vadd.f32 1.0, %v2367_v48  ;;  %vm5223_vm7 = vmor %vm1934_vm5, %vm1935_vm6 }
 0x1f9   :  { %v2441_v53 = vmul.f32 %v2440_v23, %v5166_v54  ;;  %v5213_v34 = vmul.f32 %v1902_v36, %v5091_v3  ;;  %v1957_v42 = vadd.f32 1.1283791, %v1956_v1  ;;  %v2391_v7 = vadd.f32 0.0036580483, %v2390_v33 }
 0x1fa   :  { %v2407_v24 = vmul.f32 %v2406_v39, %v5082_v37  ;;  %v1996_v59 = vmul.f32 %v1995_v52, %v4992_v20  ;;  %3209 = vrcp.f32 %v5201_v25  ;;  %v2354_v19 = vmul.f32 %v2353_v44, %v5022_v6 }
 0x1fb   :  { %6545 = vst [vmem:[#allocation40_spill] sm:$0xff] %v5213_v34  ;;  %v2442_v61 = vadd.f32 0.014752088, %v2441_v53  ;;  %vm5227_vm8 = vcmp.eq.f32.partialorder %v1938_v10, 8.507059e+37  ;;  %v1978_v48 = vand.u32 2147483647, %v5102_v21  ;;  %v1937_v52 = vsel %vm5223_vm7, %v5113_v58, %v1933_v40 }
 0x1fc   :  { %v1980_v20 = vand.u32 2147483648, %v5102_v21  ;;  %v5233_v1 = vmin.f32 %v2466_v18, 16.0  ;;  %v1972_v15 = vmul.f32 %v5163_v8, %v1971_v49  ;;  %3211 = vrcp.f32 %v5209_v47 }
 0x1fd   :  { %v5241_v33 = vadd.f32 %v551_v14, %v3680_v63  ;;  %v1941_v39 = vor.u32 1.1754944e-38, %v1940_v41  ;;  %v2392_v36 = vmul.f32 %v2391_v7, %v5082_v37  ;;  %v5244_v44 = vadd.f32 1.0, %v2407_v24  ;;  %v580_v24 = vpop.f32.mrf.mxu1 }
 0x1fe   :  { %v2443_v23 = vmul.f32 %v2442_v61, %v5166_v54  ;;  %v1958_v10 = vmul.f32 %v1957_v42, %v4904_v35  ;;  %vm1974_vm9 = vweird.f32 %v5102_v21  ;;  %v1997_v18 = vadd.f32 1.1283791, %v1996_v59 }
 0x1ff   :  { %v2355_v58 = vadd.f32 0.18741608, %v2354_v19  ;;  %v1942_v40 = vsel %vm5227_vm8, %v1941_v39, %v1937_v52  ;;  %vm5251_vm10 = vcmp.eq.f32.partialorder %v1978_v48, 8.507059e+37  ;;  %v2428_v41 = vmul.f32 2.1237322e-06, %v5166_v54 }
 0x200   :  { %v2444_v53 = vadd.f32 0.112945676, %v2443_v23  ;;  %v2479_v7 = vmul.f32 3.8918573e-05, %v5233_v1  ;;  %v5257_v14 = vpop.eup %3209  ;;  %v1973_v35 = vadd.f32 %v5163_v8, %v1972_v15  ;;  %vm1975_vm11 = vweird.f32 %v5163_v8 }
 0x201   :  { %v1981_v42 = vor.u32 1.1754944e-38, %v1980_v20  ;;  %v5262_v59 = vmul.f32 0.70710677, %v5241_v33  ;;  %v2393_v19 = vadd.f32 0.05243302, %v2392_v36  ;;  %3213 = vrcp.f32 %v5244_v44  ;;  %vm5280_vm12 = vmor %vm1974_vm9, %vm1975_vm11 }
 0x202   :  { %v2445_v61 = vmul.f32 %v2444_v53, %v5166_v54  ;;  %v2480_v46 = vadd.f32 0.001143296, %v2479_v7  ;;  %v5266_v3 = vpop.eup %3211  ;;  %v5269_v48 = vmul.f32 %v1942_v40, %v5161_v29  ;;  %v5272_v52 = vmul.f32 %v1997_v18, %v4964_v27 }
 0x203   :  { %v2356_v15 = vmul.f32 %v2355_v58, %v5022_v6  ;;  %v5276_v20 = vadd.f32 %v580_v24, %v3680_v63  ;;  %v2010_v36 = vmul.f32 %v5257_v14, %v5201_v25  ;;  %v2429_v23 = vadd.f32 0.00028619796, %v2428_v41 }
 0x204   :  { %6552 = vst [vmem:[#allocation41_spill] sm:$0xff] %v5269_v48  ;;  %v2446_v29 = vadd.f32 0.4994258, %v2445_v61  ;;  %v2481_v40 = vmul.f32 %v2480_v46, %v5233_v1  ;;  %v1977_v6 = vsel %vm5280_vm12, %v5163_v8, %v1973_v35  ;;  %v5291_v27 = vmul.f32 0.5, %v5111_v30 }
 0x205   :  { %v2468_v21 = vmul.f32 2.1237322e-06, %v5233_v1  ;;  %v1066_v18 = vmul.f32 %v5262_v59, %v5262_v59  ;;  %v2370_v58 = vmul.f32 %v5266_v3, %v5209_v47  ;;  %v2394_v41 = vmul.f32 %v2393_v19, %v5082_v37 }
 0x206   :  { %v2447_v53 = vmul.f32 %v2446_v29, %v5166_v54  ;;  %v2482_v7 = vadd.f32 0.014752088, %v2481_v40  ;;  %v2020_v24 = vand.u32 2147483648, %v5201_v25  ;;  %v5302_v8 = vmul.f32 0.5, %v5158_v11 }
 0x207   :  { %v5304_v30 = vmin.f32 %v1066_v18, 16.0  ;;  %v5307_v35 = vmul.f32 0.70710677, %v5276_v20  ;;  %v5309_v61 = vpop.eup %3213  ;;  %v2011_v46 = vsub.f32 1.0, %v2010_v36  ;;  %v2357_v39 = vadd.f32 1.1283791, %v2356_v15 }
 0x208   :  { %v2430_v32 = vmul.f32 %v2429_v23, %v5166_v54  ;;  %v2483_v19 = vmul.f32 %v2482_v7, %v5233_v1  ;;  %v1982_v29 = vsel %vm5251_vm10, %v1981_v42, %v1977_v6  ;;  %v5315_v40 = vadd.f32 1.0, %v2447_v53 }
 0x209   :  { %v2469_v11 = vadd.f32 0.00028619796, %v2468_v21  ;;  %v1079_v18 = vmul.f32 3.8918573e-05, %v5304_v30  ;;  %vm2014_vm13 = vweird.f32 %v5201_v25  ;;  %v2018_v31 = vand.u32 2147483647, %v5201_v25 }
 0x20a   :  { %v2371_v62 = vsub.f32 1.0, %v2370_v58  ;;  %v2395_v48 = vadd.f32 0.18741608, %v2394_v41  ;;  %v5320_v36 = vor.u32 1.1754944e-38, %v2020_v24  ;;  %v2410_v15 = vmul.f32 %v5309_v61, %v5244_v44 }
 0x20b   :  { %v2484_v23 = vadd.f32 0.112945676, %v2483_v19  ;;  %v1106_v49 = vmul.f32 %v5307_v35, %v5307_v35  ;;  %v5326_v42 = vmul.f32 %v1982_v29, %v1958_v10  ;;  %v2012_v6 = vmul.f32 %v5257_v14, %v2011_v46  ;;  %v609_v46 = vpop.f32.mrf.mxu2 }
 0x20c   :  { %v2431_v21 = vadd.f32 0.0036580483, %v2430_v32  ;;  %v1080_v53 = vadd.f32 0.001143296, %v1079_v18  ;;  %v5330_v7 = vmul.f32 %v2357_v39, %v4978_v28  ;;  %v2378_v58 = vand.u32 2147483647, %v5209_v47 }
 0x20d   :  { %6555 = vst [vmem:[#allocation42_spill] sm:$0xff] %v5326_v42  ;;  %3215 = vrcp.f32 %v5315_v40  ;;  %v2470_v41 = vmul.f32 %v2469_v11, %v5233_v1  ;;  %v2372_v24 = vmul.f32 %v5266_v3, %v2371_v62  ;;  %v2380_v19 = vand.u32 2147483648, %v5209_v47 }
 0x20e   :  { %v2396_v10 = vmul.f32 %v2395_v48, %v5082_v37  ;;  %v1081_v29 = vmul.f32 %v1080_v53, %v5304_v30  ;;  %vm2374_vm14 = vweird.f32 %v5209_v47  ;;  %v2411_v32 = vsub.f32 1.0, %v2410_v15 }
 0x20f   :  { %v2485_v28 = vmul.f32 %v2484_v23, %v5233_v1  ;;  %v5341_v39 = vmin.f32 %v1106_v49, 16.0  ;;  %v2013_v18 = vadd.f32 %v5257_v14, %v2012_v6  ;;  %vm2015_vm15 = vweird.f32 %v5257_v14 }
 0x210   :  { %vm5345_vm0 = vcmp.eq.f32.partialorder %v2018_v31, 8.507059e+37  ;;  %v2432_v37 = vmul.f32 %v2431_v21, %v5166_v54  ;;  %v1082_v48 = vadd.f32 0.014752088, %v1081_v29  ;;  %vm5350_vm1 = vcmp.eq.f32.partialorder %v2378_v58, 8.507059e+37  ;;  %vm5364_vm3 = vmor %vm2014_vm13, %vm2015_vm15 }
 0x211   :  { %v2471_v15 = vadd.f32 0.0036580483, %v2470_v41  ;;  %v1068_v23 = vmul.f32 2.1237322e-06, %v5304_v30  ;;  %v5356_v49 = vadd.f32 %v609_v46, %v3680_v63  ;;  %v2373_v6 = vadd.f32 %v5266_v3, %v2372_v24 }
 0x212   :  { %vm2375_vm2 = vweird.f32 %v5266_v3  ;;  %v2381_v31 = vor.u32 1.1754944e-38, %v2380_v19  ;;  %v2397_v53 = vadd.f32 1.1283791, %v2396_v10  ;;  %v2412_v58 = vmul.f32 %v5309_v61, %v2411_v32  ;;  %v638_v10 = vpop.f32.mrf.mxu3 }
 0x213   :  { %6560 = vst [vmem:[#allocation43_spill] sm:$0xff] %v5356_v49  ;;  %v5360_v42 = vpop.eup %3215  ;;  %v2486_v41 = vadd.f32 0.4994258, %v2485_v28  ;;  %v1083_v29 = vmul.f32 %v1082_v48, %v5304_v30  ;;  %v1119_v46 = vmul.f32 3.8918573e-05, %v5341_v39  ;;  %v2017_v24 = vsel %vm5364_vm3, %v5257_v14, %v2013_v18  ;;  %vm5378_vm5 = vmor %vm2374_vm14, %vm2375_vm2 }
 0x214   :  { %vm2414_vm4 = vweird.f32 %v5244_v44  ;;  %v2418_v19 = vand.u32 2147483647, %v5244_v44  ;;  %v2433_v25 = vadd.f32 0.05243302, %v2432_v37  ;;  %v2472_v32 = vmul.f32 %v2471_v15, %v5233_v1 }
 0x215   :  { %v1069_v28 = vadd.f32 0.00028619796, %v1068_v23  ;;  %v1120_v48 = vadd.f32 0.001143296, %v1119_v46  ;;  %v5384_v22 = vmul.f32 0.70710677, %v5356_v49  ;;  %v2377_v14 = vsel %vm5378_vm5, %v5266_v3, %v2373_v6 }
 0x216   :  { %vm2415_vm6 = vweird.f32 %v5309_v61  ;;  %v2450_v47 = vmul.f32 %v5360_v42, %v5315_v40  ;;  %v1108_v18 = vmul.f32 2.1237322e-06, %v5341_v39  ;;  %v2413_v37 = vadd.f32 %v5309_v61, %v2412_v58 }
 0x217   :  { %v2487_v15 = vmul.f32 %v2486_v41, %v5233_v1  ;;  %v1084_v23 = vadd.f32 0.112945676, %v1083_v29  ;;  %v5396_v21 = vadd.f32 %v638_v10, %v3680_v63  ;;  %v2420_v46 = vand.u32 2147483648, %v5244_v44  ;;  %vm5413_vm7 = vmor %vm2414_vm4, %vm2415_vm6 }
 0x218   :  { %v2434_v34 = vmul.f32 %v2433_v25, %v5166_v54  ;;  %v1121_v3 = vmul.f32 %v1120_v48, %v5341_v39  ;;  %v1146_v6 = vmul.f32 %v5384_v22, %v5384_v22  ;;  %v2022_v49 = vsel %vm5345_vm0, %v5320_v36, %v2017_v24 }
 0x219   :  { %6565 = vst [vmem:[#allocation44_spill] sm:$0xff] %v5396_v21  ;;  %v2382_v58 = vsel %vm5350_vm1, %v2381_v31, %v2377_v14  ;;  %v2473_v41 = vadd.f32 0.05243302, %v2472_v32  ;;  %v1070_v63 = vmul.f32 %v1069_v28, %v5304_v30  ;;  %v2451_v25 = vsub.f32 1.0, %v2450_v47 }
 0x21a   :  { %v1109_v10 = vadd.f32 0.00028619796, %v1108_v18  ;;  %v1122_v48 = vadd.f32 0.014752088, %v1121_v3  ;;  %v5417_v9 = vmin.f32 %v1146_v6, 16.0  ;;  %v2417_v36 = vsel %vm5413_vm7, %v5309_v61, %v2413_v37 }
 0x21b   :  { %v5422_v62 = vadd.f32 1.0, %v2487_v15  ;;  %v1085_v11 = vmul.f32 %v1084_v23, %v5304_v30  ;;  %v5426_v31 = vmul.f32 0.70710677, %v5396_v21  ;;  %v2421_v44 = vor.u32 1.1754944e-38, %v2420_v46 }
 0x21c   :  { %v2435_v24 = vadd.f32 0.18741608, %v2434_v34  ;;  %v1123_v32 = vmul.f32 %v1122_v48, %v5341_v39  ;;  %v1159_v28 = vmul.f32 3.8918573e-05, %v5417_v9  ;;  %v2383_v14 = vmul.f32 %v2382_v58, %v5330_v7 }
 0x21d   :  { %vm2419_vm8 = vcmp.eq.f32.partialorder %v2418_v19, 8.507059e+37  ;;  %v2474_v47 = vmul.f32 %v2473_v41, %v5233_v1  ;;  %v1071_v18 = vadd.f32 0.0036580483, %v1070_v63  ;;  %v2398_v61 = vmul.f32 %v2397_v53, %v5046_v4 }
 0x21e   :  { %v2422_v37 = vsel %vm2419_vm8, %v2421_v44, %v2417_v36  ;;  %v2452_v15 = vmul.f32 %v5360_v42, %v2451_v25  ;;  %v1110_v23 = vmul.f32 %v1109_v10, %v5341_v39  ;;  %3217 = vrcp.f32 %v5422_v62 }
 0x21f   :  { %v1086_v46 = vadd.f32 0.4994258, %v1085_v11  ;;  %v1160_v34 = vadd.f32 0.001143296, %v1159_v28  ;;  %v1186_v3 = vmul.f32 %v5426_v31, %v5426_v31  ;;  %v5439_v7 = vmul.f32 %v2022_v49, %v5272_v52 }
 0x220   :  { %v2436_v19 = vmul.f32 %v2435_v24, %v5166_v54  ;;  %v5443_v6 = vmul.f32 0.5, %v5241_v33  ;;  %v1124_v4 = vadd.f32 0.112945676, %v1123_v32  ;;  %v3129_v53 = vclamps-f32 %v2383_v14, 1.0 }
 0x221   :  { %v2475_v58 = vadd.f32 0.18741608, %v2474_v47  ;;  %v1072_v41 = vmul.f32 %v1071_v18, %v5304_v30  ;;  %v5447_v63 = vmul.f32 0.5, %v5276_v20  ;;  %v2423_v29 = vmul.f32 %v2422_v37, %v2398_v61 }
 0x222   :  { %v1111_v25 = vadd.f32 0.0036580483, %v1110_v23  ;;  %v1148_v10 = vmul.f32 2.1237322e-06, %v5417_v9  ;;  %v1161_v52 = vmul.f32 %v1160_v34, %v5417_v9  ;;  %v2453_v49 = vadd.f32 %v5360_v42, %v2452_v15 }
 0x223   :  { %vm2455_vm9 = vweird.f32 %v5360_v42  ;;  %v1087_v54 = vmul.f32 %v1086_v46, %v5304_v30  ;;  %v5454_v33 = vmin.f32 %v1186_v3, 16.0  ;;  %v2437_v48 = vadd.f32 1.1283791, %v2436_v19 }
 0x224   :  { %v2460_v36 = vand.u32 2147483648, %v5315_v40  ;;  %v1125_v20 = vmul.f32 %v1124_v4, %v5341_v39  ;;  %v1162_v11 = vadd.f32 0.014752088, %v1161_v52  ;;  %v5458_v44 = vpop.eup %3217  ;;  %vm2454_vm10 = vweird.f32 %v5315_v40 }
 0x225   :  { %v2458_v24 = vand.u32 2147483647, %v5315_v40  ;;  %v2476_v32 = vmul.f32 %v2475_v58, %v5233_v1  ;;  %v1073_v28 = vadd.f32 0.05243302, %v1072_v41  ;;  %v2706_v14 = vadd.f32 1.0, %v3129_v53  ;;  %vm5463_vm11 = vmor %vm2454_vm10, %vm2455_vm9  ;;  %v554_v40 = vpop.f32.mrf.mxu0  ;;  %v583_v53 = vpop.f32.mrf.mxu1 }
 0x226   :  { %v1112_v18 = vmul.f32 %v1111_v25, %v5341_v39  ;;  %v1149_v61 = vadd.f32 0.00028619796, %v1148_v10  ;;  %v1199_v37 = vmul.f32 3.8918573e-05, %v5454_v33  ;;  %v3130_v15 = vclamps-f32 %v2423_v29, 1.0 }
 0x227   :  { %v2457_v23 = vsel %vm5463_vm11, %v5360_v42, %v2453_v49  ;;  %v5472_v46 = vadd.f32 1.0, %v1087_v54  ;;  %v1163_v1 = vmul.f32 %v1162_v11, %v5417_v9  ;;  %v2438_v34 = vmul.f32 %v2437_v48, %v5140_v26 }
 0x228   :  { %v2461_v3 = vor.u32 1.1754944e-38, %v2460_v36  ;;  %v2490_v19 = vmul.f32 %v5458_v44, %v5422_v62  ;;  %v1126_v4 = vadd.f32 0.4994258, %v1125_v20  ;;  %vm2459_vm12 = vcmp.eq.f32.partialorder %v2458_v24, 8.507059e+37 }
 0x229   :  { %v2477_v58 = vadd.f32 1.1283791, %v2476_v32  ;;  %v1074_v41 = vmul.f32 %v1073_v28, %v5304_v30  ;;  %v1200_v29 = vadd.f32 0.001143296, %v1199_v37  ;;  %v1113_v42 = vadd.f32 0.05243302, %v1112_v18 }
 0x22a   :  { %v2462_v25 = vsel %vm2459_vm12, %v2461_v3, %v2457_v23  ;;  %v1150_v10 = vmul.f32 %v1149_v61, %v5417_v9  ;;  %v5481_v52 = vadd.f32 %v554_v40, %v3678_v45  ;;  %v2707_v49 = vadd.f32 1.0, %v3130_v15 }
 0x22b   :  { %3219 = vrcp.f32 %v5472_v46  ;;  %v1164_v26 = vadd.f32 0.112945676, %v1163_v1  ;;  %v5485_v54 = vadd.f32 %v583_v53, %v3678_v45  ;;  %v5488_v48 = vmul.f32 %v2706_v14, %v5147_v13 }
 0x22c   :  { %v2491_v36 = vsub.f32 1.0, %v2490_v19  ;;  %v1127_v20 = vmul.f32 %v1126_v4, %v5341_v39  ;;  %v1201_v11 = vmul.f32 %v1200_v29, %v5454_v33  ;;  %v2463_v24 = vmul.f32 %v2462_v25, %v2438_v34 }
 0x22d   :  { %v5493_v32 = vmul.f32 %v2477_v58, %v5190_v43  ;;  %v2498_v28 = vand.u32 2147483647, %v5422_v62  ;;  %v1075_v47 = vadd.f32 0.18741608, %v1074_v41  ;;  %v1114_v18 = vmul.f32 %v1113_v42, %v5341_v39 }
 0x22e   :  { %v1151_v61 = vadd.f32 0.0036580483, %v1150_v10  ;;  %v1202_v37 = vadd.f32 0.014752088, %v1201_v11  ;;  %v5498_v15 = vmul.f32 0.70710677, %v5481_v52  ;;  %v5501_v13 = vmul.f32 %v2707_v49, %v5182_v12 }
 0x22f   :  { %v1165_v14 = vmul.f32 %v1164_v26, %v5417_v9  ;;  %v1188_v23 = vmul.f32 2.1237322e-06, %v5454_v33  ;;  %v5506_v43 = vmul.f32 0.70710677, %v5485_v54  ;;  %v2492_v1 = vmul.f32 %v5458_v44, %v2491_v36 }
 0x230   :  { %v5509_v40 = vadd.f32 1.0, %v1127_v20  ;;  %v1203_v34 = vmul.f32 %v1202_v37, %v5454_v33  ;;  %v1546_v3 = vmul.f32 %v5498_v15, %v5498_v15  ;;  %v3131_v12 = vclamps-f32 %v2463_v24, 1.0 }
 0x231   :  { %v5514_v19 = vpop.eup %3219  ;;  %vm2494_vm13 = vweird.f32 %v5422_v62  ;;  %v2500_v4 = vand.u32 2147483648, %v5422_v62  ;;  %v1076_v53 = vmul.f32 %v1075_v47, %v5304_v30  ;;  %vm5519_vm14 = vcmp.eq.f32.partialorder %v2498_v28, 8.507059e+37 }
 0x232   :  { %v1115_v41 = vadd.f32 0.18741608, %v1114_v18  ;;  %v1152_v29 = vmul.f32 %v1151_v61, %v5417_v9  ;;  %v5524_v25 = vmin.f32 %v1546_v3, 16.0  ;;  %v1166_v42 = vadd.f32 0.4994258, %v1165_v14  ;;  %v612_v14 = vpop.f32.mrf.mxu2 }
 0x233   :  { %v1189_v10 = vadd.f32 0.00028619796, %v1188_v23  ;;  %v1204_v49 = vadd.f32 0.112945676, %v1203_v34  ;;  %v1586_v26 = vmul.f32 %v5506_v43, %v5506_v43  ;;  %v2493_v36 = vadd.f32 %v5458_v44, %v2492_v1 }
 0x234   :  { %vm2495_vm15 = vweird.f32 %v5458_v44  ;;  %v1090_v30 = vmul.f32 %v5514_v19, %v5472_v46  ;;  %3221 = vrcp.f32 %v5509_v40  ;;  %v2708_v20 = vadd.f32 1.0, %v3131_v12 }
 0x235   :  { %v2501_v11 = vor.u32 1.1754944e-38, %v2500_v4  ;;  %v1077_v24 = vadd.f32 1.1283791, %v1076_v53  ;;  %v1100_v28 = vand.u32 2147483648, %v5472_v46  ;;  %v1116_v47 = vmul.f32 %v1115_v41, %v5341_v39  ;;  %vm5541_vm0 = vmor %vm2494_vm13, %vm2495_vm15 }
 0x236   :  { %v1548_v18 = vmul.f32 2.1237322e-06, %v5524_v25  ;;  %v1559_v61 = vmul.f32 3.8918573e-05, %v5524_v25  ;;  %v5537_v37 = vmin.f32 %v1586_v26, 16.0  ;;  %v1167_v34 = vmul.f32 %v1166_v42, %v5417_v9 }
 0x237   :  { %v1153_v1 = vadd.f32 0.05243302, %v1152_v29  ;;  %v1190_v3 = vmul.f32 %v1189_v10, %v5454_v33  ;;  %v1205_v39 = vmul.f32 %v1204_v49, %v5454_v33  ;;  %v2497_v12 = vsel %vm5541_vm0, %v5458_v44, %v2493_v36 }
 0x238   :  { %v1091_v4 = vsub.f32 1.0, %v1090_v30  ;;  %v1560_v53 = vadd.f32 0.001143296, %v1559_v61  ;;  %v1599_v41 = vmul.f32 3.8918573e-05, %v5537_v37  ;;  %v5553_v62 = vmul.f32 %v2708_v20, %v5291_v27 }
 0x239   :  { %v5556_v26 = vmul.f32 %v1077_v24, %v5262_v59  ;;  %v1098_v29 = vand.u32 2147483647, %v5472_v46  ;;  %v5560_v42 = vadd.f32 %v612_v14, %v3678_v45  ;;  %v5564_v49 = vor.u32 1.1754944e-38, %v1100_v28 }
 0x23a   :  { %v5562_v10 = vpop.eup %3221  ;;  %v1549_v44 = vadd.f32 0.00028619796, %v1548_v18  ;;  %v1561_v36 = vmul.f32 %v1560_v53, %v5524_v25  ;;  %v1600_v30 = vadd.f32 0.001143296, %v1599_v41  ;;  %v2502_v27 = vsel %vm5519_vm14, %v2501_v11, %v2497_v12 }
 0x23b   :  { %6574 = vst [vmem:[#allocation45_spill] sm:$0xff] %v5560_v42  ;;  %vm1094_vm1 = vweird.f32 %v5472_v46  ;;  %v5570_v59 = vadd.f32 1.0, %v1167_v34  ;;  %v1191_v20 = vadd.f32 0.0036580483, %v1190_v3  ;;  %v1206_v24 = vadd.f32 0.4994258, %v1205_v39 }
 0x23c   :  { %v1092_v61 = vmul.f32 %v5514_v19, %v1091_v4  ;;  %v1117_v14 = vadd.f32 1.1283791, %v1116_v47  ;;  %v1154_v23 = vmul.f32 %v1153_v1, %v5417_v9  ;;  %v1562_v28 = vadd.f32 0.014752088, %v1561_v36  ;;  %v641_v1 = vpop.f32.mrf.mxu3 }
 0x23d   :  { %v1130_v18 = vmul.f32 %v5562_v10, %v5509_v40  ;;  %v1588_v53 = vmul.f32 2.1237322e-06, %v5537_v37  ;;  %v1601_v58 = vmul.f32 %v1600_v30, %v5537_v37  ;;  %v5579_v11 = vmul.f32 0.70710677, %v5560_v42 }
 0x23e   :  { %v2503_v34 = vmul.f32 %v2502_v27, %v5493_v32  ;;  %vm1095_vm2 = vweird.f32 %v5514_v19  ;;  %v5584_v3 = vmul.f32 0.5, %v5481_v52  ;;  %v1550_v47 = vmul.f32 %v1549_v44, %v5524_v25 }
 0x23f   :  { %vm5587_vm3 = vcmp.eq.f32.partialorder %v1098_v29, 8.507059e+37  ;;  %3223 = vrcp.f32 %v5570_v59  ;;  %v1192_v12 = vmul.f32 %v1191_v20, %v5454_v33  ;;  %v1207_v4 = vmul.f32 %v1206_v24, %v5454_v33  ;;  %vm5616_vm4 = vmor %vm1094_vm1, %vm1095_vm2 }
 0x240   :  { %v1563_v32 = vmul.f32 %v1562_v28, %v5524_v25  ;;  %v5596_v41 = vmul.f32 %v1117_v14, %v5307_v35  ;;  %v1155_v52 = vadd.f32 0.18741608, %v1154_v23  ;;  %v1602_v36 = vadd.f32 0.014752088, %v1601_v58 }
 0x241   :  { %v1626_v44 = vmul.f32 %v5579_v11, %v5579_v11  ;;  %v1093_v29 = vadd.f32 %v5514_v19, %v1092_v61  ;;  %v1131_v30 = vsub.f32 1.0, %v1130_v18  ;;  %v1589_v27 = vadd.f32 0.00028619796, %v1588_v53 }
 0x242   :  { %v5602_v21 = vadd.f32 %v641_v1, %v3678_v45  ;;  %v1551_v20 = vadd.f32 0.0036580483, %v1550_v47  ;;  %v1564_v42 = vadd.f32 0.112945676, %v1563_v32  ;;  %v1603_v24 = vmul.f32 %v1602_v36, %v5537_v37 }
 0x243   :  { %v5605_v28 = vmin.f32 %v1626_v44, 16.0  ;;  %v3132_v35 = vclamps-f32 %v2503_v34, 1.0  ;;  %v1193_v14 = vadd.f32 0.05243302, %v1192_v12  ;;  %v5607_v23 = vadd.f32 1.0, %v1207_v4 }
 0x244   :  { %6577 = vst [vmem:[#allocation46_spill] sm:$0xff] %v5602_v21  ;;  %v5610_v58 = vmul.f32 0.5, %v5485_v54  ;;  %v1138_v61 = vand.u32 2147483647, %v5509_v40  ;;  %v1156_v18 = vmul.f32 %v1155_v52, %v5417_v9  ;;  %v1097_v54 = vsel %vm5616_vm4, %v5514_v19, %v1093_v29 }
 0x245   :  { %v1628_v53 = vmul.f32 2.1237322e-06, %v5605_v28  ;;  %v1639_v34 = vmul.f32 3.8918573e-05, %v5605_v28  ;;  %v5624_v47 = vpop.eup %3223  ;;  %vm1134_vm5 = vweird.f32 %v5509_v40  ;;  %v1590_v46 = vmul.f32 %v1589_v27, %v5537_v37 }
 0x246   :  { %v1604_v1 = vadd.f32 0.112945676, %v1603_v24  ;;  %v5632_v12 = vmul.f32 0.70710677, %v5602_v21  ;;  %v1132_v9 = vmul.f32 %v5562_v10, %v1131_v30  ;;  %v1140_v4 = vand.u32 2147483648, %v5509_v40 }
 0x247   :  { %v1552_v32 = vmul.f32 %v1551_v20, %v5524_v25  ;;  %v1565_v52 = vmul.f32 %v1564_v42, %v5524_v25  ;;  %v1194_v36 = vmul.f32 %v1193_v14, %v5454_v33  ;;  %3225 = vrcp.f32 %v5607_v23 }
 0x248   :  { %6580 = vst [vmem:[#allocation47_spill] sm:$0xff] %v5632_v12  ;;  %v1629_v19 = vadd.f32 0.00028619796, %v1628_v53  ;;  %v1640_v44 = vadd.f32 0.001143296, %v1639_v34  ;;  %v2709_v29 = vadd.f32 1.0, %v3132_v35  ;;  %v1102_v27 = vsel %vm5587_vm3, %v5564_v49, %v1097_v54 }
 0x249   :  { %v1157_v24 = vadd.f32 1.1283791, %v1156_v18  ;;  %v1170_v30 = vmul.f32 %v5624_v47, %v5570_v59  ;;  %vm5645_vm6 = vcmp.eq.f32.partialorder %v1138_v61, 8.507059e+37  ;;  %v1591_v42 = vadd.f32 0.0036580483, %v1590_v46 }
 0x24a   :  { %v1605_v20 = vmul.f32 %v1604_v1, %v5537_v37  ;;  %v1641_v14 = vmul.f32 %v1640_v44, %v5605_v28  ;;  %v1666_v35 = vmul.f32 %v5632_v12, %v5632_v12  ;;  %vm1135_vm7 = vweird.f32 %v5562_v10 }
 0x24b   :  { %v1141_v39 = vor.u32 1.1754944e-38, %v1140_v4  ;;  %v1553_v49 = vadd.f32 0.05243302, %v1552_v32  ;;  %v1566_v18 = vadd.f32 0.4994258, %v1565_v52  ;;  %v1133_v53 = vadd.f32 %v5562_v10, %v1132_v9  ;;  %vm5675_vm8 = vmor %vm1134_vm5, %vm1135_vm7 }
 0x24c   :  { %v1195_v34 = vadd.f32 0.18741608, %v1194_v36  ;;  %v1630_v61 = vmul.f32 %v1629_v19, %v5605_v28  ;;  %v1642_v54 = vadd.f32 0.014752088, %v1641_v14  ;;  %v5657_v46 = vmul.f32 %v2709_v29, %v5302_v8  ;;  %v557_v36 = vpop.f32.mrf.mxu0  ;;  %v586_v8 = vpop.f32.mrf.mxu1 }
 0x24d   :  { %v5660_v1 = vmul.f32 %v1102_v27, %v5556_v26  ;;  %v1171_v44 = vsub.f32 1.0, %v1170_v30  ;;  %v1180_v21 = vand.u32 2147483648, %v5570_v59  ;;  %v5663_v12 = vpop.eup %3225  ;;  %v5666_v4 = vmul.f32 %v1157_v24, %v5384_v22 }
 0x24e   :  { %6583 = vst [vmem:[#allocation48_spill] sm:$0xff] %v5663_v12  ;;  %v1592_v9 = vmul.f32 %v1591_v42, %v5537_v37  ;;  %v1606_v32 = vadd.f32 0.4994258, %v1605_v20  ;;  %v5669_v52 = vmin.f32 %v1666_v35, 16.0  ;;  %vm1174_vm9 = vweird.f32 %v5570_v59 }
 0x24f   :  { %v1554_v26 = vmul.f32 %v1553_v49, %v5524_v25  ;;  %v1567_v22 = vmul.f32 %v1566_v18, %v5524_v25  ;;  %v1643_v19 = vmul.f32 %v1642_v54, %v5605_v28  ;;  %v1137_v29 = vsel %vm5675_vm8, %v5562_v10, %v1133_v53 }
 0x250   :  { %v1178_v27 = vand.u32 2147483647, %v5570_v59  ;;  %v1196_v40 = vmul.f32 %v1195_v34, %v5454_v33  ;;  %v1631_v24 = vadd.f32 0.0036580483, %v1630_v61  ;;  %v1172_v30 = vmul.f32 %v5624_v47, %v1171_v44 }
 0x251   :  { %v1181_v42 = vor.u32 1.1754944e-38, %v1180_v21  ;;  %v1210_v20 = vmul.f32 %v5663_v12, %v5607_v23  ;;  %v5692_v14 = vadd.f32 %v557_v36, %v3860_v60  ;;  %v1593_v35 = vadd.f32 0.05243302, %v1592_v9 }
 0x252   :  { %v1607_v49 = vmul.f32 %v1606_v32, %v5537_v37  ;;  %v1644_v18 = vadd.f32 0.112945676, %v1643_v19  ;;  %v1679_v10 = vmul.f32 3.8918573e-05, %v5669_v52  ;;  %v1142_v53 = vsel %vm5645_vm6, %v1141_v39, %v1137_v29 }
 0x253   :  { %vm1175_vm10 = vweird.f32 %v5624_v47  ;;  %v1555_v33 = vadd.f32 0.18741608, %v1554_v26  ;;  %v5699_v34 = vadd.f32 1.0, %v1567_v22  ;;  %vm5701_vm11 = vcmp.eq.f32.partialorder %v1178_v27, 8.507059e+37 }
 0x254   :  { %v1197_v61 = vadd.f32 1.1283791, %v1196_v40  ;;  %v1632_v54 = vmul.f32 %v1631_v24, %v5605_v28  ;;  %v1645_v44 = vmul.f32 %v1644_v18, %v5605_v28  ;;  %v1668_v9 = vmul.f32 2.1237322e-06, %v5669_v52  ;;  %vm5726_vm12 = vmor %vm1174_vm9, %vm1175_vm10 }
 0x255   :  { %v1173_v32 = vadd.f32 %v5624_v47, %v1172_v30  ;;  %v1211_v45 = vsub.f32 1.0, %v1210_v20  ;;  %v1680_v39 = vadd.f32 0.001143296, %v1679_v10  ;;  %v5710_v36 = vmul.f32 0.70710677, %v5692_v14 }
 0x256   :  { %v5713_v26 = vmul.f32 %v1142_v53, %v5596_v41  ;;  %v1594_v22 = vmul.f32 %v1593_v35, %v5537_v37  ;;  %v5716_v19 = vadd.f32 1.0, %v1607_v49  ;;  %v1646_v29 = vadd.f32 0.4994258, %v1645_v44 }
 0x257   :  { %v1220_v27 = vand.u32 2147483648, %v5607_v23  ;;  %v1556_v40 = vmul.f32 %v1555_v33, %v5524_v25  ;;  %3227 = vrcp.f32 %v5699_v34  ;;  %v1681_v24 = vmul.f32 %v1680_v39, %v5669_v52 }
 0x258   :  { %v1633_v30 = vadd.f32 0.05243302, %v1632_v54  ;;  %v1669_v20 = vadd.f32 0.00028619796, %v1668_v9  ;;  %v2026_v35 = vmul.f32 %v5710_v36, %v5710_v36  ;;  %v5733_v49 = vadd.f32 %v586_v8, %v3860_v60 }
 0x259   :  { %v1177_v25 = vsel %vm5726_vm12, %v5624_v47, %v1173_v32  ;;  %v5739_v18 = vmul.f32 %v1197_v61, %v5426_v31  ;;  %v1212_v59 = vmul.f32 %v5663_v12, %v1211_v45  ;;  %v1682_v10 = vadd.f32 0.014752088, %v1681_v24 }
 0x25a   :  { %v1595_v53 = vadd.f32 0.18741608, %v1594_v22  ;;  %3229 = vrcp.f32 %v5716_v19  ;;  %v1647_v33 = vmul.f32 %v1646_v29, %v5605_v28  ;;  %v5744_v54 = vmin.f32 %v2026_v35, 16.0 }
 0x25b   :  { %6590 = vst [vmem:[#allocation49_spill] sm:$0xff] %v5739_v18  ;;  %vm1214_vm13 = vweird.f32 %v5607_v23  ;;  %v1557_v9 = vadd.f32 1.1283791, %v1556_v40  ;;  %v1683_v47 = vmul.f32 %v1682_v10, %v5669_v52  ;;  %v5749_v32 = vor.u32 1.1754944e-38, %v1220_v27 }
 0x25c   :  { %v1634_v31 = vmul.f32 %v1633_v30, %v5605_v28  ;;  %v1670_v61 = vmul.f32 %v1669_v20, %v5669_v52  ;;  %v5754_v45 = vmul.f32 0.70710677, %v5733_v49  ;;  %v5760_v8 = vsel %vm5701_vm11, %v1181_v42, %v1177_v25 }
 0x25d   :  { %6591 = vst [vmem:[#allocation50_spill] sm:$0xff] %v5749_v32  ;;  %v5756_v39 = vpop.eup %3227  ;;  %v5763_v22 = vadd.f32 %v5663_v12, %v1212_v59  ;;  %vm1215_vm14 = vweird.f32 %v5663_v12  ;;  %v3113_v29 = vclamps-f32 %v4519_v38, 1.0  ;;  %v1578_v27 = vand.u32 2147483647, %v5699_v34 }
 0x25e   :  { %v1596_v40 = vmul.f32 %v1595_v53, %v5537_v37  ;;  %v5769_v24 = vadd.f32 1.0, %v1647_v33  ;;  %v2028_v41 = vmul.f32 2.1237322e-06, %v5744_v54  ;;  %v5773_v30 = vmul.f32 %v1557_v9, %v5498_v15  ;;  %vm5781_vm15 = vmor %vm1214_vm13, %vm1215_vm14 }
 0x25f   :  { %6592 = vst [vmem:[#allocation51_spill] sm:$0xff] %v5763_v22  ;;  %v1580_v42 = vand.u32 2147483648, %v5699_v34  ;;  %v1684_v21 = vadd.f32 0.112945676, %v1683_v47  ;;  %v2039_v20 = vmul.f32 3.8918573e-05, %v5744_v54  ;;  %v1570_v37 = vmul.f32 %v5756_v39, %v5699_v34 }
 0x260   :  { %v5777_v35 = vpop.eup %3229  ;;  %v6593_v38 = vmov 0  ;;  %v1635_v25 = vadd.f32 0.18741608, %v1634_v31  ;;  %v1671_v59 = vadd.f32 0.0036580483, %v1670_v61  ;;  %v2066_v15 = vmul.f32 %v5754_v45, %v5754_v45 }
 0x261   :  { %v6594_v38 = vsel %vm5781_vm15, 4294967295, %v6593_v38  ;;  %v2029_v53 = vadd.f32 0.00028619796, %v2028_v41  ;;  %v2040_v33 = vadd.f32 0.001143296, %v2039_v20  ;;  %v2690_v9 = vadd.f32 1.0, %v3113_v29 }
 0x262   :  { %6595 = vst [vmem:[#allocation52_spill] sm:$0xff] %v6594_v38  ;;  %v1597_v47 = vadd.f32 1.1283791, %v1596_v40  ;;  %v1620_v44 = vand.u32 2147483648, %v5716_v19  ;;  %3231 = vrcp.f32 %v5769_v24  ;;  %v5795_v18 = vmin.f32 %v2066_v15, 16.0 }
 0x263   :  { %v1610_v31 = vmul.f32 %v5777_v35, %v5716_v19  ;;  %v1685_v61 = vmul.f32 %v1684_v21, %v5669_v52  ;;  %v2041_v32 = vmul.f32 %v2040_v33, %v5744_v54  ;;  %v3114_v38 = vclamps-f32 %v4629_v51, 1.0 }
 0x264   :  { %v1571_v10 = vsub.f32 1.0, %v1570_v37  ;;  %v5802_v41 = vor.u32 1.1754944e-38, %v1580_v42  ;;  %v1636_v29 = vmul.f32 %v1635_v25, %v5605_v28  ;;  %v2079_v40 = vmul.f32 3.8918573e-05, %v5795_v18 }
 0x265   :  { %v1672_v20 = vmul.f32 %v1671_v59, %v5669_v52  ;;  %v2030_v15 = vmul.f32 %v2029_v53, %v5744_v54  ;;  %v2042_v22 = vadd.f32 0.014752088, %v2041_v32  ;;  %v2738_v12 = vmul.f32 %v2690_v9, %v4092_v0 }
 0x266   :  { %vm1574_vm0 = vweird.f32 %v5699_v34  ;;  %v5811_v21 = vmul.f32 %v1597_v47, %v5506_v43  ;;  %v1618_v51 = vand.u32 2147483647, %v5716_v19  ;;  %v5814_v42 = vor.u32 1.1754944e-38, %v1620_v44 }
 0x267   :  { %v2080_v37 = vadd.f32 0.001143296, %v2079_v40  ;;  %v1611_v28 = vsub.f32 1.0, %v1610_v31  ;;  %v1686_v25 = vadd.f32 0.4994258, %v1685_v61  ;;  %v2043_v33 = vmul.f32 %v2042_v22, %v5744_v54  ;;  %2786 = vmatpush.msrb.mxu0 %v2738_v12 }
 0x268   :  { %v2691_v59 = vadd.f32 1.0, %v3114_v38  ;;  %v5817_v53 = vpop.eup %3231  ;;  %v1572_v0 = vmul.f32 %v5756_v39, %v1571_v10  ;;  %v1637_v32 = vadd.f32 1.1283791, %v1636_v29  ;;  %v5821_v9 = vmul.f32 0.5, %v5692_v14 }
 0x269   :  { %v3101_v43 = vclamps-f32 %v4102_v55, 1.0  ;;  %vm1575_vm1 = vweird.f32 %v5756_v39  ;;  %vm1614_vm2 = vweird.f32 %v5716_v19  ;;  %v1673_v44 = vadd.f32 0.05243302, %v1672_v20 }
 0x26a   :  { %v2031_v47 = vadd.f32 0.0036580483, %v2030_v15  ;;  %v2044_v31 = vadd.f32 0.112945676, %v2043_v33  ;;  %vm1615_vm3 = vweird.f32 %v5777_v35  ;;  %v5828_v12 = vmul.f32 0.5, %v5733_v49  ;;  %vm5860_vm6 = vmor %vm1574_vm0, %vm1575_vm1 }
 0x26b   :  { %v2081_v22 = vmul.f32 %v2080_v37, %v5795_v18  ;;  %v2739_v38 = vmul.f32 %v2691_v59, %v4110_v17  ;;  %vm5832_vm4 = vcmp.eq.f32.partialorder %v1578_v27, 8.507059e+37  ;;  %v1612_v55 = vmul.f32 %v5777_v35, %v1611_v28  ;;  %vm5877_vm8 = vmor %vm1614_vm2, %vm1615_vm3 }
 0x26c   :  { %v1650_v10 = vmul.f32 %v5817_v53, %v5769_v24  ;;  %v1687_v61 = vmul.f32 %v1686_v25, %v5669_v52  ;;  %v2068_v29 = vmul.f32 2.1237322e-06, %v5795_v18  ;;  %v1573_v49 = vadd.f32 %v5756_v39, %v1572_v0 }
 0x26d   :  { %v2082_v40 = vadd.f32 0.014752088, %v2081_v22  ;;  %2806 = vmatpush.msrb.mxu1 %v2739_v38  ;;  %v2678_v20 = vadd.f32 1.0, %v3101_v43  ;;  %v3102_v17 = vclamps-f32 %v4217_v57, 1.0  ;;  %vm5843_vm5 = vcmp.eq.f32.partialorder %v1618_v51, 8.507059e+37  ;;  %v6600_v43 = vld [vmem:[#allocation12_spill] sm:$0xff] }
 0x26e   :  { %v5848_v15 = vmul.f32 %v1637_v32, %v5579_v11  ;;  %v1674_v37 = vmul.f32 %v1673_v44, %v5669_v52  ;;  %v2032_v28 = vmul.f32 %v2031_v47, %v5744_v54  ;;  %v2045_v25 = vmul.f32 %v2044_v31, %v5744_v54  ;;  %v615_v31 = vpop.f32.mrf.mxu2  ;;  %v6603_v38 = vld [vmem:[#allocation10_spill] sm:$0xff] }
 0x26f   :  { %v2083_v33 = vmul.f32 %v2082_v40, %v5795_v18  ;;  %v2726_v59 = vmul.f32 %v2678_v20, %v3813_v16  ;;  %v2679_v0 = vadd.f32 1.0, %v3102_v17  ;;  %v3089_v57 = vclamps-f32 %v6600_v43, 1.0  ;;  %v6604_v43 = vld [vmem:[#allocation13_spill] sm:$0xff] }
 0x270   :  { %v1613_v51 = vadd.f32 %v5777_v35, %v1612_v55  ;;  %v1651_v32 = vsub.f32 1.0, %v1650_v10  ;;  %v5865_v44 = vadd.f32 1.0, %v1687_v61  ;;  %v2069_v47 = vadd.f32 0.00028619796, %v2068_v29  ;;  %v6607_v29 = vld [vmem:[#allocation6_spill] sm:$0xff] }
 0x271   :  { %v1577_v16 = vsel %vm5860_vm6, %v5756_v39, %v1573_v49  ;;  %v2084_v22 = vadd.f32 0.112945676, %v2083_v33  ;;  %2787 = vmatpush.msrb.mxu0 %v2726_v59  ;;  %v2727_v40 = vmul.f32 %v2679_v0, %v6603_v38  ;;  %v2666_v34 = vadd.f32 1.0, %v3089_v57 }
 0x272   :  { %vm1654_vm7 = vweird.f32 %v5769_v24  ;;  %v2033_v20 = vadd.f32 0.05243302, %v2032_v28  ;;  %v2046_v17 = vadd.f32 0.4994258, %v2045_v25  ;;  %v3090_v55 = vclamps-f32 %v6604_v43, 1.0 }
 0x273   :  { %v1675_v39 = vadd.f32 0.18741608, %v1674_v37  ;;  %v2085_v61 = vmul.f32 %v2084_v22, %v5795_v18  ;;  %2807 = vmatpush.msrb.mxu1 %v2727_v40  ;;  %v2714_v49 = vmul.f32 %v2666_v34, %v6607_v29  ;;  %v5884_v33 = vadd.f32 %v615_v31, %v3860_v60  ;;  %v644_v34 = vpop.f32.mrf.mxu3 }
 0x274   :  { %v1617_v28 = vsel %vm5877_vm8, %v5777_v35, %v1613_v51  ;;  %v1652_v25 = vmul.f32 %v5817_v53, %v1651_v32  ;;  %3233 = vrcp.f32 %v5865_v44  ;;  %v2070_v19 = vmul.f32 %v2069_v47, %v5795_v18  ;;  %v6609_v47 = vld [vmem:[#allocation7_spill] sm:$0xff] }
 0x275   :  { %6608 = vst [vmem:[#allocation12_spill] sm:$0xff] %v5884_v33  ;;  %v1582_v37 = vsel %vm5832_vm4, %v5802_v41, %v1577_v16  ;;  %v1658_v59 = vand.u32 2147483647, %v5769_v24  ;;  %v1660_v0 = vand.u32 2147483648, %v5769_v24  ;;  %2788 = vmatpush.msrb.mxu0 %v2714_v49  ;;  %v2667_v57 = vadd.f32 1.0, %v3090_v55 }
 0x276   :  { %v2034_v11 = vmul.f32 %v2033_v20, %v5744_v54  ;;  %v2047_v35 = vmul.f32 %v2046_v17, %v5744_v54  ;;  %v2086_v51 = vadd.f32 0.4994258, %v2085_v61  ;;  %v5900_v32 = vmul.f32 0.70710677, %v5884_v33 }
 0x277   :  { %2865 = vmatpush.msra.mxu0 %v5488_v48  ;;  %v1622_v41 = vsel %vm5843_vm5, %v5814_v42, %v1617_v28  ;;  %vm1655_vm9 = vweird.f32 %v5817_v53  ;;  %v1676_v14 = vmul.f32 %v1675_v39, %v5669_v52  ;;  %v2715_v31 = vmul.f32 %v2667_v57, %v6609_v47 }
 0x278   :  { %v1653_v16 = vadd.f32 %v5817_v53, %v1652_v25  ;;  %v2071_v22 = vadd.f32 0.0036580483, %v2070_v19  ;;  %v2106_v38 = vmul.f32 %v5900_v32, %v5900_v32  ;;  %v3115_v40 = vclamps-f32 %v4635_v50, 1.0  ;;  %vm5938_vm11 = vmor %vm1654_vm7, %vm1655_vm9 }
 0x279   :  { %v5914_v48 = vmul.f32 %v1582_v37, %v5773_v30  ;;  %vm5916_vm10 = vcmp.eq.f32.partialorder %v1658_v59, 8.507059e+37  ;;  %v1661_v42 = vor.u32 1.1754944e-38, %v1660_v0  ;;  %v2087_v52 = vmul.f32 %v2086_v51, %v5795_v18  ;;  %2808 = vmatpush.msrb.mxu1 %v2715_v31  ;;  %v6616_v59 = vld [vmem:[#allocation17_spill] sm:$0xff]  ;;  %v589_v51 = vpop.f32.mrf.mxu1 }
 0x27a   :  { %v5921_v20 = vpop.eup %3233  ;;  %v2035_v17 = vadd.f32 0.18741608, %v2034_v11  ;;  %v5923_v43 = vadd.f32 1.0, %v2047_v35  ;;  %v5925_v55 = vmin.f32 %v2106_v38, 16.0  ;;  %v5928_v50 = vadd.f32 %v644_v34, %v3860_v60 }
 0x27b   :  { %2885 = vmatpush.msra.mxu1 %v5501_v13  ;;  %v5932_v30 = vmul.f32 %v1622_v41, %v5811_v21  ;;  %v5942_v39 = vadd.f32 1.1283791, %v1676_v14  ;;  %v2692_v61 = vadd.f32 1.0, %v3115_v40  ;;  %v3116_v29 = vclamps-f32 %v4637_v2, 1.0  ;;  %v560_v2 = vpop.f32.mrf.mxu0  ;;  %v6617_v41 = vld [vmem:[#allocation19_spill] sm:$0xff]  ;;  %v6618_v40 = vld [vmem:[#allocation18_spill] sm:$0xff] }
 0x27c   :  { %6612 = vst [vmem:[#allocation10_spill] sm:$0xff] %v5928_v50  ;;  %v1657_v60 = vsel %vm5938_vm11, %v5817_v53, %v1653_v16  ;;  %v1700_v21 = vand.u32 2147483648, %v5865_v44  ;;  %v2072_v49 = vmul.f32 %v2071_v22, %v5795_v18  ;;  %v1690_v24 = vmul.f32 %v5921_v20, %v5865_v44 }
 0x27d   :  { %6615 = vst [vmem:[#allocation13_spill] sm:$0xff] %v5942_v39  ;;  %v5953_v28 = vadd.f32 1.0, %v2087_v52  ;;  %v2108_v25 = vmul.f32 2.1237322e-06, %v5925_v55  ;;  %v2119_v19 = vmul.f32 3.8918573e-05, %v5925_v55  ;;  %v2036_v37 = vmul.f32 %v2035_v17, %v5744_v54 }
 0x27e   :  { %3235 = vrcp.f32 %v5923_v43  ;;  %v5960_v53 = vmul.f32 0.70710677, %v5928_v50  ;;  %v2740_v0 = vmul.f32 %v2692_v61, %v6616_v59  ;;  %v2693_v35 = vadd.f32 1.0, %v3116_v29 }
 0x27f   :  { %v2109_v57 = vadd.f32 0.00028619796, %v2108_v25  ;;  %v2120_v11 = vadd.f32 0.001143296, %v2119_v19  ;;  %v3103_v14 = vclamps-f32 %v6617_v41, 1.0  ;;  %v1662_v47 = vsel %vm5916_vm10, %v1661_v42, %v1657_v60 }
 0x280   :  { %v2073_v31 = vadd.f32 0.05243302, %v2072_v49  ;;  %v2146_v54 = vmul.f32 %v5960_v53, %v5960_v53  ;;  %2826 = vmatpush.msrb.mxu2 %v2740_v0  ;;  %v5969_v16 = vadd.f32 %v560_v2, %v3799_v5  ;;  %v1691_v22 = vsub.f32 1.0, %v1690_v24 }
 0x281   :  { %3237 = vrcp.f32 %v5953_v28  ;;  %v2121_v38 = vmul.f32 %v2120_v11, %v5925_v55  ;;  %v2741_v52 = vmul.f32 %v2693_v35, %v6618_v40  ;;  %v5974_v34 = vor.u32 1.1754944e-38, %v1700_v21 }
 0x282   :  { %v5976_v17 = vmin.f32 %v2146_v54, 16.0  ;;  %v5979_v27 = vmul.f32 0.70710677, %v5969_v16  ;;  %v5982_v42 = vadd.f32 %v589_v51, %v3799_v5  ;;  %v5985_v10 = vmul.f32 %v1662_v47, %v5848_v15 }
 0x283   :  { %v2037_v61 = vadd.f32 1.1283791, %v2036_v37  ;;  %v2110_v29 = vmul.f32 %v2109_v57, %v5925_v55  ;;  %2846 = vmatpush.msrb.mxu3 %v2741_v52  ;;  %v2680_v60 = vadd.f32 1.0, %v3103_v14  ;;  %v2074_v21 = vmul.f32 %v2073_v31, %v5795_v18  ;;  %v6620_v31 = vld [vmem:[#allocation11_spill] sm:$0xff] }
 0x284   :  { %6619 = vst [vmem:[#allocation6_spill] sm:$0xff] %v5985_v10  ;;  %v5988_v49 = vpop.eup %3235  ;;  %v2122_v24 = vadd.f32 0.014752088, %v2121_v38  ;;  %v2148_v25 = vmul.f32 2.1237322e-06, %v5976_v17  ;;  %v1692_v2 = vmul.f32 %v5921_v20, %v1691_v22  ;;  %v2060_v15 = vand.u32 2147483648, %v5923_v43 }
 0x285   :  { %v2159_v19 = vmul.f32 3.8918573e-05, %v5976_v17  ;;  %v2506_v37 = vmul.f32 %v5979_v27, %v5979_v27  ;;  %v6000_v35 = vmul.f32 0.70710677, %v5982_v42  ;;  %v2050_v41 = vmul.f32 %v5988_v49, %v5923_v43 }
 0x286   :  { %v2123_v0 = vmul.f32 %v2122_v24, %v5925_v55  ;;  %v2149_v57 = vadd.f32 0.00028619796, %v2148_v25  ;;  %v2111_v14 = vadd.f32 0.0036580483, %v2110_v29  ;;  %v2728_v54 = vmul.f32 %v2680_v60, %v6620_v31 }
 0x287   :  { %v2160_v11 = vadd.f32 0.001143296, %v2159_v19  ;;  %v6002_v51 = vpop.eup %3237  ;;  %v6006_v47 = vmin.f32 %v2506_v37, 16.0  ;;  %vm1694_vm12 = vweird.f32 %v5865_v44  ;;  %v2546_v52 = vmul.f32 %v6000_v35, %v6000_v35 }
 0x288   :  { %v2124_v22 = vadd.f32 0.112945676, %v2123_v0  ;;  %v2150_v38 = vmul.f32 %v2149_v57, %v5976_v17  ;;  %vm1695_vm13 = vweird.f32 %v5921_v20  ;;  %v2075_v24 = vadd.f32 0.18741608, %v2074_v21  ;;  %2827 = vmatpush.msrb.mxu2 %v2728_v54 }
 0x289   :  { %v2161_v40 = vmul.f32 %v2160_v11, %v5976_v17  ;;  %v2508_v25 = vmul.f32 2.1237322e-06, %v6006_v47  ;;  %v2519_v29 = vmul.f32 3.8918573e-05, %v6006_v47  ;;  %v2090_v60 = vmul.f32 %v6002_v51, %v5953_v28  ;;  %vm6048_vm0 = vmor %vm1694_vm12, %vm1695_vm13 }
 0x28a   :  { %v2125_v19 = vmul.f32 %v2124_v22, %v5925_v55  ;;  %v6020_v0 = vmin.f32 %v2546_v52, 16.0  ;;  %v1693_v57 = vadd.f32 %v5921_v20, %v1692_v2  ;;  %v2112_v11 = vmul.f32 %v2111_v14, %v5925_v55 }
 0x28b   :  { %v2162_v37 = vadd.f32 0.014752088, %v2161_v40  ;;  %v2509_v31 = vadd.f32 0.00028619796, %v2508_v25  ;;  %v2520_v59 = vadd.f32 0.001143296, %v2519_v29  ;;  %v2076_v10 = vmul.f32 %v2075_v24, %v5795_v18 }
 0x28c   :  { %v2051_v21 = vsub.f32 1.0, %v2050_v41  ;;  %v2126_v13 = vadd.f32 0.4994258, %v2125_v19  ;;  %v2151_v50 = vadd.f32 0.0036580483, %v2150_v38  ;;  %v6025_v54 = vor.u32 1.1754944e-38, %v2060_v15 }
 0x28d   :  { %v2163_v33 = vmul.f32 %v2162_v37, %v5976_v17  ;;  %v2510_v22 = vmul.f32 %v2509_v31, %v6006_v47  ;;  %v2521_v40 = vmul.f32 %v2520_v59, %v6006_v47  ;;  %v2091_v52 = vsub.f32 1.0, %v2090_v60 }
 0x28e   :  { %v2127_v2 = vmul.f32 %v2126_v13, %v5925_v55  ;;  %v2548_v14 = vmul.f32 2.1237322e-06, %v6020_v0  ;;  %v6033_v41 = vmul.f32 %v2037_v61, %v5710_v36  ;;  %v2113_v38 = vadd.f32 0.05243302, %v2112_v11 }
 0x28f   :  { %v2164_v39 = vadd.f32 0.112945676, %v2163_v33  ;;  %v2511_v25 = vadd.f32 0.0036580483, %v2510_v22  ;;  %v2522_v29 = vadd.f32 0.014752088, %v2521_v40  ;;  %v2052_v59 = vmul.f32 %v5988_v49, %v2051_v21 }
 0x290   :  { %v6621_v15 = vand.u32 2147483647, %v5865_v44  ;;  %v2152_v24 = vmul.f32 %v2151_v50, %v5976_v17  ;;  %v2549_v13 = vadd.f32 0.00028619796, %v2548_v14  ;;  %vm2054_vm1 = vweird.f32 %v5923_v43 }
 0x291   :  { %v2165_v33 = vmul.f32 %v2164_v39, %v5976_v17  ;;  %v6053_v61 = vadd.f32 1.0, %v2127_v2  ;;  %v2512_v60 = vmul.f32 %v2511_v25, %v6006_v47  ;;  %v2523_v19 = vmul.f32 %v2522_v29, %v6006_v47 }
 0x292   :  { %vm6037_vm14 = vcmp.eq.f32.partialorder %v6621_v15, 8.507059e+37  ;;  %v2559_v50 = vmul.f32 3.8918573e-05, %v6020_v0  ;;  %v1697_v39 = vsel %vm6048_vm0, %v5921_v20, %v1693_v57  ;;  %vm2055_vm2 = vweird.f32 %v5988_v49 }
 0x293   :  { %v2077_v44 = vadd.f32 1.1283791, %v2076_v10  ;;  %v2098_v37 = vand.u32 2147483647, %v5953_v28  ;;  %v2092_v11 = vmul.f32 %v6002_v51, %v2091_v52  ;;  %v2114_v31 = vmul.f32 %v2113_v38, %v5925_v55  ;;  %vm6095_vm6 = vmor %vm2054_vm1, %vm2055_vm2 }
 0x294   :  { %v2513_v21 = vadd.f32 0.05243302, %v2512_v60  ;;  %v2550_v22 = vmul.f32 %v2549_v13, %v6020_v0  ;;  %v2053_v40 = vadd.f32 %v5988_v49, %v2052_v59  ;;  %v2166_v2 = vadd.f32 0.4994258, %v2165_v33  ;;  %v6629_v59 = vld [vmem:[#allocation20_spill] sm:$0xff]  ;;  %v6630_v13 = vld [vmem:[#allocation15_spill] sm:$0xff] }
 0x295   :  { %v2524_v14 = vadd.f32 0.112945676, %v2523_v19  ;;  %v2560_v25 = vadd.f32 0.001143296, %v2559_v50  ;;  %3239 = vrcp.f32 %v6053_v61  ;;  %v2153_v20 = vadd.f32 0.05243302, %v2152_v24 }
 0x296   :  { %v2514_v57 = vmul.f32 %v2513_v21, %v6006_v47  ;;  %v2551_v10 = vadd.f32 0.0036580483, %v2550_v22  ;;  %v6626_v29 = vand.u32 2147483647, %v5923_v43  ;;  %v3104_v33 = vclamps-f32 %v6629_v59, 1.0 }
 0x297   :  { %v2525_v38 = vmul.f32 %v2524_v14, %v6006_v47  ;;  %v2561_v15 = vmul.f32 %v2560_v25, %v6020_v0  ;;  %v3091_v36 = vclamps-f32 %v6630_v13, 1.0  ;;  %v2093_v60 = vadd.f32 %v6002_v51, %v2092_v11 }
 0x298   :  { %vm6071_vm3 = vcmp.eq.f32.partialorder %v6626_v29, 8.507059e+37  ;;  %vm2095_vm4 = vweird.f32 %v6002_v51  ;;  %v2115_v24 = vadd.f32 0.18741608, %v2114_v31  ;;  %v2552_v19 = vmul.f32 %v2551_v10, %v6020_v0  ;;  %v618_v31 = vpop.f32.mrf.mxu2 }
 0x299   :  { %v2167_v50 = vmul.f32 %v2166_v2, %v5976_v17  ;;  %v2526_v21 = vadd.f32 0.4994258, %v2525_v38  ;;  %v2562_v22 = vadd.f32 0.014752088, %v2561_v15  ;;  %v2681_v29 = vadd.f32 1.0, %v3104_v33  ;;  %v6640_v2 = vld [vmem:[#allocation9_spill] sm:$0xff] }
 0x29a   :  { %v6086_v14 = vsel %vm6037_vm14, %v5974_v34, %v1697_v39  ;;  %v2078_v25 = vmul.f32 %v2077_v44, %v5754_v45  ;;  %vm2094_vm5 = vweird.f32 %v5953_v28  ;;  %v2154_v11 = vmul.f32 %v2153_v20, %v5976_v17 }
 0x29b   :  { %vm6099_vm7 = vcmp.eq.f32.partialorder %v2098_v37, 8.507059e+37  ;;  %v2100_v34 = vand.u32 2147483648, %v5953_v28  ;;  %v2515_v18 = vadd.f32 0.18741608, %v2514_v57  ;;  %v2668_v45 = vadd.f32 1.0, %v3091_v36  ;;  %v6104_v39 = vpop.eup %3239  ;;  %vm6111_vm8 = vmor %vm2094_vm5, %vm2095_vm4 }
 0x29c   :  { %v2057_v44 = vsel %vm6095_vm6, %v5988_v49, %v2053_v40  ;;  %v2527_v37 = vmul.f32 %v2526_v21, %v6006_v47  ;;  %v2553_v20 = vadd.f32 0.05243302, %v2552_v19  ;;  %v2563_v10 = vmul.f32 %v2562_v22, %v6020_v0  ;;  %v6637_v49 = vld [vmem:[#allocation14_spill] sm:$0xff]  ;;  %v6638_v21 = vld [vmem:[#allocation8_spill] sm:$0xff] }
 0x29d   :  { %v2097_v28 = vsel %vm6111_vm8, %v6002_v51, %v2093_v60  ;;  %v2116_v57 = vmul.f32 %v2115_v24, %v5925_v55  ;;  %v6121_v38 = vadd.f32 1.0, %v2167_v50  ;;  %v2729_v40 = vmul.f32 %v2681_v29, %v6637_v49  ;;  %v6639_v60 = vld [vmem:[#allocation16_spill] sm:$0xff] }
 0x29e   :  { %v2155_v15 = vadd.f32 0.18741608, %v2154_v11  ;;  %v6124_v59 = vadd.f32 1.0, %v2527_v37  ;;  %v2554_v33 = vmul.f32 %v2553_v20, %v6020_v0  ;;  %v2564_v13 = vadd.f32 0.112945676, %v2563_v10 }
 0x29f   :  { %v2130_v36 = vmul.f32 %v6104_v39, %v6053_v61  ;;  %v2516_v19 = vmul.f32 %v2515_v18, %v6006_v47  ;;  %2847 = vmatpush.msrb.mxu3 %v2729_v40  ;;  %v2716_v51 = vmul.f32 %v2668_v45, %v6638_v21  ;;  %v3092_v55 = vclamps-f32 %v6639_v60, 1.0 }
 0x2a0   :  { %v2062_v24 = vsel %vm6071_vm3, %v6025_v54, %v2057_v44  ;;  %v2101_v50 = vor.u32 1.1754944e-38, %v2100_v34  ;;  %v6136_v22 = vmul.f32 0.5, %v5969_v16  ;;  %3241 = vrcp.f32 %v6124_v59 }
 0x2a1   :  { %v2117_v29 = vadd.f32 1.1283791, %v2116_v57  ;;  %v2140_v11 = vand.u32 2147483648, %v6053_v61  ;;  %3243 = vrcp.f32 %v6121_v38  ;;  %v2555_v47 = vadd.f32 0.18741608, %v2554_v33  ;;  %2828 = vmatpush.msrb.mxu2 %v2716_v51 }
 0x2a2   :  { %v2102_v18 = vsel %vm6099_vm7, %v2101_v50, %v2097_v28  ;;  %v2156_v52 = vmul.f32 %v2155_v15, %v5976_v17  ;;  %v2565_v54 = vmul.f32 %v2564_v13, %v6020_v0  ;;  %v2669_v34 = vadd.f32 1.0, %v3092_v55  ;;  %v647_v55 = vpop.f32.mrf.mxu3  ;;  %v6642_v50 = vld [vmem:[#allocation34_spill] sm:$0xff] }
 0x2a3   :  { %2905 = vmatpush.msra.mxu2 %v5553_v62  ;;  %v6147_v16 = vmul.f32 %v2062_v24, %v6033_v41  ;;  %v2131_v45 = vsub.f32 1.0, %v2130_v36  ;;  %v2517_v44 = vadd.f32 1.1283791, %v2516_v19  ;;  %v6150_v43 = vmul.f32 0.5, %v5982_v42 }
 0x2a4   :  { %v2556_v37 = vmul.f32 %v2555_v47, %v6020_v0  ;;  %v2566_v20 = vadd.f32 0.4994258, %v2565_v54  ;;  %v2717_v10 = vmul.f32 %v2669_v34, %v6640_v2  ;;  %v6155_v17 = vadd.f32 %v618_v31, %v3799_v5 }
 0x2a5   :  { %v6157_v28 = vmul.f32 %v2102_v18, %v2078_v25  ;;  %v6160_v62 = vmul.f32 %v2117_v29, %v5900_v32  ;;  %v6163_v57 = vor.u32 1.1754944e-38, %v2140_v11  ;;  %v6165_v42 = vadd.f32 1.1283791, %v2156_v52  ;;  %v6645_v11 = vld [vmem:[#allocation35_spill] sm:$0xff] }
 0x2a6   :  { %v3242_v49 = vpop.eup %3241  ;;  %v2538_v40 = vand.u32 2147483647, %v6124_v59  ;;  %v2567_v15 = vmul.f32 %v2566_v20, %v6020_v0  ;;  %2848 = vmatpush.msrb.mxu3 %v2717_v10  ;;  %v6170_v33 = vmul.f32 0.70710677, %v6155_v17  ;;  %v6175_v32 = vmul.f32 %v6104_v39, %v2131_v45  ;;  %v6647_v45 = vld [vmem:[#allocation40_spill] sm:$0xff] }
 0x2a7   :  { %v6172_v25 = vpop.eup %3243  ;;  %v2518_v13 = vmul.f32 %v2517_v44, %v5979_v27  ;;  %v2530_v36 = vmul.f32 %v3242_v49, %v6124_v59  ;;  %v3093_v19 = vclamps-f32 %v4768_v56, 1.0  ;;  %v2540_v21 = vand.u32 2147483648, %v6124_v59 }
 0x2a8   :  { %2925 = vmatpush.msra.mxu3 %v5657_v46  ;;  %v2557_v0 = vadd.f32 1.1283791, %v2556_v37  ;;  %v6182_v51 = vadd.f32 1.0, %v2567_v15  ;;  %v2586_v60 = vmul.f32 %v6170_v33, %v6170_v33  ;;  %vm2534_vm9 = vweird.f32 %v6124_v59 }
 0x2a9   :  { %v2531_v24 = vsub.f32 1.0, %v2530_v36  ;;  %v6188_v27 = vadd.f32 %v647_v55, %v3799_v5  ;;  %v3105_v29 = vclamps-f32 %v6642_v50, 1.0  ;;  %v6193_v56 = vmul.f32 %v6172_v25, %v6121_v38  ;;  %v6649_v55 = vld [vmem:[#allocation21_spill] sm:$0xff] }
 0x2aa   :  { %vm6195_vm10 = vcmp.eq.f32.partialorder %v2538_v40, 8.507059e+37  ;;  %3245 = vrcp.f32 %v6182_v51  ;;  %v3106_v47 = vclamps-f32 %v6645_v11, 1.0  ;;  %vm2535_vm11 = vweird.f32 %v3242_v49 }
 0x2ab   :  { %6641 = vst [vmem:[#allocation7_spill] sm:$0xff] %v6188_v27  ;;  %v2532_v31 = vmul.f32 %v3242_v49, %v2531_v24  ;;  %v6201_v18 = vmin.f32 %v2586_v60, 16.0  ;;  %v2670_v5 = vadd.f32 1.0, %v3093_v19  ;;  %v2541_v52 = vor.u32 1.1754944e-38, %v2540_v21  ;;  %vm2536_vm12 = vmor %vm2534_vm9, %vm2535_vm11 }
 0x2ac   :  { %v6204_v54 = vmul.f32 %v2557_v0, %v6000_v35  ;;  %v6207_v34 = vmul.f32 0.70710677, %v6188_v27  ;;  %v3117_v44 = vclamps-f32 %v6647_v45, 1.0  ;;  %v2682_v10 = vadd.f32 1.0, %v3105_v29  ;;  %v6648_v35 = vld [vmem:[#allocation41_spill] sm:$0xff]  ;;  %v6650_v29 = vld [vmem:[#allocation31_spill] sm:$0xff] }
 0x2ad   :  { %v2533_v37 = vadd.f32 %v3242_v49, %v2532_v31  ;;  %v2588_v20 = vmul.f32 2.1237322e-06, %v6201_v18  ;;  %v2599_v2 = vmul.f32 3.8918573e-05, %v6201_v18  ;;  %v3118_v36 = vclamps-f32 %v6648_v35, 1.0 }
 0x2ae   :  { %6646 = vst [vmem:[#allocation17_spill] sm:$0xff] %v6207_v34  ;;  %v2626_v40 = vmul.f32 %v6207_v34, %v6207_v34  ;;  %v2694_v15 = vadd.f32 1.0, %v3117_v44  ;;  %v2683_v19 = vadd.f32 1.0, %v3106_v47  ;;  %v2718_v24 = vmul.f32 %v2670_v5, %v6649_v55 }
 0x2af   :  { %v2537_v21 = vsel %vm2536_vm12, %v3242_v49, %v2533_v37  ;;  %v2589_v0 = vadd.f32 0.00028619796, %v2588_v20  ;;  %v2600_v60 = vadd.f32 0.001143296, %v2599_v2  ;;  %v2578_v11 = vand.u32 2147483647, %v6182_v51 }
 0x2b0   :  { %v3246_v50 = vpop.eup %3245  ;;  %v6219_v31 = vmin.f32 %v2626_v40, 16.0  ;;  %v2742_v59 = vmul.f32 %v2694_v15, %v6650_v29  ;;  %v2695_v45 = vadd.f32 1.0, %v3118_v36  ;;  %v2542_v41 = vsel %vm6195_vm10, %v2541_v52, %v2537_v21  ;;  %v6651_v49 = vld [vmem:[#allocation25_spill] sm:$0xff]  ;;  %v6652_v40 = vld [vmem:[#allocation32_spill] sm:$0xff] }
 0x2b1   :  { %v2570_v44 = vmul.f32 %v3246_v50, %v6182_v51  ;;  %v2590_v47 = vmul.f32 %v2589_v0, %v6201_v18  ;;  %v2730_v37 = vmul.f32 %v2682_v10, %v6651_v49  ;;  %v2601_v20 = vmul.f32 %v2600_v60, %v6201_v18  ;;  %v6653_v52 = vld [vmem:[#allocation28_spill] sm:$0xff]  ;;  %v6654_v10 = vld [vmem:[#allocation26_spill] sm:$0xff] }
 0x2b2   :  { %v2628_v5 = vmul.f32 2.1237322e-06, %v6219_v31  ;;  %v2639_v2 = vmul.f32 3.8918573e-05, %v6219_v31  ;;  %2866 = vmatpush.msra.mxu0 %v2742_v59  ;;  %v2743_v35 = vmul.f32 %v2695_v45, %v6652_v40  ;;  %v2580_v36 = vand.u32 2147483648, %v6182_v51 }
 0x2b3   :  { %v2571_v15 = vsub.f32 1.0, %v2570_v44  ;;  %v2591_v46 = vadd.f32 0.0036580483, %v2590_v47  ;;  %v3094_v21 = vclamps-f32 %v6653_v52, 1.0  ;;  %v2602_v55 = vadd.f32 0.014752088, %v2601_v20 }
 0x2b4   :  { %v2629_v29 = vadd.f32 0.00028619796, %v2628_v5  ;;  %v2640_v0 = vadd.f32 0.001143296, %v2639_v2  ;;  %2886 = vmatpush.msra.mxu1 %v2743_v35  ;;  %2867 = vmatpush.msra.mxu0 %v2730_v37  ;;  %v2731_v60 = vmul.f32 %v2683_v19, %v6654_v10  ;;  %v2543_v49 = vmul.f32 %v2542_v41, %v2518_v13  ;;  %v6655_v47 = vld [vmem:[#allocation42_spill] sm:$0xff] }
 0x2b5   :  { %v2572_v27 = vmul.f32 %v3246_v50, %v2571_v15  ;;  %vm2575_vm13 = vweird.f32 %v3246_v50  ;;  %v2671_v34 = vadd.f32 1.0, %v3094_v21  ;;  %vm2135_vm14 = vweird.f32 %v6104_v39  ;;  %v6656_v13 = vld [vmem:[#allocation22_spill] sm:$0xff] }
 0x2b6   :  { %v2603_v59 = vmul.f32 %v2602_v55, %v6201_v18  ;;  %v2630_v45 = vmul.f32 %v2629_v29, %v6219_v31  ;;  %v2641_v44 = vmul.f32 %v2640_v0, %v6219_v31  ;;  %2887 = vmatpush.msra.mxu1 %v2731_v60  ;;  %2868 = vmatpush.msra.mxu0 %v2718_v24  ;;  %v3119_v20 = vclamps-f32 %v6655_v47, 1.0  ;;  %v6657_v29 = vld [vmem:[#allocation36_spill] sm:$0xff] }
 0x2b7   :  { %v2573_v5 = vadd.f32 %v3246_v50, %v2572_v27  ;;  %vm2574_vm0 = vweird.f32 %v6182_v51  ;;  %v2592_v41 = vmul.f32 %v2591_v46, %v6201_v18  ;;  %v2719_v19 = vmul.f32 %v2671_v34, %v6656_v13 }
 0x2b8   :  { %vm2134_vm1 = vweird.f32 %v6053_v61  ;;  %vm2576_vm2 = vmor %vm2574_vm0, %vm2575_vm13  ;;  %vm2579_vm3 = vcmp.eq.f32.partialorder %v2578_v11, 8.507059e+37  ;;  %v2581_v37 = vor.u32 1.1754944e-38, %v2580_v36  ;;  %v2604_v2 = vadd.f32 0.112945676, %v2603_v59  ;;  %v6658_v59 = vld [vmem:[#allocation38_spill] sm:$0xff] }
 0x2b9   :  { %v2642_v40 = vadd.f32 0.014752088, %v2641_v44  ;;  %v2577_v35 = vsel %vm2576_vm2, %v3246_v50, %v2573_v5  ;;  %v2631_v15 = vadd.f32 0.0036580483, %v2630_v45  ;;  %2888 = vmatpush.msra.mxu1 %v2719_v19  ;;  %v2696_v24 = vadd.f32 1.0, %v3119_v20  ;;  %v6659_v45 = vld [vmem:[#allocation37_spill] sm:$0xff]  ;;  %vm6277_vm5 = vmor %vm2134_vm1, %vm2135_vm14 }
 0x2ba   :  { %v3120_v52 = vclamps-f32 %v5439_v7, 1.0  ;;  %v3133_v27 = vclamps-f32 %v2543_v49, 1.0  ;;  %v2582_v21 = vsel %vm2579_vm3, %v2581_v37, %v2577_v35  ;;  %v2605_v51 = vmul.f32 %v2604_v2, %v6201_v18  ;;  %v6660_v5 = vld [vmem:[#allocation39_spill] sm:$0xff]  ;;  %v6661_v19 = vld [vmem:[#allocation29_spill] sm:$0xff] }
 0x2bb   :  { %v2643_v46 = vmul.f32 %v2642_v40, %v6219_v31  ;;  %v2583_v34 = vmul.f32 %v2582_v21, %v6204_v54  ;;  %v2593_v55 = vadd.f32 0.05243302, %v2592_v41  ;;  %v2744_v11 = vmul.f32 %v2696_v24, %v6657_v29  ;;  %v6667_v21 = vld [vmem:[#allocation27_spill] sm:$0xff] }
 0x2bc   :  { %v2697_v36 = vadd.f32 1.0, %v3120_v52  ;;  %v6250_v50 = vadd.f32 %v6104_v39, %v6175_v32  ;;  %v6254_v0 = vmul.f32 %v6165_v42, %v5960_v53  ;;  %v2606_v7 = vadd.f32 0.4994258, %v2605_v51 }
 0x2bd   :  { %v2644_v10 = vadd.f32 0.112945676, %v2643_v46  ;;  %v3134_v60 = vclamps-f32 %v2583_v34, 1.0  ;;  %v2632_v49 = vmul.f32 %v2631_v15, %v6219_v31  ;;  %2906 = vmatpush.msra.mxu2 %v2744_v11  ;;  %v3107_v44 = vclamps-f32 %v6659_v45, 1.0  ;;  %v6668_v11 = vld [vmem:[#allocation30_spill] sm:$0xff] }
 0x2be   :  { %v2745_v54 = vmul.f32 %v2697_v36, %v6658_v59  ;;  %v2171_v47 = vsub.f32 1.0, %v6193_v56  ;;  %v2607_v20 = vmul.f32 %v2606_v7, %v6201_v18  ;;  %v3108_v41 = vclamps-f32 %v6660_v5, 1.0  ;;  %v6669_v7 = vld [vmem:[#allocation23_spill] sm:$0xff] }
 0x2bf   :  { %v2645_v32 = vmul.f32 %v2644_v10, %v6219_v31  ;;  %v2710_v53 = vadd.f32 1.0, %v3133_v27  ;;  %v2594_v42 = vmul.f32 %v2593_v55, %v6201_v18  ;;  %v2684_v13 = vadd.f32 1.0, %v3107_v44 }
 0x2c0   :  { %2926 = vmatpush.msra.mxu3 %v2745_v54  ;;  %v3095_v37 = vclamps-f32 %v6661_v19, 1.0  ;;  %v6662_v2 = vand.u32 2147483647, %v6053_v61  ;;  %v2711_v56 = vadd.f32 1.0, %v3134_v60  ;;  %v6271_v35 = vadd.f32 1.0, %v2607_v20  ;;  %v6296_v60 = vld [vmem:[%s6412_s3] sm:$0xff] }
 0x2c1   :  { %v2646_v15 = vadd.f32 0.4994258, %v2645_v32  ;;  %v2685_v24 = vadd.f32 1.0, %v3108_v41  ;;  %vm2174_vm6 = vweird.f32 %v6121_v38  ;;  %v2633_v27 = vadd.f32 0.05243302, %v2632_v49  ;;  %v6670_v49 = vld [vmem:[#allocation33_spill] sm:$0xff] }
 0x2c2   :  { %vm6267_vm4 = vcmp.eq.f32.partialorder %v6662_v2, 8.507059e+37  ;;  %v2732_v51 = vmul.f32 %v2684_v13, %v6667_v21  ;;  %v2672_v46 = vadd.f32 1.0, %v3095_v37  ;;  %v2137_v34 = vsel %vm6277_vm5, %v6104_v39, %v6250_v50 }
 0x2c3   :  { %v2172_v55 = vmul.f32 %v6172_v25, %v2171_v47  ;;  %vm2175_vm7 = vweird.f32 %v6172_v25  ;;  %3247 = vrcp.f32 %v6271_v35  ;;  %v2595_v61 = vadd.f32 0.18741608, %v2594_v42 }
 0x2c4   :  { %v2647_v29 = vmul.f32 %v2646_v15, %v6219_v31  ;;  %2907 = vmatpush.msra.mxu2 %v2732_v51  ;;  %v2733_v36 = vmul.f32 %v2685_v24, %v6668_v11  ;;  %v2720_v10 = vmul.f32 %v2672_v46, %v6669_v7  ;;  %v2758_v39 = vmul.f32 %v2710_v53, %v6136_v22  ;;  %v6671_v53 = vld [vmem:[#allocation24_spill] sm:$0xff]  ;;  %vm6333_vm9 = vmor %vm2174_vm6, %vm2175_vm7 }
 0x2c5   :  { %v2759_v50 = vmul.f32 %v2711_v56, %v6150_v43  ;;  %v3096_v59 = vclamps-f32 %v6670_v49, 1.0  ;;  %vm2769_vm8 = vcmask 261120   ;;  %v2634_v54 = vmul.f32 %v2633_v27, %v6219_v31 }
 0x2c6   :  { %v6302_v45 = vadd.f32 1.0, %v2647_v29  ;;  %2927 = vmatpush.msra.mxu3 %v2733_v36  ;;  %2908 = vmatpush.msra.mxu2 %v2720_v10  ;;  %v3121_v44 = vclamps-f32 %v6147_v16, 1.0  ;;  %v3122_v47 = vclamps-f32 %v6157_v28, 1.0  ;;  %v2173_v20 = vadd.f32 %v6172_v25, %v2172_v55 }
 0x2c7   :  { %v2673_v32 = vadd.f32 1.0, %v3096_v59  ;;  %3139 = vmatmul.msk.f32.vlgmr.msrb.gmra.mxu2 %vm2769_vm8, %v6296_v60  ;;  %3140 = vmatmul.msk.f32.vlgmr.msrb.gmra.mxu3 %vm2769_vm8, %v6296_v60  ;;  %v3109_v22 = vclamps-f32 %v5914_v48, 1.0  ;;  %v3110_v43 = vclamps-f32 %v5932_v30, 1.0  ;;  %v2178_v5 = vand.u32 2147483647, %v6121_v38  ;;  %v2763_v48 = vld [vmem:[%s6413_s4] sm:$0xff] }
 0x2c8   :  { %v2596_v41 = vmul.f32 %v2595_v61, %v6201_v18  ;;  %3249 = vrcp.f32 %v6302_v45  ;;  %3137 = vmatmul.msk.f32.vlgmr.msrb.gmra.mxu0 %vm2769_vm8, %v6296_v60  ;;  %3138 = vmatmul.msk.f32.vlgmr.msrb.gmra.mxu1 %vm2769_vm8, %v6296_v60  ;;  %v3097_v16 = vclamps-f32 %v5660_v1, 1.0  ;;  %v2180_v30 = vand.u32 2147483648, %v6121_v38  ;;  %s3279_s4 = smov [#allocation3]  }
 0x2c9   :  { %v3248_v28 = vpop.eup %3247  ;;  %v2721_v42 = vmul.f32 %v2673_v32, %v6671_v53  ;;  %2945 = vmatpush.msrb.mxu0 %v2758_v39  ;;  %2965 = vmatpush.msrb.mxu1 %v2759_v50  ;;  %v2698_v18 = vadd.f32 1.0, %v3121_v44  ;;  %v2699_v13 = vadd.f32 1.0, %v3122_v47  ;;  %v2142_v19 = vsel %vm6267_vm4, %v6163_v57, %v2137_v34  ;;  %v6678_v44 = vld [vmem:[#allocation13_spill] sm:$0xff]  ;;  %s3030_s27 = sshll.u32 %s3279_s4, 4  ;;  %s3031_s27 = int_to_ptr.vmem [resolvable:$true] %s3030_s27 }
 0x2ca   :  { %v2610_v37 = vmul.f32 %v3248_v28, %v6271_v35  ;;  %v2635_v2 = vadd.f32 0.18741608, %v2634_v54  ;;  %v2686_v56 = vadd.f32 1.0, %v3109_v22  ;;  %2766 = vperm.xlu2 %3154, %v2763_v48   ;;  %v2177_v15 = vsel %vm6333_vm9, %v6172_v25, %v2173_v20  ;;  %v6677_v54 = vld [vmem:[#allocation47_spill] sm:$0xff] }
 0x2cb   :  { %2928 = vmatpush.msra.mxu3 %v2721_v42  ;;  %v2746_v57 = vmul.f32 %v2698_v18, %v5821_v9  ;;  %v2747_v40 = vmul.f32 %v2699_v13, %v5828_v12  ;;  %v2687_v24 = vadd.f32 1.0, %v3110_v43  ;;  %v6674_v38 = vand.u32 2147483647, %v5607_v23  ;;  %v6680_v43 = vld [vmem:[#allocation48_spill] sm:$0xff]  ;;  %v6684_v42 = vld [vmem:[#allocation6_spill] sm:$0xff] }
 0x2cc   :  { %v2597_v27 = vadd.f32 1.1283791, %v2596_v41  ;;  %v2611_v21 = vsub.f32 1.0, %v2610_v37  ;;  %v2674_v51 = vadd.f32 1.0, %v3097_v16  ;;  %v3098_v46 = vclamps-f32 %v5713_v26, 1.0  ;;  %v6683_v16 = vld [vmem:[#allocation50_spill] sm:$0xff] }
 0x2cd   :  { %vm6345_vm10 = vcmp.eq.f32.partialorder %v6674_v38, 8.507059e+37  ;;  %v2618_v34 = vand.u32 2147483647, %v6271_v35  ;;  %v2620_v25 = vand.u32 2147483648, %v6271_v35  ;;  %2946 = vmatpush.msrb.mxu0 %v2746_v57  ;;  %2966 = vmatpush.msrb.mxu1 %v2747_v40  ;;  %v2734_v9 = vmul.f32 %v2686_v56, %v5584_v3  ;;  %v6686_v57 = vld [vmem:[#allocation49_spill] sm:$0xff] }
 0x2ce   :  { %v2735_v12 = vmul.f32 %v2687_v24, %v5610_v58  ;;  %v3250_v23 = vpop.eup %3249  ;;  %v2612_v55 = vmul.f32 %v3248_v28, %v2611_v21  ;;  %vm2615_vm11 = vweird.f32 %v3248_v28  ;;  %v2636_v61 = vmul.f32 %v2635_v2, %v6219_v31 }
 0x2cf   :  { %v2675_v29 = vadd.f32 1.0, %v3098_v46  ;;  %vm2179_vm12 = vcmp.eq.f32.partialorder %v2178_v5, 8.507059e+37  ;;  %v2181_v11 = vor.u32 1.1754944e-38, %v2180_v30  ;;  %v2650_v26 = vmul.f32 %v3250_v23, %v6302_v45  ;;  %2947 = vmatpush.msrb.mxu0 %v2734_v9  ;;  %3143 = vmatmul.msk.f32.vlgmr.msra.gmra.mxu2 %vm2769_vm8, %v6296_v60  ;;  %v6681_v5 = vld [vmem:[#allocation51_spill] sm:$0xff] }
 0x2d0   :  { %2967 = vmatpush.msrb.mxu1 %v2735_v12  ;;  %v2722_v36 = vmul.f32 %v2674_v51, %v5443_v6  ;;  %v2143_v7 = vmul.f32 %v2142_v19, %v6160_v62  ;;  %v2613_v10 = vadd.f32 %v3248_v28, %v2612_v55  ;;  %vm2614_vm13 = vweird.f32 %v6271_v35  ;;  %3144 = vmatmul.msk.f32.vlgmr.msra.gmra.mxu3 %vm2769_vm8, %v6296_v60  ;;  %v6685_v19 = vld [vmem:[#allocation17_spill] sm:$0xff]  ;;  %v6689_v9 = vld [vmem:[#allocation7_spill] sm:$0xff] }
 0x2d1   :  { %v2723_v3 = vmul.f32 %v2675_v29, %v5447_v63  ;;  %v2182_v58 = vsel %vm2179_vm12, %v2181_v11, %v2177_v15  ;;  %v2598_v31 = vmul.f32 %v2597_v27, %v6170_v33  ;;  %vm2616_vm14 = vmor %vm2614_vm13, %vm2615_vm11  ;;  %v2621_v39 = vor.u32 1.1754944e-38, %v2620_v25  ;;  %3142 = vmatmul.msk.f32.vlgmr.msra.gmra.mxu1 %vm2769_vm8, %v6296_v60  ;;  %3141 = vmatmul.msk.f32.vlgmr.msra.gmra.mxu0 %vm2769_vm8, %v6296_v60  ;;  %v6688_v51 = vld [vmem:[#allocation45_spill] sm:$0xff]  ;;  %v6690_v29 = vld [vmem:[#allocation43_spill] sm:$0xff] }
 0x2d2   :  { %v2651_v6 = vsub.f32 1.0, %v2650_v26  ;;  %2948 = vmatpush.msrb.mxu0 %v2722_v36  ;;  %v2617_v62 = vsel %vm2616_vm14, %v3248_v28, %v2613_v10  ;;  %vm2619_vm0 = vcmp.eq.f32.partialorder %v2618_v34, 8.507059e+37  ;;  %v2637_v35 = vadd.f32 1.1283791, %v2636_v61  ;;  %v6691_v36 = vld [vmem:[#allocation10_spill] sm:$0xff] }
 0x2d3   :  { %v2660_v50 = vand.u32 2147483648, %v6302_v45  ;;  %2968 = vmatpush.msrb.mxu1 %v2723_v3  ;;  %v2622_v63 = vsel %vm2619_vm0, %v2621_v39, %v2617_v62  ;;  %vm2655_vm1 = vweird.f32 %v3250_v23  ;;  %v2658_v33 = vand.u32 2147483647, %v6302_v45 }
 0x2d4   :  { %v2652_v49 = vmul.f32 %v3250_v23, %v2651_v6  ;;  %v1183_v59 = vmul.f32 %v5760_v8, %v5666_v4  ;;  %v1678_v47 = vmul.f32 %v6678_v44, %v6677_v54  ;;  %v2623_v20 = vmul.f32 %v2622_v63, %v2598_v31  ;;  %v6692_v31 = vld [vmem:[#allocation46_spill] sm:$0xff] }
 0x2d5   :  { %v3123_v32 = vclamps-f32 %v2143_v7, 1.0  ;;  %v6682_v41 = vsel %vm5781_vm15, %v6680_v43, %v6681_v5  ;;  %v2183_v28 = vmul.f32 %v2182_v58, %v6254_v0  ;;  %vm2654_vm2 = vweird.f32 %v6302_v45 }
 0x2d6   :  { %v1222_v48 = vsel %vm6345_vm10, %v6683_v16, %v6682_v41  ;;  %v2653_v30 = vadd.f32 %v3250_v23, %v2652_v49  ;;  %v1703_v4 = vmul.f32 %v6086_v14, %v1678_v47  ;;  %v3135_v8 = vclamps-f32 %v2623_v20, 1.0  ;;  %vm2656_vm3 = vmor %vm2654_vm2, %vm2655_vm1  ;;  %v6687_v14 = vld [vmem:[#allocation12_spill] sm:$0xff] }
 0x2d7   :  { %v2661_v53 = vor.u32 1.1754944e-38, %v2660_v50  ;;  %v3111_v18 = vclamps-f32 %v6684_v42, 1.0  ;;  %v696_v13 = vmul.f32 0.5, %v6155_v17  ;;  %v2638_v1 = vmul.f32 %v2637_v35, %v6685_v19  ;;  %v6693_v35 = vld [vmem:[#allocation44_spill] sm:$0xff] }
 0x2d8   :  { %v2657_v37 = vsel %vm2656_vm3, %v3250_v23, %v2653_v30  ;;  %vm2659_vm15 = vcmp.eq.f32.partialorder %v2658_v33, 8.507059e+37  ;;  %v2712_v2 = vadd.f32 1.0, %v3135_v8  ;;  %v2700_v15 = vadd.f32 1.0, %v3123_v32 }
 0x2d9   :  { %v2662_v56 = vsel %vm2659_vm15, %v2661_v53, %v2657_v37  ;;  %v3099_v0 = vclamps-f32 %v1183_v59, 1.0  ;;  %v1223_v40 = vmul.f32 %v1222_v48, %v6686_v57  ;;  %v3124_v24 = vclamps-f32 %v2183_v28, 1.0  ;;  %3146 = vmatmul.msk.f32.vlgmr.msrb.gmra.mxu1 %vm2769_vm8, %v6296_v60  ;;  %3145 = vmatmul.msk.f32.vlgmr.msrb.gmra.mxu0 %vm2769_vm8, %v6296_v60 }
 0x2da   :  { %v2663_v45 = vmul.f32 %v2662_v56, %v2638_v1  ;;  %v684_v38 = vmul.f32 0.5, %v6687_v14  ;;  %v2760_v52 = vmul.f32 %v2712_v2, %v696_v13  ;;  %v2688_v27 = vadd.f32 1.0, %v3111_v18 }
 0x2db   :  { %v3112_v21 = vclamps-f32 %v1703_v4, 1.0  ;;  %v672_v46 = vmul.f32 0.5, %v6688_v51  ;;  %v2676_v25 = vadd.f32 1.0, %v3099_v0  ;;  %v697_v12 = vmul.f32 0.5, %v6689_v9 }
 0x2dc   :  { %v3136_v17 = vclamps-f32 %v2663_v45, 1.0  ;;  %2985 = vmatpush.msrb.mxu2 %v2760_v52  ;;  %v2748_v34 = vmul.f32 %v2700_v15, %v684_v38  ;;  %v2701_v55 = vadd.f32 1.0, %v3124_v24  ;;  %v3100_v61 = vclamps-f32 %v1223_v40, 1.0 }
 0x2dd   :  { %v660_v11 = vmul.f32 0.5, %v6690_v29  ;;  %v2736_v26 = vmul.f32 %v2688_v27, %v672_v46  ;;  %v685_v7 = vmul.f32 0.5, %v6691_v36  ;;  %v2689_v3 = vadd.f32 1.0, %v3112_v21 }
 0x2de   :  { %v2713_v23 = vadd.f32 1.0, %v3136_v17  ;;  %2986 = vmatpush.msrb.mxu2 %v2748_v34  ;;  %v673_v39 = vmul.f32 0.5, %v6692_v31  ;;  %v2677_v62 = vadd.f32 1.0, %v3100_v61  ;;  %v661_v50 = vmul.f32 0.5, %v6693_v35 }
 0x2df   :  { %v2724_v58 = vmul.f32 %v2676_v25, %v660_v11  ;;  %v2749_v6 = vmul.f32 %v2701_v55, %v685_v7 }
 0x2e0   :  { %v2761_v10 = vmul.f32 %v2713_v23, %v697_v12  ;;  %2987 = vmatpush.msrb.mxu2 %v2736_v26  ;;  %v2737_v63 = vmul.f32 %v2689_v3, %v673_v39  ;;  %v2725_v49 = vmul.f32 %v2677_v62, %v661_v50 }
 0x2e2   :  { %3005 = vmatpush.msrb.mxu3 %v2761_v10  ;;  %2988 = vmatpush.msrb.mxu2 %v2724_v58 }
 0x2e3   :  { %3147 = vmatmul.msk.f32.vlgmr.msrb.gmra.mxu2 %vm2769_vm8, %v6296_v60 }
 0x2e4   :  { %3006 = vmatpush.msrb.mxu3 %v2749_v6 }
 0x2e6   :  { %3007 = vmatpush.msrb.mxu3 %v2737_v63 }
 0x2e8   :  { %3008 = vmatpush.msrb.mxu3 %v2725_v49 }
 0x2e9   :  { %3148 = vmatmul.msk.f32.vlgmr.msrb.gmra.mxu3 %vm2769_vm8, %v6296_v60 }
 0x324   :  { %v2767_v33 = vpop.permute.xlu2 %2766 }
 0x345   :  { %v2790_v59 = vpop.f32.mrf.mxu0  ;;  %v2810_v54 = vpop.f32.mrf.mxu1 }
 0x346   :  { %v2791_v44 = vadd.f32 %v2790_v59, %v2767_v33  ;;  %v2811_v47 = vadd.f32 %v2810_v54, %v2767_v33 }
 0x348   :  { %3013 = vst [vmem:[#allocation3] sm:$0xff] %v2791_v44 }
 0x349   :  { %3014 = vst [vmem:[#allocation3 + $0x8] sm:$0xff] %v2811_v47 }
 0x34a   :  { %v2830_v20 = vpop.f32.mrf.mxu2  ;;  %v2850_v32 = vpop.f32.mrf.mxu3 }
 0x34b   :  { %v2831_v22 = vadd.f32 %v2830_v20, %v2767_v33  ;;  %v2851_v43 = vadd.f32 %v2850_v32, %v2767_v33 }
 0x34d   :  { %3015 = vst [vmem:[#allocation3 + $0x10] sm:$0xff] %v2831_v22 }
 0x34e   :  { %3016 = vst [vmem:[#allocation3 + $0x18] sm:$0xff] %v2851_v43  ;;  %v2890_v5 = vpop.f32.mrf.mxu1  ;;  %v2870_v41 = vpop.f32.mrf.mxu0 }
 0x34f   :  { %v2891_v16 = vadd.f32 %v2890_v5, %v2767_v33  ;;  %v2871_v48 = vadd.f32 %v2870_v41, %v2767_v33 }
 0x351   :  { %3018 = vst [vmem:[#allocation3 + $0x28] sm:$0xff] %v2891_v16 }
 0x352   :  { %3017 = vst [vmem:[#allocation3 + $0x20] sm:$0xff] %v2871_v48  ;;  %v2910_v60 = vpop.f32.mrf.mxu2 }
 0x353   :  { %v2930_v28 = vpop.f32.mrf.mxu3  ;;  %v2911_v30 = vadd.f32 %v2910_v60, %v2767_v33 }
 0x354   :  { %v2931_v4 = vadd.f32 %v2930_v28, %v2767_v33 }
 0x355   :  { %3019 = vst [vmem:[#allocation3 + $0x30] sm:$0xff] %v2911_v30 }
 0x356   :  { %v2970_v8 = vpop.f32.mrf.mxu1  ;;  %3020 = vst [vmem:[#allocation3 + $0x38] sm:$0xff] %v2931_v4  ;;  %v2950_v53 = vpop.f32.mrf.mxu0 }
 0x357   :  { %v2971_v42 = vadd.f32 %v2970_v8, %v2767_v33  ;;  %v2951_v18 = vadd.f32 %v2950_v53, %v2767_v33 }
 0x359   :  { %3022 = vst [vmem:[#allocation3 + $0x48] sm:$0xff] %v2971_v42 }
 0x35a   :  { %3021 = vst [vmem:[#allocation3 + $0x40] sm:$0xff] %v2951_v18 }
 0x366   :  { %v2990_v13 = vpop.f32.mrf.mxu2 }
 0x367   :  { %v2991_v19 = vadd.f32 %v2990_v13, %v2767_v33 }
 0x369   :  { %3023 = vst [vmem:[#allocation3 + $0x50] sm:$0xff] %v2991_v19 }
 0x36c   :  { %v3010_v1 = vpop.f32.mrf.mxu3 }
 0x36d   :  { %v3011_v37 = vadd.f32 %v3010_v1, %v2767_v33 }
 0x36f   :  { %3024 = vst [vmem:[#allocation3 + $0x58] sm:$0xff] %v3011_v37 }
 0x370   :  { %3035 = dma.vmem_to_hbm [thread:$0]  %s3031_s27, 1536, %s3033_s2, [#allocation4]  }
 0x371   :  { %3275 = dma.done.wait [#allocation4], 1536  }
 0x372   :  { %3276 = vsyncadd [#allocation4], 4294965760 }
 0x373   :  { %3040 = vsyncpa [#allocation4], 1 }

</bundles_post_ra>
